<compile_context>
chip_gen: v5e
topology: v5e:2x2
jax: 0.10.0
libtpu: 0.0.40
codegen_flags: <defaults>
</compile_context>

<pallas_src>
import numpy as np

import jax
import jax.numpy as jnp
from jax.experimental import pallas as pl
from jax.experimental.pallas import tpu as pltpu

KSIZE = 5
STRIDE = 2


def conv2d_size_out(size, kernel_size=KSIZE, stride=STRIDE):
    return (size - (kernel_size - 1) - 1) // stride + 1


# ---------------------------------------------------------------------------
# Init-time constant builders (shape- and weight-dependent, built once)
# ---------------------------------------------------------------------------
def _row_select_stack(batch, h_in, h_out):
    """S[kh, b*h_out + oh, b*h_in + 2*oh + kh] = 1  (stride-2 row sampling)."""
    s = np.zeros((KSIZE, batch * h_out, batch * h_in), np.float32)
    for kh in range(KSIZE):
        for b in range(batch):
            for oh in range(h_out):
                s[kh, b * h_out + oh, b * h_in + STRIDE * oh + kh] = 1.0
    return jnp.asarray(s)


def _col_weight_stack(w_folded, w_in, w_out):
    """N[kh, w*Cin + c, ow*Cout + co] = sum_kw [w == 2*ow+kw] * Wf[co, c, kh, kw]."""
    sel = np.zeros((w_in, KSIZE, w_out), np.float32)
    for ow in range(w_out):
        for kw in range(KSIZE):
            sel[STRIDE * ow + kw, kw, ow] = 1.0
    cout, cin = w_folded.shape[0], w_folded.shape[1]
    n = jnp.einsum("wkv,ochk->hwcvo", jnp.asarray(sel), w_folded)
    return n.reshape(KSIZE, w_in * cin, w_out * cout)


def _fold_bn(w, conv_b, gamma, beta, mean, var, eps=1e-5):
    scale = gamma / jnp.sqrt(var + eps)                 # (Cout,)
    w_f = w * scale[:, None, None, None]                # (Cout, Cin, 5, 5)
    b_f = (conv_b - mean) * scale + beta                # (Cout,)
    return w_f, b_f


def prepare_params(params, h, w, batch):
    """Fold BN and pre-build every constant matrix the fused kernel needs."""
    h1, w1 = conv2d_size_out(h), conv2d_size_out(w)
    h2, w2 = conv2d_size_out(h1), conv2d_size_out(w1)
    h3, w3 = conv2d_size_out(h2), conv2d_size_out(w2)

    c = {}
    dims = [(h, w, h1, w1), (h1, w1, h2, w2), (h2, w2, h3, w3)]
    for i, (hi, wi, ho, wo) in enumerate(dims, start=1):
        w_f, b_f = _fold_bn(params[f"w{i}"], params[f"b{i}"], params[f"gamma{i}"],
                            params[f"beta{i}"], params[f"mean{i}"], params[f"var{i}"])
        c[f"S{i}"] = _row_select_stack(batch, hi, ho)
        c[f"N{i}"] = _col_weight_stack(w_f, wi, wo)
        c[f"b{i}"] = jnp.tile(b_f, wo).reshape(1, wo * b_f.shape[0])

    # Head: out[b,o] = bh[o] + sum_{c,oh,ow} Y3[b*h3+oh, ow*C3+c] * Wh[o, c*h3*w3+oh*w3+ow]
    cout3 = params["w3"].shape[0]
    outputs = params["wh"].shape[0]
    sh = np.zeros((h3, batch, batch * h3), np.float32)
    for oh in range(h3):
        for b in range(batch):
            sh[oh, b, b * h3 + oh] = 1.0
    c["Sh"] = jnp.asarray(sh)
    wh4 = params["wh"].reshape(outputs, cout3, h3, w3)             # torch (C,H,W) flatten order
    c["Hh"] = jnp.transpose(wh4, (2, 3, 1, 0)).reshape(h3, w3 * cout3, outputs)
    c["bh"] = params["bh"].reshape(1, outputs)
    return c


# ---------------------------------------------------------------------------
# The single fused Pallas kernel: 3x (conv+BN+ReLU) + linear head
# ---------------------------------------------------------------------------
def _dqn_fused_kernel(x_ref, s1_ref, n1_ref, b1_ref, s2_ref, n2_ref, b2_ref,
                      s3_ref, n3_ref, b3_ref, sh_ref, hh_ref, bh_ref, o_ref):
    def conv_bn_relu(a, s_ref, n_ref, b_ref):
        acc = None
        for kh in range(s_ref.shape[0]):            # static 5-way unroll
            rows = jnp.dot(s_ref[kh], a, preferred_element_type=jnp.float32)
            term = jnp.dot(rows, n_ref[kh], preferred_element_type=jnp.float32)
            acc = term if acc is None else acc + term
        return jnp.maximum(acc + b_ref[...], 0.0)

    a = x_ref[...]                                  # (B*H, W*Cin)
    a = conv_bn_relu(a, s1_ref, n1_ref, b1_ref)     # (B*H1, W1*16)
    a = conv_bn_relu(a, s2_ref, n2_ref, b2_ref)     # (B*H2, W2*32)
    a = conv_bn_relu(a, s3_ref, n3_ref, b3_ref)     # (B*H3, W3*32)

    out = None                                      # linear head
    for oh in range(sh_ref.shape[0]):
        rows = jnp.dot(sh_ref[oh], a, preferred_element_type=jnp.float32)
        term = jnp.dot(rows, hh_ref[oh], preferred_element_type=jnp.float32)
        out = term if out is None else out + term
    o_ref[...] = (out + bh_ref[...]).astype(o_ref.dtype)


def _full_spec(shape):
    ndim = len(shape)
    return pl.BlockSpec(shape, lambda i, _n=ndim: (0,) * _n)


def dqn_forward(consts, x):
    batch, cin, h, w = x.shape
    outputs = consts["bh"].shape[1]
    # NCHW -> 2D "(b,h) x (w,c)" layout expected by the kernel (one cheap XLA op
    # on the 19 KB input; all per-layer layout churn lives inside the kernel).
    x2d = jnp.transpose(x, (0, 2, 3, 1)).reshape(batch * h, w * cin)

    operands = (x2d,
                consts["S1"], consts["N1"], consts["b1"],
                consts["S2"], consts["N2"], consts["b2"],
                consts["S3"], consts["N3"], consts["b3"],
                consts["Sh"], consts["Hh"], consts["bh"])

    return pl.pallas_call(
        _dqn_fused_kernel,
        out_shape=jax.ShapeDtypeStruct((batch, outputs), jnp.float32),
        grid=(1,),
        in_specs=[_full_spec(op.shape) for op in operands],
        out_specs=_full_spec((batch, outputs)),
        compiler_params=pltpu.CompilerParams(
            dimension_semantics=("arbitrary",)),
    )(*operands)


# ---------------------------------------------------------------------------
# Parameters (torch layouts) and a pure-JAX reference for the sanity check
# ---------------------------------------------------------------------------
def make_params(key, h, w, outputs):
    convw = conv2d_size_out(conv2d_size_out(conv2d_size_out(w)))
    convh = conv2d_size_out(conv2d_size_out(conv2d_size_out(h)))
    lin_in = convw * convh * 32

    keys = jax.random.split(key, 8)
    p = {}
    p["w1"] = 0.05 * jax.random.normal(keys[0], (16, 3, 5, 5), jnp.float32)
    p["b1"] = 0.01 * jax.random.normal(keys[1], (16,), jnp.float32)
    p["w2"] = 0.05 * jax.random.normal(keys[2], (32, 16, 5, 5), jnp.float32)
    p["b2"] = 0.01 * jax.random.normal(keys[3], (32,), jnp.float32)
    p["w3"] = 0.05 * jax.random.normal(keys[4], (32, 32, 5, 5), jnp.float32)
    p["b3"] = 0.01 * jax.random.normal(keys[5], (32,), jnp.float32)
    for i, c in zip((1, 2, 3), (16, 32, 32)):
        p[f"gamma{i}"] = 1.0 + 0.01 * jnp.arange(c, dtype=jnp.float32)
        p[f"beta{i}"] = 0.02 * jnp.arange(c, dtype=jnp.float32)
        p[f"mean{i}"] = 0.01 * jnp.arange(c, dtype=jnp.float32)
        p[f"var{i}"] = 1.0 + 0.05 * jnp.arange(c, dtype=jnp.float32)
    # torch Linear layout: (outputs, lin_in)
    p["wh"] = 0.05 * jax.random.normal(keys[6], (outputs, lin_in), jnp.float32)
    p["bh"] = 0.01 * jax.random.normal(keys[7], (outputs,), jnp.float32)
    return p


def ref_forward(params, x):
    def conv(x, w, b):
        return jax.lax.conv_general_dilated(
            x, w, window_strides=(2, 2), padding="VALID",
            dimension_numbers=("NCHW", "OIHW", "NCHW")) + b[None, :, None, None]

    def bn(x, g, be, m, v, eps=1e-5):
        return (x - m[None, :, None, None]) / jnp.sqrt(v + eps)[None, :, None, None] \
               * g[None, :, None, None] + be[None, :, None, None]

    x = jax.nn.relu(bn(conv(x, params["w1"], params["b1"]),
                       params["gamma1"], params["beta1"], params["mean1"], params["var1"]))
    x = jax.nn.relu(bn(conv(x, params["w2"], params["b2"]),
                       params["gamma2"], params["beta2"], params["mean2"], params["var2"]))
    x = jax.nn.relu(bn(conv(x, params["w3"], params["b3"]),
                       params["gamma3"], params["beta3"], params["mean3"], params["var3"]))
    flat = x.reshape(x.shape[0], -1)
    return flat @ params["wh"].T + params["bh"][None, :]


if __name__ == "__main__":
    B, H, W, OUTPUTS = 2, 40, 40, 4
    key = jax.random.PRNGKey(0)
    kx, kp = jax.random.split(key)
    x = jax.random.normal(kx, (B, 3, H, W), jnp.float32)
    params = make_params(kp, H, W, OUTPUTS)

    # Init-time: fold BN + build the constant selection/weight matrices once.
    consts = prepare_params(params, H, W, B)

    fwd = jax.jit(dqn_forward)
    out = jax.block_until_ready(fwd(consts, x))
    ref = jax.block_until_ready(ref_forward(params, x))

    assert out.shape == (B, OUTPUTS), out.shape
    assert jnp.allclose(out, ref, atol=1e-4, rtol=1e-4), (out, ref)
    print("KERNEL_OK")
</pallas_src>

<mosaic_0001>
module attributes {stable_mosaic.version = 11 : i64} {
  func.func @_dqn_fused_kernel(%arg0: i32, %arg1: memref<80x120xf32, #tpu.memory_space<vmem>>, %arg2: memref<5x36x80xf32, #tpu.memory_space<vmem>>, %arg3: memref<5x120x288xf32, #tpu.memory_space<vmem>>, %arg4: memref<1x288xf32, #tpu.memory_space<vmem>>, %arg5: memref<5x14x36xf32, #tpu.memory_space<vmem>>, %arg6: memref<5x288x224xf32, #tpu.memory_space<vmem>>, %arg7: memref<1x224xf32, #tpu.memory_space<vmem>>, %arg8: memref<5x4x14xf32, #tpu.memory_space<vmem>>, %arg9: memref<5x224x64xf32, #tpu.memory_space<vmem>>, %arg10: memref<1x64xf32, #tpu.memory_space<vmem>>, %arg11: memref<2x2x4xf32, #tpu.memory_space<vmem>>, %arg12: memref<2x64x4xf32, #tpu.memory_space<vmem>>, %arg13: memref<1x4xf32, #tpu.memory_space<vmem>>, %arg14: memref<2x4xf32, #tpu.memory_space<vmem>>) attributes {dimension_semantics = [#tpu.dimension_semantics<arbitrary>], iteration_bounds = array<i64: 1>, scalar_prefetch = 0 : i64, scratch_operands = 0 : i64, tpu.core_type = #tpu.core_type<tc>, window_params = [{pipeline_mode = #tpu.pipeline_mode<synchronous>, transform_indices = @transform_0, window_bounds = array<i64: 80, 120>}, {pipeline_mode = #tpu.pipeline_mode<synchronous>, transform_indices = @transform_1, window_bounds = array<i64: 5, 36, 80>}, {pipeline_mode = #tpu.pipeline_mode<synchronous>, transform_indices = @transform_2, window_bounds = array<i64: 5, 120, 288>}, {pipeline_mode = #tpu.pipeline_mode<synchronous>, transform_indices = @transform_3, window_bounds = array<i64: 1, 288>}, {pipeline_mode = #tpu.pipeline_mode<synchronous>, transform_indices = @transform_4, window_bounds = array<i64: 5, 14, 36>}, {pipeline_mode = #tpu.pipeline_mode<synchronous>, transform_indices = @transform_5, window_bounds = array<i64: 5, 288, 224>}, {pipeline_mode = #tpu.pipeline_mode<synchronous>, transform_indices = @transform_6, window_bounds = array<i64: 1, 224>}, {pipeline_mode = #tpu.pipeline_mode<synchronous>, transform_indices = @transform_7, window_bounds = array<i64: 5, 4, 14>}, {pipeline_mode = #tpu.pipeline_mode<synchronous>, transform_indices = @transform_8, window_bounds = array<i64: 5, 224, 64>}, {pipeline_mode = #tpu.pipeline_mode<synchronous>, transform_indices = @transform_9, window_bounds = array<i64: 1, 64>}, {pipeline_mode = #tpu.pipeline_mode<synchronous>, transform_indices = @transform_10, window_bounds = array<i64: 2, 2, 4>}, {pipeline_mode = #tpu.pipeline_mode<synchronous>, transform_indices = @transform_11, window_bounds = array<i64: 2, 64, 4>}, {pipeline_mode = #tpu.pipeline_mode<synchronous>, transform_indices = @transform_12, window_bounds = array<i64: 1, 4>}, {pipeline_mode = #tpu.pipeline_mode<synchronous>, transform_indices = @transform_13, window_bounds = array<i64: 2, 4>}]} {
    %c0 = arith.constant 0 : index
    %c0_0 = arith.constant 0 : index
    %0 = vector.load %arg1[%c0, %c0_0] : memref<80x120xf32, #tpu.memory_space<vmem>>, vector<80x120xf32>
    %c0_1 = arith.constant 0 : index
    %c0_2 = arith.constant 0 : index
    %c0_3 = arith.constant 0 : index
    %1 = vector.load %arg2[%c0_1, %c0_2, %c0_3] : memref<5x36x80xf32, #tpu.memory_space<vmem>>, vector<1x36x80xf32>
    %2 = vector.shape_cast %1 : vector<1x36x80xf32> to vector<36x80xf32>
    %cst = arith.constant dense<0.000000e+00> : vector<36x120xf32>
    %3 = tpu.matmul %2, %0, %cst {dimension_numbers = #tpu.dot_dimension_numbers<[1], [0], [0], [1], [0, 0, 1, 1], [], []>} : vector<36x80xf32>, vector<80x120xf32>, vector<36x120xf32> -> vector<36x120xf32>
    %c0_4 = arith.constant 0 : index
    %c0_5 = arith.constant 0 : index
    %c0_6 = arith.constant 0 : index
    %4 = vector.load %arg3[%c0_4, %c0_5, %c0_6] : memref<5x120x288xf32, #tpu.memory_space<vmem>>, vector<1x120x288xf32>
    %5 = vector.shape_cast %4 : vector<1x120x288xf32> to vector<120x288xf32>
    %cst_7 = arith.constant dense<0.000000e+00> : vector<36x288xf32>
    %6 = tpu.matmul %3, %5, %cst_7 {dimension_numbers = #tpu.dot_dimension_numbers<[1], [0], [0], [1], [0, 0, 1, 1], [], []>} : vector<36x120xf32>, vector<120x288xf32>, vector<36x288xf32> -> vector<36x288xf32>
    %c1 = arith.constant 1 : index
    %c0_8 = arith.constant 0 : index
    %c0_9 = arith.constant 0 : index
    %7 = vector.load %arg2[%c1, %c0_8, %c0_9] : memref<5x36x80xf32, #tpu.memory_space<vmem>>, vector<1x36x80xf32>
    %8 = vector.shape_cast %7 : vector<1x36x80xf32> to vector<36x80xf32>
    %cst_10 = arith.constant dense<0.000000e+00> : vector<36x120xf32>
    %9 = tpu.matmul %8, %0, %cst_10 {dimension_numbers = #tpu.dot_dimension_numbers<[1], [0], [0], [1], [0, 0, 1, 1], [], []>} : vector<36x80xf32>, vector<80x120xf32>, vector<36x120xf32> -> vector<36x120xf32>
    %c1_11 = arith.constant 1 : index
    %c0_12 = arith.constant 0 : index
    %c0_13 = arith.constant 0 : index
    %10 = vector.load %arg3[%c1_11, %c0_12, %c0_13] : memref<5x120x288xf32, #tpu.memory_space<vmem>>, vector<1x120x288xf32>
    %11 = vector.shape_cast %10 : vector<1x120x288xf32> to vector<120x288xf32>
    %cst_14 = arith.constant dense<0.000000e+00> : vector<36x288xf32>
    %12 = tpu.matmul %9, %11, %cst_14 {dimension_numbers = #tpu.dot_dimension_numbers<[1], [0], [0], [1], [0, 0, 1, 1], [], []>} : vector<36x120xf32>, vector<120x288xf32>, vector<36x288xf32> -> vector<36x288xf32>
    %13 = arith.addf %6, %12 : vector<36x288xf32>
    %c2 = arith.constant 2 : index
    %c0_15 = arith.constant 0 : index
    %c0_16 = arith.constant 0 : index
    %14 = vector.load %arg2[%c2, %c0_15, %c0_16] : memref<5x36x80xf32, #tpu.memory_space<vmem>>, vector<1x36x80xf32>
    %15 = vector.shape_cast %14 : vector<1x36x80xf32> to vector<36x80xf32>
    %cst_17 = arith.constant dense<0.000000e+00> : vector<36x120xf32>
    %16 = tpu.matmul %15, %0, %cst_17 {dimension_numbers = #tpu.dot_dimension_numbers<[1], [0], [0], [1], [0, 0, 1, 1], [], []>} : vector<36x80xf32>, vector<80x120xf32>, vector<36x120xf32> -> vector<36x120xf32>
    %c2_18 = arith.constant 2 : index
    %c0_19 = arith.constant 0 : index
    %c0_20 = arith.constant 0 : index
    %17 = vector.load %arg3[%c2_18, %c0_19, %c0_20] : memref<5x120x288xf32, #tpu.memory_space<vmem>>, vector<1x120x288xf32>
    %18 = vector.shape_cast %17 : vector<1x120x288xf32> to vector<120x288xf32>
    %cst_21 = arith.constant dense<0.000000e+00> : vector<36x288xf32>
    %19 = tpu.matmul %16, %18, %cst_21 {dimension_numbers = #tpu.dot_dimension_numbers<[1], [0], [0], [1], [0, 0, 1, 1], [], []>} : vector<36x120xf32>, vector<120x288xf32>, vector<36x288xf32> -> vector<36x288xf32>
    %20 = arith.addf %13, %19 : vector<36x288xf32>
    %c3 = arith.constant 3 : index
    %c0_22 = arith.constant 0 : index
    %c0_23 = arith.constant 0 : index
    %21 = vector.load %arg2[%c3, %c0_22, %c0_23] : memref<5x36x80xf32, #tpu.memory_space<vmem>>, vector<1x36x80xf32>
    %22 = vector.shape_cast %21 : vector<1x36x80xf32> to vector<36x80xf32>
    %cst_24 = arith.constant dense<0.000000e+00> : vector<36x120xf32>
    %23 = tpu.matmul %22, %0, %cst_24 {dimension_numbers = #tpu.dot_dimension_numbers<[1], [0], [0], [1], [0, 0, 1, 1], [], []>} : vector<36x80xf32>, vector<80x120xf32>, vector<36x120xf32> -> vector<36x120xf32>
    %c3_25 = arith.constant 3 : index
    %c0_26 = arith.constant 0 : index
    %c0_27 = arith.constant 0 : index
    %24 = vector.load %arg3[%c3_25, %c0_26, %c0_27] : memref<5x120x288xf32, #tpu.memory_space<vmem>>, vector<1x120x288xf32>
    %25 = vector.shape_cast %24 : vector<1x120x288xf32> to vector<120x288xf32>
    %cst_28 = arith.constant dense<0.000000e+00> : vector<36x288xf32>
    %26 = tpu.matmul %23, %25, %cst_28 {dimension_numbers = #tpu.dot_dimension_numbers<[1], [0], [0], [1], [0, 0, 1, 1], [], []>} : vector<36x120xf32>, vector<120x288xf32>, vector<36x288xf32> -> vector<36x288xf32>
    %27 = arith.addf %20, %26 : vector<36x288xf32>
    %c4 = arith.constant 4 : index
    %c0_29 = arith.constant 0 : index
    %c0_30 = arith.constant 0 : index
    %28 = vector.load %arg2[%c4, %c0_29, %c0_30] : memref<5x36x80xf32, #tpu.memory_space<vmem>>, vector<1x36x80xf32>
    %29 = vector.shape_cast %28 : vector<1x36x80xf32> to vector<36x80xf32>
    %cst_31 = arith.constant dense<0.000000e+00> : vector<36x120xf32>
    %30 = tpu.matmul %29, %0, %cst_31 {dimension_numbers = #tpu.dot_dimension_numbers<[1], [0], [0], [1], [0, 0, 1, 1], [], []>} : vector<36x80xf32>, vector<80x120xf32>, vector<36x120xf32> -> vector<36x120xf32>
    %c4_32 = arith.constant 4 : index
    %c0_33 = arith.constant 0 : index
    %c0_34 = arith.constant 0 : index
    %31 = vector.load %arg3[%c4_32, %c0_33, %c0_34] : memref<5x120x288xf32, #tpu.memory_space<vmem>>, vector<1x120x288xf32>
    %32 = vector.shape_cast %31 : vector<1x120x288xf32> to vector<120x288xf32>
    %cst_35 = arith.constant dense<0.000000e+00> : vector<36x288xf32>
    %33 = tpu.matmul %30, %32, %cst_35 {dimension_numbers = #tpu.dot_dimension_numbers<[1], [0], [0], [1], [0, 0, 1, 1], [], []>} : vector<36x120xf32>, vector<120x288xf32>, vector<36x288xf32> -> vector<36x288xf32>
    %34 = arith.addf %27, %33 : vector<36x288xf32>
    %c0_36 = arith.constant 0 : index
    %c0_37 = arith.constant 0 : index
    %35 = vector.load %arg4[%c0_36, %c0_37] : memref<1x288xf32, #tpu.memory_space<vmem>>, vector<1x288xf32>
    %36 = vector.broadcast %35 : vector<1x288xf32> to vector<36x288xf32>
    %37 = arith.addf %34, %36 : vector<36x288xf32>
    %cst_38 = arith.constant 0.000000e+00 : f32
    %38 = vector.broadcast %cst_38 : f32 to vector<36x288xf32>
    %39 = arith.maximumf %37, %38 : vector<36x288xf32>
    %c0_39 = arith.constant 0 : index
    %c0_40 = arith.constant 0 : index
    %c0_41 = arith.constant 0 : index
    %40 = vector.load %arg5[%c0_39, %c0_40, %c0_41] : memref<5x14x36xf32, #tpu.memory_space<vmem>>, vector<1x14x36xf32>
    %41 = vector.shape_cast %40 : vector<1x14x36xf32> to vector<14x36xf32>
    %cst_42 = arith.constant dense<0.000000e+00> : vector<14x288xf32>
    %42 = tpu.matmul %41, %39, %cst_42 {dimension_numbers = #tpu.dot_dimension_numbers<[1], [0], [0], [1], [0, 0, 1, 1], [], []>} : vector<14x36xf32>, vector<36x288xf32>, vector<14x288xf32> -> vector<14x288xf32>
    %c0_43 = arith.constant 0 : index
    %c0_44 = arith.constant 0 : index
    %c0_45 = arith.constant 0 : index
    %43 = vector.load %arg6[%c0_43, %c0_44, %c0_45] : memref<5x288x224xf32, #tpu.memory_space<vmem>>, vector<1x288x224xf32>
    %44 = vector.shape_cast %43 : vector<1x288x224xf32> to vector<288x224xf32>
    %cst_46 = arith.constant dense<0.000000e+00> : vector<14x224xf32>
    %45 = tpu.matmul %42, %44, %cst_46 {dimension_numbers = #tpu.dot_dimension_numbers<[1], [0], [0], [1], [0, 0, 1, 1], [], []>} : vector<14x288xf32>, vector<288x224xf32>, vector<14x224xf32> -> vector<14x224xf32>
    %c1_47 = arith.constant 1 : index
    %c0_48 = arith.constant 0 : index
    %c0_49 = arith.constant 0 : index
    %46 = vector.load %arg5[%c1_47, %c0_48, %c0_49] : memref<5x14x36xf32, #tpu.memory_space<vmem>>, vector<1x14x36xf32>
    %47 = vector.shape_cast %46 : vector<1x14x36xf32> to vector<14x36xf32>
    %cst_50 = arith.constant dense<0.000000e+00> : vector<14x288xf32>
    %48 = tpu.matmul %47, %39, %cst_50 {dimension_numbers = #tpu.dot_dimension_numbers<[1], [0], [0], [1], [0, 0, 1, 1], [], []>} : vector<14x36xf32>, vector<36x288xf32>, vector<14x288xf32> -> vector<14x288xf32>
    %c1_51 = arith.constant 1 : index
    %c0_52 = arith.constant 0 : index
    %c0_53 = arith.constant 0 : index
    %49 = vector.load %arg6[%c1_51, %c0_52, %c0_53] : memref<5x288x224xf32, #tpu.memory_space<vmem>>, vector<1x288x224xf32>
    %50 = vector.shape_cast %49 : vector<1x288x224xf32> to vector<288x224xf32>
    %cst_54 = arith.constant dense<0.000000e+00> : vector<14x224xf32>
    %51 = tpu.matmul %48, %50, %cst_54 {dimension_numbers = #tpu.dot_dimension_numbers<[1], [0], [0], [1], [0, 0, 1, 1], [], []>} : vector<14x288xf32>, vector<288x224xf32>, vector<14x224xf32> -> vector<14x224xf32>
    %52 = arith.addf %45, %51 : vector<14x224xf32>
    %c2_55 = arith.constant 2 : index
    %c0_56 = arith.constant 0 : index
    %c0_57 = arith.constant 0 : index
    %53 = vector.load %arg5[%c2_55, %c0_56, %c0_57] : memref<5x14x36xf32, #tpu.memory_space<vmem>>, vector<1x14x36xf32>
    %54 = vector.shape_cast %53 : vector<1x14x36xf32> to vector<14x36xf32>
    %cst_58 = arith.constant dense<0.000000e+00> : vector<14x288xf32>
    %55 = tpu.matmul %54, %39, %cst_58 {dimension_numbers = #tpu.dot_dimension_numbers<[1], [0], [0], [1], [0, 0, 1, 1], [], []>} : vector<14x36xf32>, vector<36x288xf32>, vector<14x288xf32> -> vector<14x288xf32>
    %c2_59 = arith.constant 2 : index
    %c0_60 = arith.constant 0 : index
    %c0_61 = arith.constant 0 : index
    %56 = vector.load %arg6[%c2_59, %c0_60, %c0_61] : memref<5x288x224xf32, #tpu.memory_space<vmem>>, vector<1x288x224xf32>
    %57 = vector.shape_cast %56 : vector<1x288x224xf32> to vector<288x224xf32>
    %cst_62 = arith.constant dense<0.000000e+00> : vector<14x224xf32>
    %58 = tpu.matmul %55, %57, %cst_62 {dimension_numbers = #tpu.dot_dimension_numbers<[1], [0], [0], [1], [0, 0, 1, 1], [], []>} : vector<14x288xf32>, vector<288x224xf32>, vector<14x224xf32> -> vector<14x224xf32>
    %59 = arith.addf %52, %58 : vector<14x224xf32>
    %c3_63 = arith.constant 3 : index
    %c0_64 = arith.constant 0 : index
    %c0_65 = arith.constant 0 : index
    %60 = vector.load %arg5[%c3_63, %c0_64, %c0_65] : memref<5x14x36xf32, #tpu.memory_space<vmem>>, vector<1x14x36xf32>
    %61 = vector.shape_cast %60 : vector<1x14x36xf32> to vector<14x36xf32>
    %cst_66 = arith.constant dense<0.000000e+00> : vector<14x288xf32>
    %62 = tpu.matmul %61, %39, %cst_66 {dimension_numbers = #tpu.dot_dimension_numbers<[1], [0], [0], [1], [0, 0, 1, 1], [], []>} : vector<14x36xf32>, vector<36x288xf32>, vector<14x288xf32> -> vector<14x288xf32>
    %c3_67 = arith.constant 3 : index
    %c0_68 = arith.constant 0 : index
    %c0_69 = arith.constant 0 : index
    %63 = vector.load %arg6[%c3_67, %c0_68, %c0_69] : memref<5x288x224xf32, #tpu.memory_space<vmem>>, vector<1x288x224xf32>
    %64 = vector.shape_cast %63 : vector<1x288x224xf32> to vector<288x224xf32>
    %cst_70 = arith.constant dense<0.000000e+00> : vector<14x224xf32>
    %65 = tpu.matmul %62, %64, %cst_70 {dimension_numbers = #tpu.dot_dimension_numbers<[1], [0], [0], [1], [0, 0, 1, 1], [], []>} : vector<14x288xf32>, vector<288x224xf32>, vector<14x224xf32> -> vector<14x224xf32>
    %66 = arith.addf %59, %65 : vector<14x224xf32>
    %c4_71 = arith.constant 4 : index
    %c0_72 = arith.constant 0 : index
    %c0_73 = arith.constant 0 : index
    %67 = vector.load %arg5[%c4_71, %c0_72, %c0_73] : memref<5x14x36xf32, #tpu.memory_space<vmem>>, vector<1x14x36xf32>
    %68 = vector.shape_cast %67 : vector<1x14x36xf32> to vector<14x36xf32>
    %cst_74 = arith.constant dense<0.000000e+00> : vector<14x288xf32>
    %69 = tpu.matmul %68, %39, %cst_74 {dimension_numbers = #tpu.dot_dimension_numbers<[1], [0], [0], [1], [0, 0, 1, 1], [], []>} : vector<14x36xf32>, vector<36x288xf32>, vector<14x288xf32> -> vector<14x288xf32>
    %c4_75 = arith.constant 4 : index
    %c0_76 = arith.constant 0 : index
    %c0_77 = arith.constant 0 : index
    %70 = vector.load %arg6[%c4_75, %c0_76, %c0_77] : memref<5x288x224xf32, #tpu.memory_space<vmem>>, vector<1x288x224xf32>
    %71 = vector.shape_cast %70 : vector<1x288x224xf32> to vector<288x224xf32>
    %cst_78 = arith.constant dense<0.000000e+00> : vector<14x224xf32>
    %72 = tpu.matmul %69, %71, %cst_78 {dimension_numbers = #tpu.dot_dimension_numbers<[1], [0], [0], [1], [0, 0, 1, 1], [], []>} : vector<14x288xf32>, vector<288x224xf32>, vector<14x224xf32> -> vector<14x224xf32>
    %73 = arith.addf %66, %72 : vector<14x224xf32>
    %c0_79 = arith.constant 0 : index
    %c0_80 = arith.constant 0 : index
    %74 = vector.load %arg7[%c0_79, %c0_80] : memref<1x224xf32, #tpu.memory_space<vmem>>, vector<1x224xf32>
    %75 = vector.broadcast %74 : vector<1x224xf32> to vector<14x224xf32>
    %76 = arith.addf %73, %75 : vector<14x224xf32>
    %cst_81 = arith.constant 0.000000e+00 : f32
    %77 = vector.broadcast %cst_81 : f32 to vector<14x224xf32>
    %78 = arith.maximumf %76, %77 : vector<14x224xf32>
    %c0_82 = arith.constant 0 : index
    %c0_83 = arith.constant 0 : index
    %c0_84 = arith.constant 0 : index
    %79 = vector.load %arg8[%c0_82, %c0_83, %c0_84] : memref<5x4x14xf32, #tpu.memory_space<vmem>>, vector<1x4x14xf32>
    %80 = vector.shape_cast %79 : vector<1x4x14xf32> to vector<4x14xf32>
    %cst_85 = arith.constant dense<0.000000e+00> : vector<4x224xf32>
    %81 = tpu.matmul %80, %78, %cst_85 {dimension_numbers = #tpu.dot_dimension_numbers<[1], [0], [0], [1], [0, 0, 1, 1], [], []>} : vector<4x14xf32>, vector<14x224xf32>, vector<4x224xf32> -> vector<4x224xf32>
    %c0_86 = arith.constant 0 : index
    %c0_87 = arith.constant 0 : index
    %c0_88 = arith.constant 0 : index
    %82 = vector.load %arg9[%c0_86, %c0_87, %c0_88] : memref<5x224x64xf32, #tpu.memory_space<vmem>>, vector<1x224x64xf32>
    %83 = vector.shape_cast %82 : vector<1x224x64xf32> to vector<224x64xf32>
    %cst_89 = arith.constant dense<0.000000e+00> : vector<4x64xf32>
    %84 = tpu.matmul %81, %83, %cst_89 {dimension_numbers = #tpu.dot_dimension_numbers<[1], [0], [0], [1], [0, 0, 1, 1], [], []>} : vector<4x224xf32>, vector<224x64xf32>, vector<4x64xf32> -> vector<4x64xf32>
    %c1_90 = arith.constant 1 : index
    %c0_91 = arith.constant 0 : index
    %c0_92 = arith.constant 0 : index
    %85 = vector.load %arg8[%c1_90, %c0_91, %c0_92] : memref<5x4x14xf32, #tpu.memory_space<vmem>>, vector<1x4x14xf32>
    %86 = vector.shape_cast %85 : vector<1x4x14xf32> to vector<4x14xf32>
    %cst_93 = arith.constant dense<0.000000e+00> : vector<4x224xf32>
    %87 = tpu.matmul %86, %78, %cst_93 {dimension_numbers = #tpu.dot_dimension_numbers<[1], [0], [0], [1], [0, 0, 1, 1], [], []>} : vector<4x14xf32>, vector<14x224xf32>, vector<4x224xf32> -> vector<4x224xf32>
    %c1_94 = arith.constant 1 : index
    %c0_95 = arith.constant 0 : index
    %c0_96 = arith.constant 0 : index
    %88 = vector.load %arg9[%c1_94, %c0_95, %c0_96] : memref<5x224x64xf32, #tpu.memory_space<vmem>>, vector<1x224x64xf32>
    %89 = vector.shape_cast %88 : vector<1x224x64xf32> to vector<224x64xf32>
    %cst_97 = arith.constant dense<0.000000e+00> : vector<4x64xf32>
    %90 = tpu.matmul %87, %89, %cst_97 {dimension_numbers = #tpu.dot_dimension_numbers<[1], [0], [0], [1], [0, 0, 1, 1], [], []>} : vector<4x224xf32>, vector<224x64xf32>, vector<4x64xf32> -> vector<4x64xf32>
    %91 = arith.addf %84, %90 : vector<4x64xf32>
    %c2_98 = arith.constant 2 : index
    %c0_99 = arith.constant 0 : index
    %c0_100 = arith.constant 0 : index
    %92 = vector.load %arg8[%c2_98, %c0_99, %c0_100] : memref<5x4x14xf32, #tpu.memory_space<vmem>>, vector<1x4x14xf32>
    %93 = vector.shape_cast %92 : vector<1x4x14xf32> to vector<4x14xf32>
    %cst_101 = arith.constant dense<0.000000e+00> : vector<4x224xf32>
    %94 = tpu.matmul %93, %78, %cst_101 {dimension_numbers = #tpu.dot_dimension_numbers<[1], [0], [0], [1], [0, 0, 1, 1], [], []>} : vector<4x14xf32>, vector<14x224xf32>, vector<4x224xf32> -> vector<4x224xf32>
    %c2_102 = arith.constant 2 : index
    %c0_103 = arith.constant 0 : index
    %c0_104 = arith.constant 0 : index
    %95 = vector.load %arg9[%c2_102, %c0_103, %c0_104] : memref<5x224x64xf32, #tpu.memory_space<vmem>>, vector<1x224x64xf32>
    %96 = vector.shape_cast %95 : vector<1x224x64xf32> to vector<224x64xf32>
    %cst_105 = arith.constant dense<0.000000e+00> : vector<4x64xf32>
    %97 = tpu.matmul %94, %96, %cst_105 {dimension_numbers = #tpu.dot_dimension_numbers<[1], [0], [0], [1], [0, 0, 1, 1], [], []>} : vector<4x224xf32>, vector<224x64xf32>, vector<4x64xf32> -> vector<4x64xf32>
    %98 = arith.addf %91, %97 : vector<4x64xf32>
    %c3_106 = arith.constant 3 : index
    %c0_107 = arith.constant 0 : index
    %c0_108 = arith.constant 0 : index
    %99 = vector.load %arg8[%c3_106, %c0_107, %c0_108] : memref<5x4x14xf32, #tpu.memory_space<vmem>>, vector<1x4x14xf32>
    %100 = vector.shape_cast %99 : vector<1x4x14xf32> to vector<4x14xf32>
    %cst_109 = arith.constant dense<0.000000e+00> : vector<4x224xf32>
    %101 = tpu.matmul %100, %78, %cst_109 {dimension_numbers = #tpu.dot_dimension_numbers<[1], [0], [0], [1], [0, 0, 1, 1], [], []>} : vector<4x14xf32>, vector<14x224xf32>, vector<4x224xf32> -> vector<4x224xf32>
    %c3_110 = arith.constant 3 : index
    %c0_111 = arith.constant 0 : index
    %c0_112 = arith.constant 0 : index
    %102 = vector.load %arg9[%c3_110, %c0_111, %c0_112] : memref<5x224x64xf32, #tpu.memory_space<vmem>>, vector<1x224x64xf32>
    %103 = vector.shape_cast %102 : vector<1x224x64xf32> to vector<224x64xf32>
    %cst_113 = arith.constant dense<0.000000e+00> : vector<4x64xf32>
    %104 = tpu.matmul %101, %103, %cst_113 {dimension_numbers = #tpu.dot_dimension_numbers<[1], [0], [0], [1], [0, 0, 1, 1], [], []>} : vector<4x224xf32>, vector<224x64xf32>, vector<4x64xf32> -> vector<4x64xf32>
    %105 = arith.addf %98, %104 : vector<4x64xf32>
    %c4_114 = arith.constant 4 : index
    %c0_115 = arith.constant 0 : index
    %c0_116 = arith.constant 0 : index
    %106 = vector.load %arg8[%c4_114, %c0_115, %c0_116] : memref<5x4x14xf32, #tpu.memory_space<vmem>>, vector<1x4x14xf32>
    %107 = vector.shape_cast %106 : vector<1x4x14xf32> to vector<4x14xf32>
    %cst_117 = arith.constant dense<0.000000e+00> : vector<4x224xf32>
    %108 = tpu.matmul %107, %78, %cst_117 {dimension_numbers = #tpu.dot_dimension_numbers<[1], [0], [0], [1], [0, 0, 1, 1], [], []>} : vector<4x14xf32>, vector<14x224xf32>, vector<4x224xf32> -> vector<4x224xf32>
    %c4_118 = arith.constant 4 : index
    %c0_119 = arith.constant 0 : index
    %c0_120 = arith.constant 0 : index
    %109 = vector.load %arg9[%c4_118, %c0_119, %c0_120] : memref<5x224x64xf32, #tpu.memory_space<vmem>>, vector<1x224x64xf32>
    %110 = vector.shape_cast %109 : vector<1x224x64xf32> to vector<224x64xf32>
    %cst_121 = arith.constant dense<0.000000e+00> : vector<4x64xf32>
    %111 = tpu.matmul %108, %110, %cst_121 {dimension_numbers = #tpu.dot_dimension_numbers<[1], [0], [0], [1], [0, 0, 1, 1], [], []>} : vector<4x224xf32>, vector<224x64xf32>, vector<4x64xf32> -> vector<4x64xf32>
    %112 = arith.addf %105, %111 : vector<4x64xf32>
    %c0_122 = arith.constant 0 : index
    %c0_123 = arith.constant 0 : index
    %113 = vector.load %arg10[%c0_122, %c0_123] : memref<1x64xf32, #tpu.memory_space<vmem>>, vector<1x64xf32>
    %114 = vector.broadcast %113 : vector<1x64xf32> to vector<4x64xf32>
    %115 = arith.addf %112, %114 : vector<4x64xf32>
    %cst_124 = arith.constant 0.000000e+00 : f32
    %116 = vector.broadcast %cst_124 : f32 to vector<4x64xf32>
    %117 = arith.maximumf %115, %116 : vector<4x64xf32>
    %c0_125 = arith.constant 0 : index
    %c0_126 = arith.constant 0 : index
    %c0_127 = arith.constant 0 : index
    %118 = vector.load %arg11[%c0_125, %c0_126, %c0_127] : memref<2x2x4xf32, #tpu.memory_space<vmem>>, vector<1x2x4xf32>
    %119 = vector.shape_cast %118 : vector<1x2x4xf32> to vector<2x4xf32>
    %cst_128 = arith.constant dense<0.000000e+00> : vector<2x64xf32>
    %120 = tpu.matmul %119, %117, %cst_128 {dimension_numbers = #tpu.dot_dimension_numbers<[1], [0], [0], [1], [0, 0, 1, 1], [], []>} : vector<2x4xf32>, vector<4x64xf32>, vector<2x64xf32> -> vector<2x64xf32>
    %c0_129 = arith.constant 0 : index
    %c0_130 = arith.constant 0 : index
    %c0_131 = arith.constant 0 : index
    %121 = vector.load %arg12[%c0_129, %c0_130, %c0_131] : memref<2x64x4xf32, #tpu.memory_space<vmem>>, vector<1x64x4xf32>
    %122 = vector.shape_cast %121 : vector<1x64x4xf32> to vector<64x4xf32>
    %cst_132 = arith.constant dense<0.000000e+00> : vector<2x4xf32>
    %123 = tpu.matmul %120, %122, %cst_132 {dimension_numbers = #tpu.dot_dimension_numbers<[1], [0], [0], [1], [0, 0, 1, 1], [], []>} : vector<2x64xf32>, vector<64x4xf32>, vector<2x4xf32> -> vector<2x4xf32>
    %c1_133 = arith.constant 1 : index
    %c0_134 = arith.constant 0 : index
    %c0_135 = arith.constant 0 : index
    %124 = vector.load %arg11[%c1_133, %c0_134, %c0_135] : memref<2x2x4xf32, #tpu.memory_space<vmem>>, vector<1x2x4xf32>
    %125 = vector.shape_cast %124 : vector<1x2x4xf32> to vector<2x4xf32>
    %cst_136 = arith.constant dense<0.000000e+00> : vector<2x64xf32>
    %126 = tpu.matmul %125, %117, %cst_136 {dimension_numbers = #tpu.dot_dimension_numbers<[1], [0], [0], [1], [0, 0, 1, 1], [], []>} : vector<2x4xf32>, vector<4x64xf32>, vector<2x64xf32> -> vector<2x64xf32>
    %c1_137 = arith.constant 1 : index
    %c0_138 = arith.constant 0 : index
    %c0_139 = arith.constant 0 : index
    %127 = vector.load %arg12[%c1_137, %c0_138, %c0_139] : memref<2x64x4xf32, #tpu.memory_space<vmem>>, vector<1x64x4xf32>
    %128 = vector.shape_cast %127 : vector<1x64x4xf32> to vector<64x4xf32>
    %cst_140 = arith.constant dense<0.000000e+00> : vector<2x4xf32>
    %129 = tpu.matmul %126, %128, %cst_140 {dimension_numbers = #tpu.dot_dimension_numbers<[1], [0], [0], [1], [0, 0, 1, 1], [], []>} : vector<2x64xf32>, vector<64x4xf32>, vector<2x4xf32> -> vector<2x4xf32>
    %130 = arith.addf %123, %129 : vector<2x4xf32>
    %c0_141 = arith.constant 0 : index
    %c0_142 = arith.constant 0 : index
    %131 = vector.load %arg13[%c0_141, %c0_142] : memref<1x4xf32, #tpu.memory_space<vmem>>, vector<1x4xf32>
    %132 = vector.broadcast %131 : vector<1x4xf32> to vector<2x4xf32>
    %133 = arith.addf %130, %132 : vector<2x4xf32>
    %c0_143 = arith.constant 0 : index
    %c0_144 = arith.constant 0 : index
    %134 = vector.load %arg14[%c0_143, %c0_144] : memref<2x4xf32, #tpu.memory_space<vmem>>, vector<2x4xf32>
    tpu.vector_store %arg14[%c0_143, %c0_144], %133 {strides = array<i32>} : memref<2x4xf32, #tpu.memory_space<vmem>>, vector<2x4xf32>,
    return
  }
  func.func @transform_0(%arg0: i32) -> (i32, i32) {
    %c0_i32 = arith.constant 0 : i32
    %c0_i32_0 = arith.constant 0 : i32
    %c0_i32_1 = arith.constant 0 : i32
    return %c0_i32, %c0_i32_0 : i32, i32
  }
  func.func @transform_1(%arg0: i32) -> (i32, i32, i32) {
    %c0_i32 = arith.constant 0 : i32
    %c0_i32_0 = arith.constant 0 : i32
    %c0_i32_1 = arith.constant 0 : i32
    %c0_i32_2 = arith.constant 0 : i32
    return %c0_i32, %c0_i32_0, %c0_i32_1 : i32, i32, i32
  }
  func.func @transform_2(%arg0: i32) -> (i32, i32, i32) {
    %c0_i32 = arith.constant 0 : i32
    %c0_i32_0 = arith.constant 0 : i32
    %c0_i32_1 = arith.constant 0 : i32
    %c0_i32_2 = arith.constant 0 : i32
    return %c0_i32, %c0_i32_0, %c0_i32_1 : i32, i32, i32
  }
  func.func @transform_3(%arg0: i32) -> (i32, i32) {
    %c0_i32 = arith.constant 0 : i32
    %c0_i32_0 = arith.constant 0 : i32
    %c0_i32_1 = arith.constant 0 : i32
    return %c0_i32, %c0_i32_0 : i32, i32
  }
  func.func @transform_4(%arg0: i32) -> (i32, i32, i32) {
    %c0_i32 = arith.constant 0 : i32
    %c0_i32_0 = arith.constant 0 : i32
    %c0_i32_1 = arith.constant 0 : i32
    %c0_i32_2 = arith.constant 0 : i32
    return %c0_i32, %c0_i32_0, %c0_i32_1 : i32, i32, i32
  }
  func.func @transform_5(%arg0: i32) -> (i32, i32, i32) {
    %c0_i32 = arith.constant 0 : i32
    %c0_i32_0 = arith.constant 0 : i32
    %c0_i32_1 = arith.constant 0 : i32
    %c0_i32_2 = arith.constant 0 : i32
    return %c0_i32, %c0_i32_0, %c0_i32_1 : i32, i32, i32
  }
  func.func @transform_6(%arg0: i32) -> (i32, i32) {
    %c0_i32 = arith.constant 0 : i32
    %c0_i32_0 = arith.constant 0 : i32
    %c0_i32_1 = arith.constant 0 : i32
    return %c0_i32, %c0_i32_0 : i32, i32
  }
  func.func @transform_7(%arg0: i32) -> (i32, i32, i32) {
    %c0_i32 = arith.constant 0 : i32
    %c0_i32_0 = arith.constant 0 : i32
    %c0_i32_1 = arith.constant 0 : i32
    %c0_i32_2 = arith.constant 0 : i32
    return %c0_i32, %c0_i32_0, %c0_i32_1 : i32, i32, i32
  }
  func.func @transform_8(%arg0: i32) -> (i32, i32, i32) {
    %c0_i32 = arith.constant 0 : i32
    %c0_i32_0 = arith.constant 0 : i32
    %c0_i32_1 = arith.constant 0 : i32
    %c0_i32_2 = arith.constant 0 : i32
    return %c0_i32, %c0_i32_0, %c0_i32_1 : i32, i32, i32
  }
  func.func @transform_9(%arg0: i32) -> (i32, i32) {
    %c0_i32 = arith.constant 0 : i32
    %c0_i32_0 = arith.constant 0 : i32
    %c0_i32_1 = arith.constant 0 : i32
    return %c0_i32, %c0_i32_0 : i32, i32
  }
  func.func @transform_10(%arg0: i32) -> (i32, i32, i32) {
    %c0_i32 = arith.constant 0 : i32
    %c0_i32_0 = arith.constant 0 : i32
    %c0_i32_1 = arith.constant 0 : i32
    %c0_i32_2 = arith.constant 0 : i32
    return %c0_i32, %c0_i32_0, %c0_i32_1 : i32, i32, i32
  }
  func.func @transform_11(%arg0: i32) -> (i32, i32, i32) {
    %c0_i32 = arith.constant 0 : i32
    %c0_i32_0 = arith.constant 0 : i32
    %c0_i32_1 = arith.constant 0 : i32
    %c0_i32_2 = arith.constant 0 : i32
    return %c0_i32, %c0_i32_0, %c0_i32_1 : i32, i32, i32
  }
  func.func @transform_12(%arg0: i32) -> (i32, i32) {
    %c0_i32 = arith.constant 0 : i32
    %c0_i32_0 = arith.constant 0 : i32
    %c0_i32_1 = arith.constant 0 : i32
    return %c0_i32, %c0_i32_0 : i32, i32
  }
  func.func @transform_13(%arg0: i32) -> (i32, i32) {
    %c0_i32 = arith.constant 0 : i32
    %c0_i32_0 = arith.constant 0 : i32
    %c0_i32_1 = arith.constant 0 : i32
    return %c0_i32, %c0_i32_0 : i32, i32
  }
}

</mosaic_0001>

<bundles_post_ra>
// kernel: dqn_forward.1
= control target key start
LH: loop header
LB: loop body
LE: loop exit
PB: predicated region body
PF: predicated region fallthrough
CT: control target
= control target key end

     0   :  { %s7383_s0 = inlined_call_operand.vmem [shape: f32[80,120], index: 0, kind: input, shape index: {}]   ;;  %s7384_s1 = inlined_call_operand.vmem [shape: f32[5,36,80], index: 1, kind: input, shape index: {}]   ;;  %s7385_s2 = inlined_call_operand.vmem [shape: f32[5,120,288], index: 2, kind: input, shape index: {}]   ;;  %s7386_s3 = inlined_call_operand.vmem [shape: f32[1,288], index: 3, kind: input, shape index: {}]   ;;  %s7387_s4 = inlined_call_operand.vmem [shape: f32[5,14,36], index: 4, kind: input, shape index: {}]   ;;  %s7388_s5 = inlined_call_operand.vmem [shape: f32[5,288,224], index: 5, kind: input, shape index: {}]   ;;  %s7389_s6 = inlined_call_operand.vmem [shape: f32[1,224], index: 6, kind: input, shape index: {}]   ;;  %s7390_s7 = inlined_call_operand.vmem [shape: f32[5,4,14], index: 7, kind: input, shape index: {}]   ;;  %s7391_s8 = inlined_call_operand.vmem [shape: f32[5,224,64], index: 8, kind: input, shape index: {}]   ;;  %s7392_s9 = inlined_call_operand.vmem [shape: f32[1,64], index: 9, kind: input, shape index: {}]   ;;  %s7393_s10 = inlined_call_operand.vmem [shape: f32[2,2,4], index: 10, kind: input, shape index: {}]   ;;  %s7394_s11 = inlined_call_operand.vmem [shape: f32[2,64,4], index: 11, kind: input, shape index: {}]   ;;  %s7395_s12 = inlined_call_operand.vmem [shape: f32[1,4], index: 12, kind: input, shape index: {}]   ;;  %s7396_s13 = inlined_call_operand.hbm [shape: f32[2,4], index: 13, kind: output, shape index: {}]  }
   0x1   :  { %v4360_v0 = vld [vmem:[%s7383_s0 + $0x48] sm:$0xff]  ;;  %v4365_v1 = vld [vmem:[%s7383_s0 + $0x40] sm:$0xff]  ;;  %v4372_v2 = vld [vmem:[%s7383_s0 + $0x38] sm:$0xff] }
   0x2   :  { %180 = vmatpush.msra.mxu1 %v4360_v0  ;;  %82 = vmatpush.msra.mxu0 %v4360_v0  ;;  %v4379_v3 = vld [vmem:[%s7383_s0 + $0x30] sm:$0xff]  ;;  %v4386_v4 = vld [vmem:[%s7383_s0 + $0x28] sm:$0xff] }
   0x4   :  { %181 = vmatpush.msra.mxu1 %v4365_v1  ;;  %83 = vmatpush.msra.mxu0 %v4365_v1 }
   0x6   :  { %182 = vmatpush.msra.mxu1 %v4372_v2  ;;  %84 = vmatpush.msra.mxu0 %v4372_v2 }
   0x7   :  { %18 = vsyncpa [#allocation3], 0  ;;  %v4393_v5 = vld [vmem:[%s7383_s0 + $0x20] sm:$0xff]  ;;  %v4400_v6 = vld [vmem:[%s7383_s0 + $0x18] sm:$0xff]  ;;  %vm60_vm0 = vcmask 654336   ;;  %vm252_vm1 = vcmask 982016  }
   0x8   :  { %183 = vmatpush.msra.mxu1 %v4379_v3  ;;  %85 = vmatpush.msra.mxu0 %v4379_v3  ;;  %v4407_v7 = vld [vmem:[%s7383_s0 + $0x10] sm:$0xff]  ;;  %v4414_v8 = vld [vmem:[%s7383_s0 + $0x8] sm:$0xff]  ;;  %v4421_v9 = vld [vmem:[%s7383_s0] sm:$0xff]  ;;  %vm1197_vm2 = vcmask 1043456   ;;  %vm1190_vm3 = vcmask 293888   ;;  %vm1499_vm4 = vcmask 261120  }
   0x9   :  { %v3445_v10 = vld [vmem:[%s7384_s1 + $0x28] sm:$0xff]  ;;  %v55_v11 = vld [vmem:[%s7384_s1] sm:$0xff]  ;;  %v3497_v12 = vld [vmem:[%s7385_s2 + $0x2b8] sm:$0xff]  ;;  %vm2704_vm5 = vcmask 1045504   ;;  %vm2700_vm6 = vcmask 113664   ;;  %vm2853_vm7 = vcmask 785408  }
   0xa   :  { %184 = vmatpush.msra.mxu1 %v4386_v4  ;;  %86 = vmatpush.msra.mxu0 %v4386_v4  ;;  %v3498_v13 = vld [vmem:[%s7385_s2 + $0x2c0] sm:$0xff]  ;;  %v3499_v14 = vld [vmem:[%s7385_s2 + $0x2c8] sm:$0xff]  ;;  %v3496_v17 = vld [vmem:[%s7385_s2 + $0x2b0] sm:$0xff]  ;;  %vm3301_vm8 = vcmask 31744   ;;  %vm3370_vm9 = vcmask 523264   ;;  %s4286_s23 = smov [#allocation2]  }
   0xb   :  { %269 = vmatpush.msra.mxu2 %v3497_v12  ;;  %301 = vmatpush.msra.mxu3 %v3498_v13  ;;  %v3494_v15 = vld [vmem:[%s7385_s2 + $0x2a0] sm:$0xff]  ;;  %v3495_v16 = vld [vmem:[%s7385_s2 + $0x2a8] sm:$0xff]  ;;  %v3492_v19 = vld [vmem:[%s7385_s2 + $0x290] sm:$0xff]  ;;  %s3431_s25 = sshll.u32 %s7396_s13, 4  ;;  %vm3422_vm10 = vcmask 25600   ;;  %s3432_s25 = int_to_ptr.hbm [resolvable:$true] %s3431_s25 }
   0xc   :  { %185 = vmatpush.msra.mxu1 %v4393_v5  ;;  %87 = vmatpush.msra.mxu0 %v4393_v5  ;;  %v3491_v18 = vld [vmem:[%s7385_s2 + $0x288] sm:$0xff]  ;;  %v3493_v20 = vld [vmem:[%s7385_s2 + $0x298] sm:$0xff]  ;;  %v3488_v21 = vld [vmem:[%s7385_s2 + $0x270] sm:$0xff] }
   0xd   :  { %270 = vmatpush.msra.mxu2 %v3494_v15  ;;  %302 = vmatpush.msra.mxu3 %v3495_v16  ;;  %v3489_v22 = vld [vmem:[%s7385_s2 + $0x278] sm:$0xff]  ;;  %v150_v23 = vld [vmem:[%s7385_s2 + $0x150] sm:$0xff]  ;;  %v56_v25 = vld [vmem:[%s7384_s1 + $0x8] sm:$0xff] }
   0xe   :  { %186 = vmatpush.msra.mxu1 %v4400_v6  ;;  %88 = vmatpush.msra.mxu0 %v4400_v6  ;;  %v3446_v24 = vld [vmem:[%s7384_s1 + $0x30] sm:$0xff]  ;;  %v3490_v26 = vld [vmem:[%s7385_s2 + $0x280] sm:$0xff]  ;;  %v3485_v27 = vld [vmem:[%s7385_s2 + $0x258] sm:$0xff] }
   0xf   :  { %271 = vmatpush.msra.mxu2 %v3491_v18  ;;  %303 = vmatpush.msra.mxu3 %v3492_v19  ;;  %v3486_v28 = vld [vmem:[%s7385_s2 + $0x260] sm:$0xff]  ;;  %v147_v29 = vld [vmem:[%s7385_s2 + $0x138] sm:$0xff]  ;;  %v3487_v30 = vld [vmem:[%s7385_s2 + $0x268] sm:$0xff] }
  0x10   :  { %187 = vmatpush.msra.mxu1 %v4407_v7  ;;  %89 = vmatpush.msra.mxu0 %v4407_v7  ;;  %v3482_v31 = vld [vmem:[%s7385_s2 + $0x240] sm:$0xff]  ;;  %v3483_v32 = vld [vmem:[%s7385_s2 + $0x248] sm:$0xff]  ;;  %v3484_v34 = vld [vmem:[%s7385_s2 + $0x250] sm:$0xff] }
  0x11   :  { %272 = vmatpush.msra.mxu2 %v3488_v21  ;;  %304 = vmatpush.msra.mxu3 %v3489_v22  ;;  %v144_v33 = vld [vmem:[%s7385_s2 + $0x120] sm:$0xff]  ;;  %v3479_v35 = vld [vmem:[%s7385_s2 + $0x228] sm:$0xff]  ;;  %v3480_v36 = vld [vmem:[%s7385_s2 + $0x230] sm:$0xff] }
  0x12   :  { %188 = vmatpush.msra.mxu1 %v4414_v8  ;;  %90 = vmatpush.msra.mxu0 %v4414_v8  ;;  %v141_v37 = vld [vmem:[%s7385_s2 + $0x108] sm:$0xff]  ;;  %v3481_v38 = vld [vmem:[%s7385_s2 + $0x238] sm:$0xff]  ;;  %v3476_v39 = vld [vmem:[%s7385_s2 + $0x210] sm:$0xff] }
  0x13   :  { %273 = vmatpush.msra.mxu2 %v3485_v27  ;;  %305 = vmatpush.msra.mxu3 %v3486_v28  ;;  %v3447_v40 = vld [vmem:[%s7384_s1 + $0x38] sm:$0xff]  ;;  %v57_v41 = vld [vmem:[%s7384_s1 + $0x10] sm:$0xff]  ;;  %v3478_v43 = vld [vmem:[%s7385_s2 + $0x220] sm:$0xff] }
  0x14   :  { %189 = vmatpush.msra.mxu1 %v4421_v9  ;;  %91 = vmatpush.msra.mxu0 %v4421_v9  ;;  %v3477_v42 = vld [vmem:[%s7385_s2 + $0x218] sm:$0xff]  ;;  %v138_v44 = vld [vmem:[%s7385_s2 + $0xf0] sm:$0xff]  ;;  %v3474_v46 = vld [vmem:[%s7385_s2 + $0x200] sm:$0xff] }
  0x15   :  { %3450 = vmatmul.msk.f32.vlgmr.msra.gmra.mxu1 %vm60_vm0, %v3445_v10  ;;  %3440 = vmatmul.msk.f32.vlgmr.msra.gmra.mxu0 %vm60_vm0, %v55_v11  ;;  %v3473_v45 = vld [vmem:[%s7385_s2 + $0x1f8] sm:$0xff]  ;;  %v3475_v47 = vld [vmem:[%s7385_s2 + $0x208] sm:$0xff]  ;;  %v3470_v49 = vld [vmem:[%s7385_s2 + $0x1e0] sm:$0xff] }
  0x16   :  { %333 = vmatpush.msrb.mxu0 %v3499_v14  ;;  %380 = vmatpush.msrb.mxu1 %v150_v23  ;;  %v135_v48 = vld [vmem:[%s7385_s2 + $0xd8] sm:$0xff]  ;;  %v3471_v50 = vld [vmem:[%s7385_s2 + $0x1e8] sm:$0xff]  ;;  %v3472_v51 = vld [vmem:[%s7385_s2 + $0x1f0] sm:$0xff] }
  0x17   :  { %274 = vmatpush.msra.mxu2 %v3482_v31  ;;  %306 = vmatpush.msra.mxu3 %v3483_v32  ;;  %v132_v52 = vld [vmem:[%s7385_s2 + $0xc0] sm:$0xff]  ;;  %v3467_v53 = vld [vmem:[%s7385_s2 + $0x1c8] sm:$0xff]  ;;  %v3468_v54 = vld [vmem:[%s7385_s2 + $0x1d0] sm:$0xff] }
  0x18   :  { %334 = vmatpush.msrb.mxu0 %v3496_v17  ;;  %381 = vmatpush.msrb.mxu1 %v147_v29  ;;  %v3469_v55 = vld [vmem:[%s7385_s2 + $0x1d8] sm:$0xff]  ;;  %v3448_v56 = vld [vmem:[%s7384_s1 + $0x40] sm:$0xff]  ;;  %v129_v58 = vld [vmem:[%s7385_s2 + $0xa8] sm:$0xff] }
  0x19   :  { %275 = vmatpush.msra.mxu2 %v3479_v35  ;;  %307 = vmatpush.msra.mxu3 %v3480_v36  ;;  %v58_v57 = vld [vmem:[%s7384_s1 + $0x18] sm:$0xff]  ;;  %v3464_v59 = vld [vmem:[%s7385_s2 + $0x1b0] sm:$0xff]  ;;  %v3466_v61 = vld [vmem:[%s7385_s2 + $0x1c0] sm:$0xff] }
  0x1a   :  { %335 = vmatpush.msrb.mxu0 %v3493_v20  ;;  %382 = vmatpush.msrb.mxu1 %v144_v33  ;;  %v3465_v60 = vld [vmem:[%s7385_s2 + $0x1b8] sm:$0xff]  ;;  %v126_v62 = vld [vmem:[%s7385_s2 + $0x90] sm:$0xff]  ;;  %v3462_v10 = vld [vmem:[%s7385_s2 + $0x1a0] sm:$0xff] }
  0x1b   :  { %276 = vmatpush.msra.mxu2 %v3476_v39  ;;  %308 = vmatpush.msra.mxu3 %v3477_v42  ;;  %v3461_v63 = vld [vmem:[%s7385_s2 + $0x198] sm:$0xff]  ;;  %v3463_v11 = vld [vmem:[%s7385_s2 + $0x1a8] sm:$0xff]  ;;  %v3458_v13 = vld [vmem:[%s7385_s2 + $0x180] sm:$0xff] }
  0x1c   :  { %336 = vmatpush.msrb.mxu0 %v3490_v26  ;;  %383 = vmatpush.msrb.mxu1 %v141_v37  ;;  %v123_v12 = vld [vmem:[%s7385_s2 + $0x78] sm:$0xff]  ;;  %v3459_v14 = vld [vmem:[%s7385_s2 + $0x188] sm:$0xff]  ;;  %v3460_v15 = vld [vmem:[%s7385_s2 + $0x190] sm:$0xff] }
  0x1d   :  { %3451 = vmatmul.msk.f32.gmra.mxu1 %vm60_vm0, %v3446_v24  ;;  %3441 = vmatmul.msk.f32.gmra.mxu0 %vm60_vm0, %v56_v25  ;;  %v120_v16 = vld [vmem:[%s7385_s2 + $0x60] sm:$0xff]  ;;  %v3449_v17 = vld [vmem:[%s7384_s1 + $0x48] sm:$0xf]  ;;  %v3456_v20 = vld [vmem:[%s7385_s2 + $0x170] sm:$0xff] }
  0x1e   :  { %337 = vmatpush.msrb.mxu0 %v3487_v30  ;;  %384 = vmatpush.msrb.mxu1 %v138_v44  ;;  %v59_v18 = vld [vmem:[%s7384_s1 + $0x20] sm:$0xf]  ;;  %v3455_v19 = vld [vmem:[%s7385_s2 + $0x168] sm:$0xff]  ;;  %v3457_v21 = vld [vmem:[%s7385_s2 + $0x178] sm:$0xff] }
  0x1f   :  { %277 = vmatpush.msra.mxu2 %v3473_v45  ;;  %309 = vmatpush.msra.mxu3 %v3474_v46  ;;  %v117_v22 = vld [vmem:[%s7385_s2 + $0x48] sm:$0xff]  ;;  %v114_v23 = vld [vmem:[%s7385_s2 + $0x30] sm:$0xff]  ;;  %v111_v24 = vld [vmem:[%s7385_s2 + $0x18] sm:$0xff] }
  0x20   :  { %338 = vmatpush.msrb.mxu0 %v3484_v34  ;;  %385 = vmatpush.msrb.mxu1 %v135_v48  ;;  %v108_v25 = vld [vmem:[%s7385_s2] sm:$0xff]  ;;  %v151_v26 = vld [vmem:[%s7385_s2 + $0x158] sm:$0xff]  ;;  %v149_v29 = vld [vmem:[%s7385_s2 + $0x148] sm:$0xff] }
  0x21   :  { %278 = vmatpush.msra.mxu2 %v3470_v49  ;;  %310 = vmatpush.msra.mxu3 %v3471_v50  ;;  %v152_v27 = vld [vmem:[%s7385_s2 + $0x160] sm:$0xff]  ;;  %v145_v30 = vld [vmem:[%s7385_s2 + $0x128] sm:$0xff]  ;;  %v146_v31 = vld [vmem:[%s7385_s2 + $0x130] sm:$0xff] }
  0x22   :  { %339 = vmatpush.msrb.mxu0 %v3481_v38  ;;  %386 = vmatpush.msrb.mxu1 %v132_v52  ;;  %v148_v28 = vld [vmem:[%s7385_s2 + $0x140] sm:$0xff]  ;;  %v142_v32 = vld [vmem:[%s7385_s2 + $0x110] sm:$0xff]  ;;  %v143_v33 = vld [vmem:[%s7385_s2 + $0x118] sm:$0xff] }
  0x23   :  { %279 = vmatpush.msra.mxu2 %v3467_v53  ;;  %311 = vmatpush.msra.mxu3 %v3468_v54  ;;  %v139_v34 = vld [vmem:[%s7385_s2 + $0xf8] sm:$0xff]  ;;  %v140_v35 = vld [vmem:[%s7385_s2 + $0x100] sm:$0xff]  ;;  %v137_v37 = vld [vmem:[%s7385_s2 + $0xe8] sm:$0xff] }
  0x24   :  { %340 = vmatpush.msrb.mxu0 %v3478_v43  ;;  %387 = vmatpush.msrb.mxu1 %v129_v58  ;;  %v136_v36 = vld [vmem:[%s7385_s2 + $0xe0] sm:$0xff]  ;;  %v133_v38 = vld [vmem:[%s7385_s2 + $0xc8] sm:$0xff]  ;;  %v134_v39 = vld [vmem:[%s7385_s2 + $0xd0] sm:$0xff] }
  0x25   :  { %3452 = vmatmul.msk.f32.gmra.mxu1 %vm60_vm0, %v3447_v40  ;;  %3442 = vmatmul.msk.f32.gmra.mxu0 %vm60_vm0, %v57_v41  ;;  %v130_v40 = vld [vmem:[%s7385_s2 + $0xb0] sm:$0xff]  ;;  %v131_v41 = vld [vmem:[%s7385_s2 + $0xb8] sm:$0xff]  ;;  %v128_v43 = vld [vmem:[%s7385_s2 + $0xa0] sm:$0xff] }
  0x26   :  { %341 = vmatpush.msrb.mxu0 %v3475_v47  ;;  %280 = vmatpush.msra.mxu2 %v3464_v59  ;;  %v127_v42 = vld [vmem:[%s7385_s2 + $0x98] sm:$0xff]  ;;  %v124_v44 = vld [vmem:[%s7385_s2 + $0x80] sm:$0xff]  ;;  %v125_v45 = vld [vmem:[%s7385_s2 + $0x88] sm:$0xff] }
  0x27   :  { %312 = vmatpush.msra.mxu3 %v3465_v60  ;;  %388 = vmatpush.msrb.mxu1 %v126_v62  ;;  %v121_v48 = vld [vmem:[%s7385_s2 + $0x68] sm:$0xff]  ;;  %v122_v49 = vld [vmem:[%s7385_s2 + $0x70] sm:$0xff]  ;;  %v115_v52 = vld [vmem:[%s7385_s2 + $0x38] sm:$0xff] }
  0x28   :  { %342 = vmatpush.msrb.mxu0 %v3472_v51  ;;  %281 = vmatpush.msra.mxu2 %v3461_v63  ;;  %v118_v50 = vld [vmem:[%s7385_s2 + $0x50] sm:$0xff]  ;;  %v119_v51 = vld [vmem:[%s7385_s2 + $0x58] sm:$0xff]  ;;  %v116_v53 = vld [vmem:[%s7385_s2 + $0x40] sm:$0xff] }
  0x29   :  { %313 = vmatpush.msra.mxu3 %v3462_v10  ;;  %389 = vmatpush.msrb.mxu1 %v123_v12  ;;  %v109_v58 = vld [vmem:[%s7385_s2 + $0x8] sm:$0xff]  ;;  %v110_v59 = vld [vmem:[%s7385_s2 + $0x10] sm:$0xff] }
  0x2a   :  { %343 = vmatpush.msrb.mxu0 %v3469_v55  ;;  %282 = vmatpush.msra.mxu2 %v3458_v13  ;;  %v3530_v12 = vld [vmem:[%s7384_s1 + $0x50] sm:$0xff]  ;;  %v3531_v13 = vld [vmem:[%s7384_s1 + $0x58] sm:$0xff] }
  0x2b   :  { %314 = vmatpush.msra.mxu3 %v3459_v14  ;;  %390 = vmatpush.msrb.mxu1 %v120_v16  ;;  %v3579_v14 = vld [vmem:[%s7385_s2 + $0x408] sm:$0xff]  ;;  %v3581_v16 = vld [vmem:[%s7385_s2 + $0x418] sm:$0xff] }
  0x2c   :  { %344 = vmatpush.msrb.mxu0 %v3466_v61  ;;  %283 = vmatpush.msra.mxu2 %v3455_v19  ;;  %v3577_v19 = vld [vmem:[%s7385_s2 + $0x3f8] sm:$0xff] }
  0x2d   :  { %3453 = vmatmul.msk.f32.gmra.mxu1 %vm60_vm0, %v3448_v56  ;;  %3443 = vmatmul.msk.f32.gmra.mxu0 %vm60_vm0, %v58_v57  ;;  %v112_v56 = vld [vmem:[%s7385_s2 + $0x20] sm:$0xff]  ;;  %v113_v57 = vld [vmem:[%s7385_s2 + $0x28] sm:$0xff] }
  0x2e   :  { %345 = vmatpush.msrb.mxu0 %v3463_v11  ;;  %315 = vmatpush.msra.mxu3 %v3456_v20  ;;  %v3578_v20 = vld [vmem:[%s7385_s2 + $0x400] sm:$0xff] }
  0x2f   :  { %391 = vmatpush.msrb.mxu1 %v117_v22  ;;  %412 = vmatpush.msrb.mxu2 %v151_v26  ;;  %v3574_v22 = vld [vmem:[%s7385_s2 + $0x3e0] sm:$0xff]  ;;  %v3572_v26 = vld [vmem:[%s7385_s2 + $0x3d0] sm:$0xff] }
  0x30   :  { %346 = vmatpush.msrb.mxu0 %v3460_v15  ;;  %444 = vmatpush.msrb.mxu3 %v152_v27  ;;  %v3580_v15 = vld [vmem:[%s7385_s2 + $0x410] sm:$0xff]  ;;  %v3567_v27 = vld [vmem:[%s7385_s2 + $0x3a8] sm:$0xff] }
  0x31   :  { %392 = vmatpush.msrb.mxu1 %v114_v23  ;;  %413 = vmatpush.msrb.mxu2 %v148_v28  ;;  %v3575_v23 = vld [vmem:[%s7385_s2 + $0x3e8] sm:$0xff]  ;;  %v3568_v28 = vld [vmem:[%s7385_s2 + $0x3b0] sm:$0xff] }
  0x32   :  { %347 = vmatpush.msrb.mxu0 %v3457_v21  ;;  %445 = vmatpush.msrb.mxu3 %v149_v29  ;;  %v3573_v21 = vld [vmem:[%s7385_s2 + $0x3d8] sm:$0xff] }
  0x33   :  { %393 = vmatpush.msrb.mxu1 %v111_v24  ;;  %414 = vmatpush.msrb.mxu2 %v145_v30  ;;  %v3570_v24 = vld [vmem:[%s7385_s2 + $0x3c0] sm:$0xff]  ;;  %v3569_v29 = vld [vmem:[%s7385_s2 + $0x3b8] sm:$0xff] }
  0x34   :  { %502 = vmatpush.msra.mxu0 %v4360_v0  ;;  %446 = vmatpush.msrb.mxu3 %v146_v31  ;;  %v3670_v30 = vld [vmem:[%s7384_s1 + $0xa0] sm:$0xff]  ;;  %v3564_v31 = vld [vmem:[%s7385_s2 + $0x390] sm:$0xff] }
  0x35   :  { %3454 = vmatmul.msk.f32.gmra.mxu1 %vm60_vm0, %v3449_v17  ;;  %3444 = vmatmul.msk.f32.gmra.mxu0 %vm60_vm0, %v59_v18  ;;  %v3604_v17 = vld [vmem:[%s7384_s1 + $0x98] sm:$0xf]  ;;  %v3576_v18 = vld [vmem:[%s7385_s2 + $0x3f0] sm:$0xff] }
  0x36   :  { %503 = vmatpush.msra.mxu0 %v4365_v1  ;;  %394 = vmatpush.msrb.mxu1 %v108_v25  ;;  %v3571_v25 = vld [vmem:[%s7385_s2 + $0x3c8] sm:$0xff] }
  0x37   :  { %415 = vmatpush.msrb.mxu2 %v142_v32  ;;  %447 = vmatpush.msrb.mxu3 %v143_v33  ;;  %v3565_v32 = vld [vmem:[%s7385_s2 + $0x398] sm:$0xff]  ;;  %v3566_v33 = vld [vmem:[%s7385_s2 + $0x3a0] sm:$0xff] }
  0x38   :  { %504 = vmatpush.msra.mxu0 %v4372_v2 }
  0x39   :  { %416 = vmatpush.msrb.mxu2 %v139_v34  ;;  %448 = vmatpush.msrb.mxu3 %v140_v35  ;;  %v3561_v34 = vld [vmem:[%s7385_s2 + $0x378] sm:$0xff]  ;;  %v3562_v35 = vld [vmem:[%s7385_s2 + $0x380] sm:$0xff] }
  0x3a   :  { %505 = vmatpush.msra.mxu0 %v4379_v3 }
  0x3b   :  { %417 = vmatpush.msrb.mxu2 %v136_v36  ;;  %449 = vmatpush.msrb.mxu3 %v137_v37  ;;  %v3563_v36 = vld [vmem:[%s7385_s2 + $0x388] sm:$0xff]  ;;  %v3558_v37 = vld [vmem:[%s7385_s2 + $0x360] sm:$0xff] }
  0x3c   :  { %506 = vmatpush.msra.mxu0 %v4386_v4 }
  0x3d   :  { %418 = vmatpush.msrb.mxu2 %v133_v38  ;;  %450 = vmatpush.msrb.mxu3 %v134_v39  ;;  %v3559_v38 = vld [vmem:[%s7385_s2 + $0x368] sm:$0xff]  ;;  %v3560_v39 = vld [vmem:[%s7385_s2 + $0x370] sm:$0xff] }
  0x3e   :  { %507 = vmatpush.msra.mxu0 %v4393_v5 }
  0x3f   :  { %419 = vmatpush.msrb.mxu2 %v130_v40  ;;  %451 = vmatpush.msrb.mxu3 %v131_v41  ;;  %v3555_v40 = vld [vmem:[%s7385_s2 + $0x348] sm:$0xff]  ;;  %v3556_v41 = vld [vmem:[%s7385_s2 + $0x350] sm:$0xff] }
  0x40   :  { %508 = vmatpush.msra.mxu0 %v4400_v6 }
  0x41   :  { %420 = vmatpush.msrb.mxu2 %v127_v42  ;;  %452 = vmatpush.msrb.mxu3 %v128_v43  ;;  %v3557_v42 = vld [vmem:[%s7385_s2 + $0x358] sm:$0xff]  ;;  %v3671_v43 = vld [vmem:[%s7384_s1 + $0xa8] sm:$0xff] }
  0x42   :  { %509 = vmatpush.msra.mxu0 %v4407_v7 }
  0x43   :  { %421 = vmatpush.msrb.mxu2 %v124_v44  ;;  %453 = vmatpush.msrb.mxu3 %v125_v45  ;;  %v3552_v44 = vld [vmem:[%s7385_s2 + $0x330] sm:$0xff]  ;;  %v3553_v45 = vld [vmem:[%s7385_s2 + $0x338] sm:$0xff] }
  0x44   :  { %510 = vmatpush.msra.mxu0 %v4414_v8 }
  0x45   :  { %422 = vmatpush.msrb.mxu2 %v121_v48  ;;  %454 = vmatpush.msrb.mxu3 %v122_v49  ;;  %v3549_v48 = vld [vmem:[%s7385_s2 + $0x318] sm:$0xff]  ;;  %v3550_v49 = vld [vmem:[%s7385_s2 + $0x320] sm:$0xff] }
  0x46   :  { %511 = vmatpush.msra.mxu0 %v4421_v9 }
  0x47   :  { %423 = vmatpush.msrb.mxu2 %v118_v50  ;;  %455 = vmatpush.msrb.mxu3 %v119_v51  ;;  %v3551_v50 = vld [vmem:[%s7385_s2 + $0x328] sm:$0xff]  ;;  %v3546_v51 = vld [vmem:[%s7385_s2 + $0x300] sm:$0xff] }
  0x49   :  { %424 = vmatpush.msrb.mxu2 %v115_v52  ;;  %456 = vmatpush.msrb.mxu3 %v116_v53  ;;  %v3547_v52 = vld [vmem:[%s7385_s2 + $0x308] sm:$0xff]  ;;  %v3548_v53 = vld [vmem:[%s7385_s2 + $0x310] sm:$0xff] }
  0x4b   :  { %425 = vmatpush.msrb.mxu2 %v112_v56  ;;  %457 = vmatpush.msrb.mxu3 %v113_v57  ;;  %v3545_v56 = vld [vmem:[%s7385_s2 + $0x2f8] sm:$0xff]  ;;  %v3540_v57 = vld [vmem:[%s7385_s2 + $0x2d0] sm:$0xff] }
  0x4d   :  { %426 = vmatpush.msrb.mxu2 %v109_v58  ;;  %458 = vmatpush.msrb.mxu3 %v110_v59  ;;  %v3541_v58 = vld [vmem:[%s7385_s2 + $0x2d8] sm:$0xff]  ;;  %v3542_v59 = vld [vmem:[%s7385_s2 + $0x2e0] sm:$0xff] }
  0x92   :  { %v191_v46 = vpop.f32.mrf.mxu1  ;;  %v93_v47 = vpop.f32.mrf.mxu0 }
  0x93   :  { %3500 = vmatmul.msk.f32.vlgmr.msra.gmra.mxu2 %vm252_vm1, %v191_v46  ;;  %3505 = vmatmul.msk.f32.vlgmr.msra.gmra.mxu3 %vm252_vm1, %v191_v46 }
  0x94   :  { %3510 = vmatmul.msk.f32.vlgmr.msrb.gmra.mxu0 %vm252_vm1, %v191_v46  ;;  %3515 = vmatmul.msk.f32.vlgmr.msrb.gmra.mxu1 %vm252_vm1, %v93_v47  ;;  %v3554_v46 = vld [vmem:[%s7385_s2 + $0x340] sm:$0xff] }
  0x95   :  { %727 = vmatpush.msrb.mxu0 %v4360_v0 }
  0x97   :  { %728 = vmatpush.msrb.mxu0 %v4365_v1 }
  0x99   :  { %729 = vmatpush.msrb.mxu0 %v4372_v2 }
  0x9a   :  { %v194_v54 = vpop.f32.mrf.mxu1  ;;  %v96_v55 = vpop.f32.mrf.mxu0 }
  0x9b   :  { %3501 = vmatmul.msk.f32.gmra.mxu2 %vm252_vm1, %v194_v54  ;;  %3506 = vmatmul.msk.f32.gmra.mxu3 %vm252_vm1, %v194_v54 }
  0x9c   :  { %3511 = vmatmul.msk.f32.gmra.mxu0 %vm252_vm1, %v194_v54  ;;  %3516 = vmatmul.msk.f32.gmra.mxu1 %vm252_vm1, %v96_v55  ;;  %v3543_v54 = vld [vmem:[%s7385_s2 + $0x2e8] sm:$0xff] }
  0x9d   :  { %730 = vmatpush.msrb.mxu0 %v4379_v3 }
  0x9f   :  { %731 = vmatpush.msrb.mxu0 %v4386_v4 }
  0xa1   :  { %732 = vmatpush.msrb.mxu0 %v4393_v5 }
  0xa2   :  { %v197_v60 = vpop.f32.mrf.mxu1  ;;  %v99_v61 = vpop.f32.mrf.mxu0 }
  0xa3   :  { %3502 = vmatmul.msk.f32.gmra.mxu2 %vm252_vm1, %v197_v60  ;;  %3507 = vmatmul.msk.f32.gmra.mxu3 %vm252_vm1, %v197_v60 }
  0xa4   :  { %3512 = vmatmul.msk.f32.gmra.mxu0 %vm252_vm1, %v197_v60  ;;  %3517 = vmatmul.msk.f32.gmra.mxu1 %vm252_vm1, %v99_v61 }
  0xa5   :  { %733 = vmatpush.msrb.mxu0 %v4400_v6 }
  0xa7   :  { %734 = vmatpush.msrb.mxu0 %v4407_v7 }
  0xa9   :  { %735 = vmatpush.msrb.mxu0 %v4414_v8 }
  0xaa   :  { %v200_v62 = vpop.f32.mrf.mxu1  ;;  %v102_v63 = vpop.f32.mrf.mxu0 }
  0xab   :  { %3503 = vmatmul.msk.f32.gmra.mxu2 %vm252_vm1, %v200_v62  ;;  %3508 = vmatmul.msk.f32.gmra.mxu3 %vm252_vm1, %v200_v62 }
  0xac   :  { %3513 = vmatmul.msk.f32.gmra.mxu0 %vm252_vm1, %v200_v62  ;;  %3518 = vmatmul.msk.f32.gmra.mxu1 %vm252_vm1, %v102_v63 }
  0xad   :  { %736 = vmatpush.msrb.mxu0 %v4421_v9 }
  0xb2   :  { %v203_v10 = vpop.f32.mrf.mxu1  ;;  %v105_v11 = vpop.f32.mrf.mxu0 }
  0xb3   :  { %3504 = vmatmul.msk.f32.gmra.mxu2 %vm252_vm1, %v203_v10  ;;  %3509 = vmatmul.msk.f32.gmra.mxu3 %vm252_vm1, %v203_v10 }
  0xb4   :  { %3514 = vmatmul.msk.f32.gmra.mxu0 %vm252_vm1, %v203_v10  ;;  %3519 = vmatmul.msk.f32.gmra.mxu1 %vm252_vm1, %v105_v11  ;;  %v3652_v10 = vld [vmem:[%s7385_s2 + $0x588] sm:$0xff] }
  0xbb   :  { %3520 = vmatmul.msk.f32.vlgmr.msrb.gmra.mxu2 %vm252_vm1, %v93_v47  ;;  %3525 = vmatmul.msk.f32.vlgmr.msrb.gmra.mxu3 %vm252_vm1, %v93_v47 }
  0xbc   :  { %3535 = vmatmul.msk.f32.vlgmr.msra.gmra.mxu0 %vm60_vm0, %v3530_v12  ;;  %v3654_v12 = vld [vmem:[%s7385_s2 + $0x598] sm:$0xff] }
  0xbd   :  { %952 = vmatpush.msra.mxu0 %v4360_v0  ;;  %v3532_v0 = vld [vmem:[%s7384_s1 + $0x60] sm:$0xff] }
  0xbf   :  { %953 = vmatpush.msra.mxu0 %v4365_v1  ;;  %v3533_v1 = vld [vmem:[%s7384_s1 + $0x68] sm:$0xff] }
  0xc1   :  { %954 = vmatpush.msra.mxu0 %v4372_v2  ;;  %v3534_v2 = vld [vmem:[%s7384_s1 + $0x70] sm:$0xf] }
  0xc3   :  { %3521 = vmatmul.msk.f32.gmra.mxu2 %vm252_vm1, %v96_v55  ;;  %3526 = vmatmul.msk.f32.gmra.mxu3 %vm252_vm1, %v96_v55  ;;  %v3544_v55 = vld [vmem:[%s7385_s2 + $0x2f0] sm:$0xff] }
  0xc4   :  { %3536 = vmatmul.msk.f32.gmra.mxu0 %vm60_vm0, %v3531_v13  ;;  %v3649_v13 = vld [vmem:[%s7385_s2 + $0x570] sm:$0xff] }
  0xc5   :  { %955 = vmatpush.msra.mxu0 %v4379_v3  ;;  %v3600_v3 = vld [vmem:[%s7384_s1 + $0x78] sm:$0xff] }
  0xc7   :  { %956 = vmatpush.msra.mxu0 %v4386_v4  ;;  %v3601_v4 = vld [vmem:[%s7384_s1 + $0x80] sm:$0xff] }
  0xc9   :  { %957 = vmatpush.msra.mxu0 %v4393_v5  ;;  %v3602_v5 = vld [vmem:[%s7384_s1 + $0x88] sm:$0xff] }
  0xcb   :  { %3522 = vmatmul.msk.f32.gmra.mxu2 %vm252_vm1, %v99_v61  ;;  %3527 = vmatmul.msk.f32.gmra.mxu3 %vm252_vm1, %v99_v61  ;;  %v3672_v61 = vld [vmem:[%s7384_s1 + $0xb0] sm:$0xff] }
  0xcc   :  { %3537 = vmatmul.msk.f32.gmra.mxu0 %vm60_vm0, %v3532_v0  ;;  %v3650_v0 = vld [vmem:[%s7385_s2 + $0x578] sm:$0xff] }
  0xcd   :  { %958 = vmatpush.msra.mxu0 %v4400_v6  ;;  %v3603_v6 = vld [vmem:[%s7384_s1 + $0x90] sm:$0xff] }
  0xcf   :  { %959 = vmatpush.msra.mxu0 %v4407_v7  ;;  %v3582_v7 = vld [vmem:[%s7385_s2 + $0x420] sm:$0xff] }
  0xd0   :  { %590 = vmatpush.msra.mxu1 %v3582_v7  ;;  %v3643_v7 = vld [vmem:[%s7385_s2 + $0x540] sm:$0xff] }
  0xd1   :  { %960 = vmatpush.msra.mxu0 %v4414_v8  ;;  %v3583_v8 = vld [vmem:[%s7385_s2 + $0x428] sm:$0xff] }
  0xd2   :  { %622 = vmatpush.msra.mxu2 %v3583_v8  ;;  %591 = vmatpush.msra.mxu1 %v3579_v14  ;;  %v3644_v8 = vld [vmem:[%s7385_s2 + $0x548] sm:$0xff] }
  0xd3   :  { %3523 = vmatmul.msk.f32.gmra.mxu2 %vm252_vm1, %v102_v63  ;;  %3528 = vmatmul.msk.f32.gmra.mxu3 %vm252_vm1, %v102_v63  ;;  %v3673_v63 = vld [vmem:[%s7384_s1 + $0xb8] sm:$0xff]  ;;  %v3640_v14 = vld [vmem:[%s7385_s2 + $0x528] sm:$0xff] }
  0xd4   :  { %3538 = vmatmul.msk.f32.gmra.mxu0 %vm60_vm0, %v3533_v1  ;;  %623 = vmatpush.msra.mxu2 %v3580_v15  ;;  %v3651_v1 = vld [vmem:[%s7385_s2 + $0x580] sm:$0xff]  ;;  %v3641_v15 = vld [vmem:[%s7385_s2 + $0x530] sm:$0xff] }
  0xd5   :  { %961 = vmatpush.msra.mxu0 %v4421_v9  ;;  %v3584_v9 = vld [vmem:[%s7385_s2 + $0x430] sm:$0xff]  ;;  %592 = vmatpush.msra.mxu1 %v3576_v18  ;;  %v3638_v18 = vld [vmem:[%s7385_s2 + $0x518] sm:$0xff] }
  0xd6   :  { %654 = vmatpush.msra.mxu3 %v3584_v9  ;;  %624 = vmatpush.msra.mxu2 %v3577_v19  ;;  %v3645_v9 = vld [vmem:[%s7385_s2 + $0x550] sm:$0xff]  ;;  %v3639_v19 = vld [vmem:[%s7385_s2 + $0x520] sm:$0xff] }
  0xd7   :  { %593 = vmatpush.msra.mxu1 %v3573_v21  ;;  %v3634_v21 = vld [vmem:[%s7385_s2 + $0x4f8] sm:$0xff] }
  0xd8   :  { %655 = vmatpush.msra.mxu3 %v3581_v16  ;;  %625 = vmatpush.msra.mxu2 %v3574_v22  ;;  %v3642_v16 = vld [vmem:[%s7385_s2 + $0x538] sm:$0xff]  ;;  %v3635_v22 = vld [vmem:[%s7385_s2 + $0x500] sm:$0xff] }
  0xd9   :  { %594 = vmatpush.msra.mxu1 %v3570_v24  ;;  %v3631_v24 = vld [vmem:[%s7385_s2 + $0x4e0] sm:$0xff] }
  0xda   :  { %656 = vmatpush.msra.mxu3 %v3578_v20  ;;  %626 = vmatpush.msra.mxu2 %v3571_v25  ;;  %v3632_v25 = vld [vmem:[%s7385_s2 + $0x4e8] sm:$0xff] }
  0xdb   :  { %3524 = vmatmul.msk.f32.gmra.mxu2 %vm252_vm1, %v105_v11  ;;  %3529 = vmatmul.msk.f32.gmra.mxu3 %vm252_vm1, %v105_v11  ;;  %v3653_v11 = vld [vmem:[%s7385_s2 + $0x590] sm:$0xff] }
  0xdc   :  { %3539 = vmatmul.msk.f32.gmra.mxu0 %vm60_vm0, %v3534_v2  ;;  %657 = vmatpush.msra.mxu3 %v3575_v23  ;;  %v3674_v2 = vld [vmem:[%s7384_s1 + $0xc0] sm:$0xf]  ;;  %v3636_v23 = vld [vmem:[%s7385_s2 + $0x508] sm:$0xff] }
  0xdd   :  { %595 = vmatpush.msra.mxu1 %v3567_v27  ;;  %627 = vmatpush.msra.mxu2 %v3568_v28  ;;  %v3628_v27 = vld [vmem:[%s7385_s2 + $0x4c8] sm:$0xff]  ;;  %v3629_v28 = vld [vmem:[%s7385_s2 + $0x4d0] sm:$0xff] }
  0xde   :  { %658 = vmatpush.msra.mxu3 %v3572_v26  ;;  %v3633_v26 = vld [vmem:[%s7385_s2 + $0x4f0] sm:$0xff] }
  0xdf   :  { %596 = vmatpush.msra.mxu1 %v3564_v31  ;;  %628 = vmatpush.msra.mxu2 %v3565_v32  ;;  %v3626_v31 = vld [vmem:[%s7385_s2 + $0x4b8] sm:$0xff]  ;;  %v3627_v32 = vld [vmem:[%s7385_s2 + $0x4c0] sm:$0xff] }
  0xe0   :  { %659 = vmatpush.msra.mxu3 %v3569_v29  ;;  %v3630_v29 = vld [vmem:[%s7385_s2 + $0x4d8] sm:$0xff] }
  0xe1   :  { %597 = vmatpush.msra.mxu1 %v3561_v34  ;;  %629 = vmatpush.msra.mxu2 %v3562_v35  ;;  %v3622_v34 = vld [vmem:[%s7385_s2 + $0x498] sm:$0xff]  ;;  %v3623_v35 = vld [vmem:[%s7385_s2 + $0x4a0] sm:$0xff] }
  0xe2   :  { %660 = vmatpush.msra.mxu3 %v3566_v33 }
  0xe3   :  { %598 = vmatpush.msra.mxu1 %v3558_v37  ;;  %630 = vmatpush.msra.mxu2 %v3559_v38  ;;  %v3619_v37 = vld [vmem:[%s7385_s2 + $0x480] sm:$0xff]  ;;  %v3620_v38 = vld [vmem:[%s7385_s2 + $0x488] sm:$0xff] }
  0xe4   :  { %3605 = vmatmul.msk.f32.vlgmr.msrb.gmra.mxu0 %vm60_vm0, %v3600_v3  ;;  %661 = vmatpush.msra.mxu3 %v3563_v36  ;;  %v3624_v36 = vld [vmem:[%s7385_s2 + $0x4a8] sm:$0xff] }
  0xe5   :  { %599 = vmatpush.msra.mxu1 %v3555_v40  ;;  %631 = vmatpush.msra.mxu2 %v3556_v41  ;;  %v3616_v40 = vld [vmem:[%s7385_s2 + $0x468] sm:$0xff]  ;;  %v3617_v41 = vld [vmem:[%s7385_s2 + $0x470] sm:$0xff] }
  0xe6   :  { %662 = vmatpush.msra.mxu3 %v3560_v39  ;;  %v3621_v39 = vld [vmem:[%s7385_s2 + $0x490] sm:$0xff] }
  0xe7   :  { %600 = vmatpush.msra.mxu1 %v3552_v44  ;;  %632 = vmatpush.msra.mxu2 %v3553_v45  ;;  %v3614_v44 = vld [vmem:[%s7385_s2 + $0x458] sm:$0xff] }
  0xe8   :  { %663 = vmatpush.msra.mxu3 %v3557_v42  ;;  %v3618_v42 = vld [vmem:[%s7385_s2 + $0x478] sm:$0xff] }
  0xe9   :  { %601 = vmatpush.msra.mxu1 %v3549_v48  ;;  %633 = vmatpush.msra.mxu2 %v3550_v49  ;;  %v3610_v48 = vld [vmem:[%s7385_s2 + $0x438] sm:$0xff]  ;;  %v3611_v49 = vld [vmem:[%s7385_s2 + $0x440] sm:$0xff] }
  0xea   :  { %664 = vmatpush.msra.mxu3 %v3554_v46  ;;  %v3615_v46 = vld [vmem:[%s7385_s2 + $0x460] sm:$0xff] }
  0xeb   :  { %602 = vmatpush.msra.mxu1 %v3546_v51  ;;  %634 = vmatpush.msra.mxu2 %v3547_v52  ;;  %v3722_v52 = vld [vmem:[%s7385_s2 + $0x6f0] sm:$0xff] }
  0xec   :  { %3606 = vmatmul.msk.f32.gmra.mxu0 %vm60_vm0, %v3601_v4  ;;  %665 = vmatpush.msra.mxu3 %v3551_v50  ;;  %v3646_v4 = vld [vmem:[%s7385_s2 + $0x558] sm:$0xff]  ;;  %v3612_v50 = vld [vmem:[%s7385_s2 + $0x448] sm:$0xff] }
  0xed   :  { %603 = vmatpush.msra.mxu1 %v3543_v54  ;;  %635 = vmatpush.msra.mxu2 %v3544_v55  ;;  %v3724_v54 = vld [vmem:[%s7385_s2 + $0x700] sm:$0xff]  ;;  %v3719_v55 = vld [vmem:[%s7385_s2 + $0x6d8] sm:$0xff] }
  0xee   :  { %666 = vmatpush.msra.mxu3 %v3548_v53  ;;  %v3723_v53 = vld [vmem:[%s7385_s2 + $0x6f8] sm:$0xff] }
  0xef   :  { %604 = vmatpush.msra.mxu1 %v3540_v57  ;;  %636 = vmatpush.msra.mxu2 %v3541_v58  ;;  %v3721_v57 = vld [vmem:[%s7385_s2 + $0x6e8] sm:$0xff] }
  0xf0   :  { %667 = vmatpush.msra.mxu3 %v3545_v56  ;;  %v3720_v56 = vld [vmem:[%s7385_s2 + $0x6e0] sm:$0xff] }
  0xf1   :  { %815 = vmatpush.msrb.mxu1 %v3652_v10  ;;  %847 = vmatpush.msrb.mxu2 %v3653_v11  ;;  %v3713_v10 = vld [vmem:[%s7385_s2 + $0x6a8] sm:$0xff]  ;;  %v3714_v11 = vld [vmem:[%s7385_s2 + $0x6b0] sm:$0xff] }
  0xf2   :  { %668 = vmatpush.msra.mxu3 %v3542_v59  ;;  %v3716_v59 = vld [vmem:[%s7385_s2 + $0x6c0] sm:$0xff] }
  0xf3   :  { %816 = vmatpush.msrb.mxu1 %v3649_v13  ;;  %848 = vmatpush.msrb.mxu2 %v3650_v0  ;;  %v3710_v13 = vld [vmem:[%s7385_s2 + $0x690] sm:$0xff]  ;;  %v3711_v0 = vld [vmem:[%s7385_s2 + $0x698] sm:$0xff] }
  0xf4   :  { %3607 = vmatmul.msk.f32.gmra.mxu0 %vm60_vm0, %v3602_v5  ;;  %879 = vmatpush.msrb.mxu3 %v3654_v12  ;;  %v3647_v5 = vld [vmem:[%s7385_s2 + $0x560] sm:$0xff]  ;;  %v3715_v12 = vld [vmem:[%s7385_s2 + $0x6b8] sm:$0xff] }
  0xf5   :  { %817 = vmatpush.msrb.mxu1 %v3646_v4  ;;  %849 = vmatpush.msrb.mxu2 %v3647_v5  ;;  %v3708_v4 = vld [vmem:[%s7385_s2 + $0x680] sm:$0xff] }
  0xf6   :  { %880 = vmatpush.msrb.mxu3 %v3651_v1  ;;  %v3712_v1 = vld [vmem:[%s7385_s2 + $0x6a0] sm:$0xff] }
  0xf7   :  { %818 = vmatpush.msrb.mxu1 %v3643_v7  ;;  %850 = vmatpush.msrb.mxu2 %v3644_v8  ;;  %v3704_v7 = vld [vmem:[%s7385_s2 + $0x660] sm:$0xff]  ;;  %v3705_v8 = vld [vmem:[%s7385_s2 + $0x668] sm:$0xff] }
  0xf9   :  { %819 = vmatpush.msrb.mxu1 %v3640_v14  ;;  %851 = vmatpush.msrb.mxu2 %v3641_v15  ;;  %v3706_v14 = vld [vmem:[%s7385_s2 + $0x670] sm:$0xff]  ;;  %v3701_v15 = vld [vmem:[%s7385_s2 + $0x648] sm:$0xff] }
  0xfb   :  { %852 = vmatpush.msrb.mxu2 %v3638_v18  ;;  %v3703_v18 = vld [vmem:[%s7385_s2 + $0x658] sm:$0xff] }
  0xfc   :  { %3608 = vmatmul.msk.f32.gmra.mxu0 %vm60_vm0, %v3603_v6  ;;  %v3648_v6 = vld [vmem:[%s7385_s2 + $0x568] sm:$0xff] }
  0xfd   :  { %881 = vmatpush.msrb.mxu3 %v3648_v6  ;;  %853 = vmatpush.msrb.mxu2 %v3635_v22  ;;  %v3709_v6 = vld [vmem:[%s7385_s2 + $0x688] sm:$0xff]  ;;  %v3695_v22 = vld [vmem:[%s7385_s2 + $0x618] sm:$0xff] }
  0xff   :  { %882 = vmatpush.msrb.mxu3 %v3645_v9  ;;  %854 = vmatpush.msrb.mxu2 %v3632_v25  ;;  %v3696_v25 = vld [vmem:[%s7385_s2 + $0x620] sm:$0xff] }
 0x101   :  { %883 = vmatpush.msrb.mxu3 %v3642_v16  ;;  %855 = vmatpush.msrb.mxu2 %v3629_v28  ;;  %v3693_v28 = vld [vmem:[%s7385_s2 + $0x608] sm:$0xff] }
 0x103   :  { %884 = vmatpush.msrb.mxu3 %v3639_v19  ;;  %856 = vmatpush.msrb.mxu2 %v3626_v31  ;;  %v3698_v19 = vld [vmem:[%s7385_s2 + $0x630] sm:$0xff] }
 0x104   :  { %3609 = vmatmul.msk.f32.gmra.mxu0 %vm60_vm0, %v3604_v17  ;;  %v3637_v17 = vld [vmem:[%s7385_s2 + $0x510] sm:$0xff] }
 0x105   :  { %820 = vmatpush.msrb.mxu1 %v3637_v17  ;;  %885 = vmatpush.msrb.mxu3 %v3636_v23  ;;  %v3702_v17 = vld [vmem:[%s7385_s2 + $0x650] sm:$0xff] }
 0x106   :  { %857 = vmatpush.msrb.mxu2 %v3623_v35  ;;  %v3694_v31 = vld [vmem:[%s7385_s2 + $0x610] sm:$0xff]  ;;  %v3687_v35 = vld [vmem:[%s7385_s2 + $0x5d8] sm:$0xff] }
 0x107   :  { %821 = vmatpush.msrb.mxu1 %v3634_v21  ;;  %886 = vmatpush.msrb.mxu3 %v3633_v26  ;;  %v3699_v21 = vld [vmem:[%s7385_s2 + $0x638] sm:$0xff]  ;;  %v3692_v26 = vld [vmem:[%s7385_s2 + $0x600] sm:$0xff] }
 0x108   :  { %858 = vmatpush.msrb.mxu2 %v3620_v38  ;;  %v3683_v38 = vld [vmem:[%s7385_s2 + $0x5b8] sm:$0xff] }
 0x109   :  { %822 = vmatpush.msrb.mxu1 %v3631_v24  ;;  %887 = vmatpush.msrb.mxu3 %v3630_v29  ;;  %v3700_v24 = vld [vmem:[%s7385_s2 + $0x640] sm:$0xff]  ;;  %v3689_v29 = vld [vmem:[%s7385_s2 + $0x5e8] sm:$0xff] }
 0x10a   :  { %859 = vmatpush.msrb.mxu2 %v3617_v41  ;;  %v3680_v41 = vld [vmem:[%s7385_s2 + $0x5a0] sm:$0xff] }
 0x10b   :  { %823 = vmatpush.msrb.mxu1 %v3628_v27  ;;  %888 = vmatpush.msrb.mxu3 %v3627_v32  ;;  %v3697_v27 = vld [vmem:[%s7385_s2 + $0x628] sm:$0xff]  ;;  %v3690_v32 = vld [vmem:[%s7385_s2 + $0x5f0] sm:$0xff] }
 0x10c   :  { %3675 = vmatmul.msk.f32.vlgmr.msra.gmra.mxu0 %vm60_vm0, %v3670_v30  ;;  %v3625_v30 = vld [vmem:[%s7385_s2 + $0x4b0] sm:$0xff]  ;;  %860 = vmatpush.msrb.mxu2 %v3614_v44 }
 0x10d   :  { %824 = vmatpush.msrb.mxu1 %v3625_v30  ;;  %889 = vmatpush.msrb.mxu3 %v3624_v36 }
 0x10e   :  { %861 = vmatpush.msrb.mxu2 %v3611_v49 }
 0x10f   :  { %825 = vmatpush.msrb.mxu1 %v3622_v34  ;;  %890 = vmatpush.msrb.mxu3 %v3621_v39  ;;  %v3686_v34 = vld [vmem:[%s7385_s2 + $0x5d0] sm:$0xff]  ;;  %v3684_v39 = vld [vmem:[%s7385_s2 + $0x5c0] sm:$0xff] }
 0x111   :  { %v4943_v47 = vpop.f32.mrf.mxu0  ;;  %826 = vmatpush.msrb.mxu1 %v3619_v37  ;;  %891 = vmatpush.msrb.mxu3 %v3618_v42  ;;  %v3691_v37 = vld [vmem:[%s7385_s2 + $0x5f8] sm:$0xff]  ;;  %v3681_v42 = vld [vmem:[%s7385_s2 + $0x5a8] sm:$0xff] }
 0x113   :  { %827 = vmatpush.msrb.mxu1 %v3616_v40  ;;  %892 = vmatpush.msrb.mxu3 %v3615_v46  ;;  %v3688_v40 = vld [vmem:[%s7385_s2 + $0x5e0] sm:$0xff] }
 0x114   :  { %3676 = vmatmul.msk.f32.gmra.mxu0 %vm60_vm0, %v3671_v43  ;;  %v3613_v43 = vld [vmem:[%s7385_s2 + $0x450] sm:$0xff] }
 0x115   :  { %828 = vmatpush.msrb.mxu1 %v3613_v43  ;;  %893 = vmatpush.msrb.mxu3 %v3612_v50  ;;  %v3685_v43 = vld [vmem:[%s7385_s2 + $0x5c8] sm:$0xff] }
 0x116   :  { %v5211_v9 = vpop.f32.mrf.mxu2  ;;  %v5220_v16 = vpop.f32.mrf.mxu3 }
 0x117   :  { %829 = vmatpush.msrb.mxu1 %v3610_v48  ;;  %v3682_v48 = vld [vmem:[%s7385_s2 + $0x5b0] sm:$0xff] }
 0x119   :  { %v4982_v60 = vpop.f32.mrf.mxu0 }
 0x11c   :  { %3677 = vmatmul.msk.f32.gmra.mxu0 %vm60_vm0, %v3672_v61  ;;  %v3717_v61 = vld [vmem:[%s7385_s2 + $0x6c8] sm:$0xff] }
 0x11e   :  { %v5258_v30 = vpop.f32.mrf.mxu2 }
 0x121   :  { %v4988_v62 = vpop.f32.mrf.mxu0 }
 0x124   :  { %3678 = vmatmul.msk.f32.gmra.mxu0 %vm60_vm0, %v3673_v63  ;;  %v3718_v63 = vld [vmem:[%s7385_s2 + $0x6d0] sm:$0xff] }
 0x126   :  { %v5298_v44 = vpop.f32.mrf.mxu2 }
 0x129   :  { %v5015_v3 = vpop.f32.mrf.mxu0 }
 0x12c   :  { %3679 = vmatmul.msk.f32.gmra.mxu0 %vm60_vm0, %v3674_v2  ;;  %v3707_v2 = vld [vmem:[%s7385_s2 + $0x678] sm:$0xff] }
 0x12e   :  { %v5308_v49 = vpop.f32.mrf.mxu2 }
 0x131   :  { %v5054_v20 = vpop.f32.mrf.mxu0 }
 0x139   :  { %v513_v33 = vpop.f32.mrf.mxu0 }
 0x13a   :  { %3585 = vmatmul.msk.f32.vlgmr.msra.gmra.mxu1 %vm252_vm1, %v513_v33  ;;  %3590 = vmatmul.msk.f32.vlgmr.msra.gmra.mxu2 %vm252_vm1, %v513_v33 }
 0x13b   :  { %3595 = vmatmul.msk.f32.vlgmr.msra.gmra.mxu3 %vm252_vm1, %v513_v33  ;;  %1040 = vmatpush.msra.mxu1 %v3722_v52  ;;  %v5266_v33 = vpop.f32.mrf.mxu3 }
 0x13c   :  { %1072 = vmatpush.msra.mxu2 %v3723_v53  ;;  %1104 = vmatpush.msra.mxu3 %v3724_v54  ;;  %v5317_v53 = vpop.f32.mrf.mxu2 }
 0x13d   :  { %1041 = vmatpush.msra.mxu1 %v3719_v55  ;;  %v5322_v55 = vpop.f32.mrf.mxu1 }
 0x13e   :  { %1073 = vmatpush.msra.mxu2 %v3720_v56  ;;  %1105 = vmatpush.msra.mxu3 %v3721_v57 }
 0x13f   :  { %1042 = vmatpush.msra.mxu1 %v3716_v59 }
 0x140   :  { %1074 = vmatpush.msra.mxu2 %v3717_v61  ;;  %1106 = vmatpush.msra.mxu3 %v3718_v63 }
 0x141   :  { %v516_v45 = vpop.f32.mrf.mxu0  ;;  %1043 = vmatpush.msra.mxu1 %v3713_v10 }
 0x142   :  { %3586 = vmatmul.msk.f32.gmra.mxu1 %vm252_vm1, %v516_v45  ;;  %3591 = vmatmul.msk.f32.gmra.mxu2 %vm252_vm1, %v516_v45 }
 0x143   :  { %3596 = vmatmul.msk.f32.gmra.mxu3 %vm252_vm1, %v516_v45  ;;  %1075 = vmatpush.msra.mxu2 %v3714_v11  ;;  %v5300_v45 = vpop.f32.mrf.mxu3 }
 0x144   :  { %1107 = vmatpush.msra.mxu3 %v3715_v12  ;;  %1044 = vmatpush.msra.mxu1 %v3710_v13  ;;  %v5327_v57 = vpop.f32.mrf.mxu2 }
 0x145   :  { %1076 = vmatpush.msra.mxu2 %v3711_v0  ;;  %v5331_v59 = vpop.f32.mrf.mxu1 }
 0x146   :  { %1108 = vmatpush.msra.mxu3 %v3712_v1  ;;  %1045 = vmatpush.msra.mxu1 %v3707_v2 }
 0x147   :  { %1077 = vmatpush.msra.mxu2 %v3708_v4 }
 0x148   :  { %1109 = vmatpush.msra.mxu3 %v3709_v6  ;;  %1046 = vmatpush.msra.mxu1 %v3704_v7 }
 0x149   :  { %v519_v51 = vpop.f32.mrf.mxu0  ;;  %1078 = vmatpush.msra.mxu2 %v3705_v8 }
 0x14a   :  { %3587 = vmatmul.msk.f32.gmra.mxu1 %vm252_vm1, %v519_v51  ;;  %3592 = vmatmul.msk.f32.gmra.mxu2 %vm252_vm1, %v519_v51 }
 0x14b   :  { %3597 = vmatmul.msk.f32.gmra.mxu3 %vm252_vm1, %v519_v51  ;;  %1047 = vmatpush.msra.mxu1 %v3701_v15  ;;  %v5310_v51 = vpop.f32.mrf.mxu3 }
 0x14c   :  { %1110 = vmatpush.msra.mxu3 %v3706_v14  ;;  %1079 = vmatpush.msra.mxu2 %v3702_v17  ;;  %v5336_v63 = vpop.f32.mrf.mxu2 }
 0x14d   :  { %1048 = vmatpush.msra.mxu1 %v3698_v19  ;;  %v402_v12 = vpop.f32.mrf.mxu1 }
 0x14e   :  { %1111 = vmatpush.msra.mxu3 %v3703_v18  ;;  %1080 = vmatpush.msra.mxu2 %v3699_v21 }
 0x14f   :  { %1049 = vmatpush.msra.mxu1 %v3695_v22 }
 0x150   :  { %1112 = vmatpush.msra.mxu3 %v3700_v24  ;;  %1081 = vmatpush.msra.mxu2 %v3696_v25 }
 0x151   :  { %v522_v58 = vpop.f32.mrf.mxu0  ;;  %1050 = vmatpush.msra.mxu1 %v3692_v26 }
 0x152   :  { %3588 = vmatmul.msk.f32.gmra.mxu1 %vm252_vm1, %v522_v58  ;;  %3593 = vmatmul.msk.f32.gmra.mxu2 %vm252_vm1, %v522_v58 }
 0x153   :  { %3598 = vmatmul.msk.f32.gmra.mxu3 %vm252_vm1, %v522_v58  ;;  %1082 = vmatpush.msra.mxu2 %v3693_v28  ;;  %v5320_v54 = vpop.f32.mrf.mxu3 }
 0x154   :  { %1113 = vmatpush.msra.mxu3 %v3697_v27  ;;  %1051 = vmatpush.msra.mxu1 %v3689_v29  ;;  %v5343_v13 = vpop.f32.mrf.mxu2 }
 0x155   :  { %1083 = vmatpush.msra.mxu2 %v3690_v32  ;;  %v405_v2 = vpop.f32.mrf.mxu1 }
 0x156   :  { %1114 = vmatpush.msra.mxu3 %v3694_v31  ;;  %1052 = vmatpush.msra.mxu1 %v3686_v34 }
 0x157   :  { %1084 = vmatpush.msra.mxu2 %v3687_v35 }
 0x158   :  { %1115 = vmatpush.msra.mxu3 %v3691_v37  ;;  %1053 = vmatpush.msra.mxu1 %v3683_v38 }
 0x159   :  { %v525_v5 = vpop.f32.mrf.mxu0  ;;  %1085 = vmatpush.msra.mxu2 %v3684_v39 }
 0x15a   :  { %3589 = vmatmul.msk.f32.gmra.mxu1 %vm252_vm1, %v525_v5  ;;  %3594 = vmatmul.msk.f32.gmra.mxu2 %vm252_vm1, %v525_v5 }
 0x15b   :  { %3599 = vmatmul.msk.f32.gmra.mxu3 %vm252_vm1, %v525_v5  ;;  %1054 = vmatpush.msra.mxu1 %v3680_v41  ;;  %v5329_v58 = vpop.f32.mrf.mxu3 }
 0x15c   :  { %1116 = vmatpush.msra.mxu3 %v3688_v40  ;;  %1086 = vmatpush.msra.mxu2 %v3681_v42  ;;  %v437_v5 = vpop.f32.mrf.mxu2 }
 0x15d   :  { %v408_v7 = vpop.f32.mrf.mxu1 }
 0x15e   :  { %1117 = vmatpush.msra.mxu3 %v3685_v43 }
 0x160   :  { %1118 = vmatpush.msra.mxu3 %v3682_v48 }
 0x161   :  { %v738_v23 = vpop.f32.mrf.mxu0 }
 0x162   :  { %3655 = vmatmul.msk.f32.vlgmr.msrb.gmra.mxu1 %vm252_vm1, %v738_v23  ;;  %3660 = vmatmul.msk.f32.vlgmr.msrb.gmra.mxu2 %vm252_vm1, %v738_v23 }
 0x163   :  { %3665 = vmatmul.msk.f32.vlgmr.msrb.gmra.mxu3 %vm252_vm1, %v738_v23  ;;  %v5338_v10 = vpop.f32.mrf.mxu3 }
 0x164   :  { %v440_v8 = vpop.f32.mrf.mxu2 }
 0x169   :  { %v741_v36 = vpop.f32.mrf.mxu0 }
 0x16a   :  { %3656 = vmatmul.msk.f32.gmra.mxu1 %vm252_vm1, %v741_v36  ;;  %3661 = vmatmul.msk.f32.gmra.mxu2 %vm252_vm1, %v741_v36 }
 0x16b   :  { %3666 = vmatmul.msk.f32.gmra.mxu3 %vm252_vm1, %v741_v36  ;;  %v5345_v1 = vpop.f32.mrf.mxu3 }
 0x171   :  { %v744_v46 = vpop.f32.mrf.mxu0 }
 0x172   :  { %3657 = vmatmul.msk.f32.gmra.mxu1 %vm252_vm1, %v744_v46  ;;  %3662 = vmatmul.msk.f32.gmra.mxu2 %vm252_vm1, %v744_v46 }
 0x173   :  { %3667 = vmatmul.msk.f32.gmra.mxu3 %vm252_vm1, %v744_v46  ;;  %v469_v6 = vpop.f32.mrf.mxu3 }
 0x179   :  { %v747_v50 = vpop.f32.mrf.mxu0 }
 0x17a   :  { %3658 = vmatmul.msk.f32.gmra.mxu1 %vm252_vm1, %v747_v50  ;;  %3663 = vmatmul.msk.f32.gmra.mxu2 %vm252_vm1, %v747_v50 }
 0x17b   :  { %3668 = vmatmul.msk.f32.gmra.mxu3 %vm252_vm1, %v747_v50  ;;  %v472_v14 = vpop.f32.mrf.mxu3 }
 0x181   :  { %v750_v52 = vpop.f32.mrf.mxu0 }
 0x182   :  { %3659 = vmatmul.msk.f32.gmra.mxu1 %vm252_vm1, %v750_v52  ;;  %3664 = vmatmul.msk.f32.gmra.mxu2 %vm252_vm1, %v750_v52 }
 0x183   :  { %3669 = vmatmul.msk.f32.gmra.mxu3 %vm252_vm1, %v750_v52 }
 0x189   :  { %v963_v56 = vpop.f32.mrf.mxu0 }
 0x18a   :  { %3725 = vmatmul.msk.f32.vlgmr.msra.gmra.mxu1 %vm252_vm1, %v963_v56  ;;  %3730 = vmatmul.msk.f32.vlgmr.msra.gmra.mxu2 %vm252_vm1, %v963_v56 }
 0x18b   :  { %3735 = vmatmul.msk.f32.vlgmr.msra.gmra.mxu3 %vm252_vm1, %v963_v56 }
 0x191   :  { %v966_v61 = vpop.f32.mrf.mxu0 }
 0x192   :  { %3726 = vmatmul.msk.f32.gmra.mxu1 %vm252_vm1, %v966_v61  ;;  %3731 = vmatmul.msk.f32.gmra.mxu2 %vm252_vm1, %v966_v61 }
 0x193   :  { %3736 = vmatmul.msk.f32.gmra.mxu3 %vm252_vm1, %v966_v61 }
 0x199   :  { %v969_v11 = vpop.f32.mrf.mxu0 }
 0x19a   :  { %3727 = vmatmul.msk.f32.gmra.mxu1 %vm252_vm1, %v969_v11  ;;  %3732 = vmatmul.msk.f32.gmra.mxu2 %vm252_vm1, %v969_v11 }
 0x19b   :  { %3737 = vmatmul.msk.f32.gmra.mxu3 %vm252_vm1, %v969_v11 }
 0x1a1   :  { %v972_v0 = vpop.f32.mrf.mxu0 }
 0x1a2   :  { %3728 = vmatmul.msk.f32.gmra.mxu1 %vm252_vm1, %v972_v0  ;;  %3733 = vmatmul.msk.f32.gmra.mxu2 %vm252_vm1, %v972_v0 }
 0x1a3   :  { %3738 = vmatmul.msk.f32.gmra.mxu3 %vm252_vm1, %v972_v0 }
 0x1a9   :  { %v975_v4 = vpop.f32.mrf.mxu0 }
 0x1aa   :  { %3729 = vmatmul.msk.f32.gmra.mxu1 %vm252_vm1, %v975_v4  ;;  %3734 = vmatmul.msk.f32.gmra.mxu2 %vm252_vm1, %v975_v4 }
 0x1ab   :  { %3739 = vmatmul.msk.f32.gmra.mxu3 %vm252_vm1, %v975_v4 }
 0x1b7   :  { %v606_v15 = vpop.f32.mrf.mxu1 }
 0x1bd   :  { %v638_v17 = vpop.f32.mrf.mxu2 }
 0x1be   :  { %v670_v18 = vpop.f32.mrf.mxu3 }
 0x1bf   :  { %v609_v19 = vpop.f32.mrf.mxu1 }
 0x1c5   :  { %v641_v21 = vpop.f32.mrf.mxu2 }
 0x1c6   :  { %v673_v22 = vpop.f32.mrf.mxu3 }
 0x1c7   :  { %v612_v23 = vpop.f32.mrf.mxu1 }
 0x1cd   :  { %v5353_v24 = vpop.f32.mrf.mxu2 }
 0x1ce   :  { %v5355_v25 = vpop.f32.mrf.mxu3 }
 0x1cf   :  { %v615_v26 = vpop.f32.mrf.mxu1 }
 0x1d5   :  { %v5357_v27 = vpop.f32.mrf.mxu2 }
 0x1d6   :  { %v5359_v28 = vpop.f32.mrf.mxu3 }
 0x1d7   :  { %v618_v29 = vpop.f32.mrf.mxu1 }
 0x1dd   :  { %v5361_v31 = vpop.f32.mrf.mxu2 }
 0x1de   :  { %v5363_v32 = vpop.f32.mrf.mxu3 }
 0x1df   :  { %v5365_v34 = vpop.f32.mrf.mxu1 }
 0x1e5   :  { %v5367_v35 = vpop.f32.mrf.mxu2 }
 0x1e6   :  { %7397 = vst [vmem:[#allocation5_spill] sm:$0xff] %v5367_v35  ;;  %v5369_v36 = vpop.f32.mrf.mxu3 }
 0x1e7   :  { %7398 = vst [vmem:[#allocation6_spill] sm:$0xff] %v5369_v36  ;;  %v834_v37 = vpop.f32.mrf.mxu1 }
 0x1ed   :  { %v5371_v38 = vpop.f32.mrf.mxu2 }
 0x1ee   :  { %7399 = vst [vmem:[#allocation7_spill] sm:$0xff] %v5371_v38  ;;  %v5373_v39 = vpop.f32.mrf.mxu3 }
 0x1ef   :  { %7400 = vst [vmem:[#allocation8_spill] sm:$0xff] %v5373_v39  ;;  %v837_v40 = vpop.f32.mrf.mxu1 }
 0x1f5   :  { %v5375_v41 = vpop.f32.mrf.mxu2 }
 0x1f6   :  { %7401 = vst [vmem:[#allocation9_spill] sm:$0xff] %v5375_v41  ;;  %v5377_v42 = vpop.f32.mrf.mxu3 }
 0x1f7   :  { %7402 = vst [vmem:[#allocation10_spill] sm:$0xff] %v5377_v42  ;;  %v840_v43 = vpop.f32.mrf.mxu1 }
 0x1fd   :  { %v872_v46 = vpop.f32.mrf.mxu2 }
 0x1fe   :  { %v904_v48 = vpop.f32.mrf.mxu3 }
 0x1ff   :  { %v843_v50 = vpop.f32.mrf.mxu1 }
 0x205   :  { %v5379_v52 = vpop.f32.mrf.mxu2 }
 0x206   :  { %7403 = vst [vmem:[#allocation11_spill] sm:$0xff] %v5379_v52  ;;  %v5381_v56 = vpop.f32.mrf.mxu3  ;;  %v397_v52 = vadd.f32 %v5322_v55, %v5211_v9  ;;  %v464_v9 = vadd.f32 %v5338_v10, %v4982_v60  ;;  %v441_v55 = vadd.f32 %v440_v8, %v5320_v54 }
 0x207   :  { %7404 = vst [vmem:[#allocation12_spill] sm:$0xff] %v5381_v56  ;;  %v1056_v61 = vpop.f32.mrf.mxu1  ;;  %v400_v56 = vadd.f32 %v5331_v59, %v5258_v30  ;;  %v435_v30 = vadd.f32 %v5343_v13, %v5300_v45 }
 0x209   :  { %v688_v10 = vadd.f32 %v609_v19, %v400_v56 }
 0x20b   :  { %v913_v8 = vadd.f32 %v834_v37, %v688_v10 }
 0x20d   :  { %v5383_v11 = vpop.f32.mrf.mxu2 }
 0x20e   :  { %7405 = vst [vmem:[#allocation13_spill] sm:$0xff] %v5383_v11  ;;  %v5385_v0 = vpop.f32.mrf.mxu3  ;;  %v403_v11 = vadd.f32 %v402_v12, %v5298_v44  ;;  %v467_v44 = vadd.f32 %v5345_v1, %v4988_v62  ;;  %v1150_v62 = vld [vmem:[%s7386_s3] sm:$0x7] }
 0x20f   :  { %7406 = vst [vmem:[#allocation14_spill] sm:$0xff] %v5385_v0  ;;  %v1059_v4 = vpop.f32.mrf.mxu1  ;;  %v406_v0 = vadd.f32 %v405_v2, %v5308_v49 }
 0x210   :  { %v693_v2 = vadd.f32 %v5355_v25, %v467_v44 }
 0x211   :  { %v694_v49 = vadd.f32 %v615_v26, %v406_v0  ;;  %v1138_v26 = vadd.f32 %v1059_v4, %v913_v8 }
 0x213   :  { %v919_v59 = vadd.f32 %v840_v43, %v694_v49 }
 0x215   :  { %v5387_v36 = vpop.f32.mrf.mxu2 }
 0x216   :  { %7407 = vst [vmem:[#allocation15_spill] sm:$0xff] %v5387_v36  ;;  %v5389_v35 = vpop.f32.mrf.mxu3  ;;  %v409_v36 = vadd.f32 %v408_v7, %v5317_v53  ;;  %v438_v53 = vadd.f32 %v437_v5, %v5310_v51  ;;  %v690_v51 = vadd.f32 %v673_v22, %v464_v9  ;;  %v7411_v22 = vld [vmem:[#allocation7_spill] sm:$0xff]  ;;  %v1154_v9 = vperm.slane %v1150_v62, 2 }
 0x217   :  { %7408 = vst [vmem:[#allocation16_spill] sm:$0xff] %v5389_v35  ;;  %v1062_v41 = vpop.f32.mrf.mxu1  ;;  %v429_v35 = vadd.f32 %v5327_v57, %v5220_v16  ;;  %v470_v16 = vadd.f32 %v469_v6, %v5015_v3  ;;  %v685_v57 = vadd.f32 %v606_v15, %v397_v52  ;;  %v7416_v52 = vld [vmem:[#allocation10_spill] sm:$0xff] }
 0x218   :  { %v695_v5 = vadd.f32 %v5357_v27, %v438_v53  ;;  %v918_v56 = vadd.f32 %v7416_v52, %v693_v2  ;;  %v3810_v52 = vld [vmem:[%s7388_s5 + $0x3d0] sm:$0xff] }
 0x219   :  { %v686_v60 = vadd.f32 %v638_v17, %v429_v35  ;;  %v696_v6 = vadd.f32 %v5359_v28, %v470_v16  ;;  %v1153_v28 = vperm.slane %v1150_v62, 1 }
 0x21b   :  { %v921_v27 = vadd.f32 %v904_v48, %v696_v6 }
 0x21d   :  { %v5391_v42 = vpop.f32.mrf.mxu2 }
 0x21e   :  { %7409 = vst [vmem:[#allocation17_spill] sm:$0xff] %v5391_v42  ;;  %v5393_v39 = vpop.f32.mrf.mxu3  ;;  %v461_v42 = vadd.f32 %v5329_v58, %v4943_v47  ;;  %v473_v47 = vadd.f32 %v472_v14, %v5054_v20  ;;  %v697_v58 = vadd.f32 %v618_v29, %v409_v36  ;;  %v692_v20 = vadd.f32 %v5353_v24, %v435_v30  ;;  %v7412_v36 = vld [vmem:[#allocation11_spill] sm:$0xff] }
 0x21f   :  { %7410 = vst [vmem:[#allocation18_spill] sm:$0xff] %v5393_v39  ;;  %v1065_v38 = vpop.f32.mrf.mxu1  ;;  %v432_v39 = vadd.f32 %v5336_v63, %v5266_v33  ;;  %v691_v33 = vadd.f32 %v612_v23, %v403_v11  ;;  %v1152_v14 = vperm.slane %v1150_v62, 0  ;;  %v920_v24 = vadd.f32 %v872_v46, %v695_v5  ;;  %v7421_v62 = vld [vmem:[#allocation6_spill] sm:$0xff] }
 0x220   :  { %v687_v63 = vadd.f32 %v670_v18, %v461_v42  ;;  %v922_v3 = vadd.f32 %v843_v50, %v697_v58  ;;  %v1144_v1 = vadd.f32 %v1065_v38, %v919_v59  ;;  %v698_v18 = vadd.f32 %v5361_v31, %v441_v55  ;;  %v7413_v31 = vld [vmem:[#allocation8_spill] sm:$0xff]  ;;  %v7420_v59 = vld [vmem:[#allocation15_spill] sm:$0xff] }
 0x221   :  { %v689_v45 = vadd.f32 %v641_v21, %v432_v39  ;;  %v916_v13 = vadd.f32 %v837_v40, %v691_v33  ;;  %v699_v19 = vadd.f32 %v5363_v32, %v473_v47  ;;  %v910_v21 = vadd.f32 %v5365_v34, %v685_v57  ;;  %v7415_v42 = vld [vmem:[#allocation12_spill] sm:$0xff]  ;;  %v7419_v33 = vld [vmem:[#allocation5_spill] sm:$0xff] }
 0x222   :  { %v1167_v25 = vadd.f32 %v1152_v14, %v1144_v1  ;;  %v923_v37 = vadd.f32 %v7412_v36, %v698_v18  ;;  %v915_v32 = vadd.f32 %v7413_v31, %v690_v51  ;;  %v1161_v48 = vadd.f32 %v1152_v14, %v1138_v26  ;;  %v1188_v18 = vld [vmem:[%s7387_s4] sm:$0xff]  ;;  %v1189_v36 = vld [vmem:[%s7387_s4 + $0x8] sm:$0x3f] }
 0x223   :  { %v1141_v15 = vadd.f32 %v1062_v41, %v916_v13  ;;  %v914_v23 = vadd.f32 %v7411_v22, %v689_v45  ;;  %v1135_v35 = vadd.f32 %v1056_v61, %v910_v21  ;;  %v7414_v41 = vld [vmem:[#allocation9_spill] sm:$0xff]  ;;  %v924_v43 = vadd.f32 %v7415_v42, %v699_v19  ;;  %v5480_v19 = vld [vmem:[%s7387_s4 + $0x10] sm:$0xff] }
 0x224   :  { %v917_v34 = vadd.f32 %v7414_v41, %v692_v20  ;;  %v5436_v61 = vmax.f32 %v1167_v25, 0.0  ;;  %v911_v58 = vadd.f32 %v7419_v33, %v686_v60  ;;  %v912_v51 = vadd.f32 %v7421_v62, %v687_v63  ;;  %v7423_v20 = vld [vmem:[#allocation13_spill] sm:$0xff]  ;;  %v3814_v41 = vld [vmem:[%s7388_s5 + $0x3f0] sm:$0xff]  ;;  %v3775_v62 = vld [vmem:[%s7388_s5 + $0x2b8] sm:$0xff] }
 0x225   :  { %v1097_v12 = vpop.f32.mrf.mxu2  ;;  %v1164_v38 = vadd.f32 %v1152_v14, %v1141_v15  ;;  %v1158_v4 = vadd.f32 %v1152_v14, %v1135_v35  ;;  %v7417_v30 = vld [vmem:[#allocation17_spill] sm:$0xff]  ;;  %v1139_v10 = vadd.f32 %v7420_v59, %v914_v23  ;;  %v5451_v13 = vmax.f32 %v1161_v48, 0.0  ;;  %v3822_v35 = vld [vmem:[%s7388_s5 + $0x430] sm:$0xff] }
 0x226   :  { %v1129_v54 = vpop.f32.mrf.mxu3  ;;  %v1145_v39 = vadd.f32 %v1097_v12, %v920_v24  ;;  %v1142_v44 = vadd.f32 %v7417_v30, %v917_v34  ;;  %v7418_v16 = vld [vmem:[#allocation18_spill] sm:$0xff]  ;;  %v1136_v2 = vadd.f32 %v7423_v20, %v911_v58  ;;  %v3816_v31 = vld [vmem:[%s7388_s5 + $0x400] sm:$0xff] }
 0x227   :  { %v1068_v7 = vpop.f32.mrf.mxu1  ;;  %v1146_v46 = vadd.f32 %v1129_v54, %v921_v27  ;;  %v5443_v53 = vmax.f32 %v1164_v38, 0.0  ;;  %v1143_v55 = vadd.f32 %v7418_v16, %v918_v56  ;;  %v5461_v6 = vmax.f32 %v1158_v4, 0.0  ;;  %v3820_v38 = vld [vmem:[%s7388_s5 + $0x420] sm:$0xff]  ;;  %v3789_v34 = vld [vmem:[%s7388_s5 + $0x328] sm:$0xff]  ;;  %v3790_v42 = vld [vmem:[%s7388_s5 + $0x330] sm:$0xff] }
 0x228   :  { %v1147_v17 = vadd.f32 %v1068_v7, %v922_v3  ;;  %v1168_v47 = vadd.f32 %v1153_v28, %v1145_v39  ;;  %v7422_v3 = vld [vmem:[#allocation16_spill] sm:$0xff]  ;;  %v1165_v5 = vadd.f32 %v1153_v28, %v1142_v44  ;;  %v7424_v7 = vld [vmem:[#allocation14_spill] sm:$0xff]  ;;  %v1162_v15 = vadd.f32 %v1153_v28, %v1139_v10 }
 0x229   :  { %v1169_v45 = vadd.f32 %v1154_v9, %v1146_v46  ;;  %v1140_v1 = vadd.f32 %v7422_v3, %v915_v32  ;;  %v1137_v8 = vadd.f32 %v7424_v7, %v912_v51  ;;  %v1166_v63 = vadd.f32 %v1154_v9, %v1143_v55  ;;  %v3818_v39 = vld [vmem:[%s7388_s5 + $0x410] sm:$0xff]  ;;  %v3791_v32 = vld [vmem:[%s7388_s5 + $0x338] sm:$0xff]  ;;  %v3788_v46 = vld [vmem:[%s7388_s5 + $0x320] sm:$0xff] }
 0x22a   :  { %v1170_v29 = vadd.f32 %v1152_v14, %v1147_v17  ;;  %v5464_v14 = vmax.f32 %v1168_v47, 0.0  ;;  %v1159_v22 = vadd.f32 %v1153_v28, %v1136_v2  ;;  %v5484_v23 = vmax.f32 %v1165_v5, 0.0  ;;  %v3786_v56 = vld [vmem:[%s7388_s5 + $0x310] sm:$0xff]  ;;  %v3785_v48 = vld [vmem:[%s7388_s5 + $0x308] sm:$0xff]  ;;  %v3783_v4 = vld [vmem:[%s7388_s5 + $0x2f8] sm:$0xff] }
 0x22b   :  { %v5469_v17 = vmax.f32 %v1169_v45, 0.0  ;;  %v1163_v21 = vadd.f32 %v1154_v9, %v1140_v1  ;;  %v1160_v24 = vadd.f32 %v1154_v9, %v1137_v8  ;;  %v5488_v26 = vmax.f32 %v1166_v63, 0.0  ;;  %v3782_v30 = vld [vmem:[%s7388_s5 + $0x2f0] sm:$0xff]  ;;  %v3781_v44 = vld [vmem:[%s7388_s5 + $0x2e8] sm:$0xff]  ;;  %v3780_v55 = vld [vmem:[%s7388_s5 + $0x2e0] sm:$0xff] }
 0x22c   :  { %v5430_v40 = vmax.f32 %v1170_v29, 0.0  ;;  %v5493_v25 = vmax.f32 %v1162_v15, 0.0  ;;  %v5501_v27 = vmax.f32 %v1159_v22, 0.0  ;;  %v3830_v16 = vld [vmem:[%s7388_s5 + $0x470] sm:$0xff]  ;;  %v3779_v47 = vld [vmem:[%s7388_s5 + $0x2d8] sm:$0xff]  ;;  %v3828_v33 = vld [vmem:[%s7388_s5 + $0x460] sm:$0xff] }
 0x22d   :  { %v1100_v50 = vpop.f32.mrf.mxu2  ;;  %v5498_v29 = vmax.f32 %v1163_v21, 0.0  ;;  %v3778_v58 = vld [vmem:[%s7388_s5 + $0x2d0] sm:$0xff]  ;;  %v3777_v59 = vld [vmem:[%s7388_s5 + $0x2c8] sm:$0xff]  ;;  %v3800_v10 = vld [vmem:[%s7388_s5 + $0x380] sm:$0xff] }
 0x22e   :  { %v1148_v11 = vadd.f32 %v1100_v50, %v923_v37  ;;  %v1132_v0 = vpop.f32.mrf.mxu3  ;;  %3740 = vmatpush.msk.msrb.mxu0 %vm1197_vm2, %v5430_v40  ;;  %3751 = vmatpush.msk.msrb.mxu3 %vm1197_vm2, %v5430_v40  ;;  %v5519_v37 = vld [vmem:[%s7387_s4 + $0x18] sm:$0x3f]  ;;  %v3826_v45 = vld [vmem:[%s7388_s5 + $0x450] sm:$0xff]  ;;  %v3824_v3 = vld [vmem:[%s7388_s5 + $0x440] sm:$0xff] }
 0x22f   :  { %v1149_v49 = vadd.f32 %v1132_v0, %v924_v43  ;;  %v3812_v43 = vld [vmem:[%s7388_s5 + $0x3e0] sm:$0xff]  ;;  %v3787_v50 = vld [vmem:[%s7388_s5 + $0x318] sm:$0xff]  ;;  %v3798_v51 = vld [vmem:[%s7388_s5 + $0x370] sm:$0xff] }
 0x230   :  { %v1171_v57 = vadd.f32 %v1153_v28, %v1148_v11  ;;  %1219 = vmatpush.msrb.mxu0 %v5436_v61  ;;  %1369 = vmatpush.msrb.mxu3 %v5436_v61  ;;  %v5508_v28 = vmax.f32 %v1160_v24, 0.0  ;;  %v3808_v11 = vld [vmem:[%s7388_s5 + $0x3c0] sm:$0xff]  ;;  %v3774_v1 = vld [vmem:[%s7388_s5 + $0x2b0] sm:$0xff]  ;;  %v3773_v20 = vld [vmem:[%s7388_s5 + $0x2a8] sm:$0xff] }
 0x231   :  { %v1172_v12 = vadd.f32 %v1154_v9, %v1149_v49  ;;  %v3784_v0 = vld [vmem:[%s7388_s5 + $0x300] sm:$0xff]  ;;  %v3806_v9 = vld [vmem:[%s7388_s5 + $0x3b0] sm:$0xff]  ;;  %v3823_v5 = vld [vmem:[%s7388_s5 + $0x438] sm:$0xff] }
 0x232   :  { %v5454_v54 = vmax.f32 %v1171_v57, 0.0  ;;  %1220 = vmatpush.msrb.mxu0 %v5443_v53  ;;  %1370 = vmatpush.msrb.mxu3 %v5443_v53  ;;  %v3804_v49 = vld [vmem:[%s7388_s5 + $0x3a0] sm:$0xff]  ;;  %v3802_v57 = vld [vmem:[%s7388_s5 + $0x390] sm:$0xff]  ;;  %v3771_v8 = vld [vmem:[%s7388_s5 + $0x298] sm:$0xff] }
 0x233   :  { %v5459_v60 = vmax.f32 %v1172_v12, 0.0  ;;  %v3776_v12 = vld [vmem:[%s7388_s5 + $0x2c0] sm:$0xff]  ;;  %v3794_v63 = vld [vmem:[%s7388_s5 + $0x350] sm:$0xff]  ;;  %v3821_v15 = vld [vmem:[%s7388_s5 + $0x428] sm:$0xff] }
 0x234   :  { %1221 = vmatpush.msrb.mxu0 %v5451_v13  ;;  %3743 = vmatpush.msk.msrb.mxu1 %vm1197_vm2, %v5454_v54  ;;  %v3796_v2 = vld [vmem:[%s7388_s5 + $0x360] sm:$0xff]  ;;  %v1306_v22 = vld [vmem:[%s7388_s5 + $0xf0] sm:$0xff]  ;;  %v3819_v24 = vld [vmem:[%s7388_s5 + $0x418] sm:$0xff] }
 0x235   :  { %3746 = vmatpush.msk.msrb.mxu2 %vm1197_vm2, %v5459_v60  ;;  %1371 = vmatpush.msrb.mxu3 %v5451_v13  ;;  %v3772_v7 = vld [vmem:[%s7388_s5 + $0x2a0] sm:$0xff] }
 0x236   :  { %1222 = vmatpush.msrb.mxu0 %v5461_v6  ;;  %1242 = vmatpush.msrb.mxu1 %v5464_v14  ;;  %v3792_v21 = vld [vmem:[%s7388_s5 + $0x340] sm:$0xff] }
 0x237   :  { %1265 = vmatpush.msrb.mxu2 %v5469_v17  ;;  %1372 = vmatpush.msrb.mxu3 %v5461_v6 }
 0x238   :  { %3741 = vmatmul.msk.f32.vlgmr.msrb.gmra.mxu0 %vm1190_vm3, %v1188_v18  ;;  %3752 = vmatmul.msk.f32.vlgmr.msrb.gmra.mxu3 %vm1190_vm3, %v5480_v19 }
 0x239   :  { %3754 = vmatpush.msk.msra.mxu0 %vm1197_vm2, %v5454_v54  ;;  %1243 = vmatpush.msrb.mxu1 %v5484_v23 }
 0x23a   :  { %1266 = vmatpush.msrb.mxu2 %v5488_v26  ;;  %1529 = vmatpush.msra.mxu3 %v3822_v35  ;;  %v3767_v35 = vld [vmem:[%s7388_s5 + $0x278] sm:$0xff] }
 0x23b   :  { %1392 = vmatpush.msra.mxu0 %v5464_v14  ;;  %1244 = vmatpush.msrb.mxu1 %v5493_v25 }
 0x23c   :  { %1267 = vmatpush.msrb.mxu2 %v5498_v29  ;;  %1530 = vmatpush.msra.mxu3 %v3820_v38  ;;  %v3817_v38 = vld [vmem:[%s7388_s5 + $0x408] sm:$0xff] }
 0x23d   :  { %1393 = vmatpush.msra.mxu0 %v5484_v23  ;;  %1245 = vmatpush.msrb.mxu1 %v5501_v27 }
 0x23e   :  { %1268 = vmatpush.msrb.mxu2 %v5508_v28  ;;  %3744 = vmatmul.msk.f32.vlgmr.msrb.gmra.mxu1 %vm1190_vm3, %v1188_v18 }
 0x23f   :  { %1394 = vmatpush.msra.mxu0 %v5493_v25  ;;  %3757 = vmatpush.msk.msra.mxu1 %vm1197_vm2, %v5459_v60 }
 0x240   :  { %3742 = vmatmul.msk.f32.gmra.mxu0 %vm1190_vm3, %v1189_v36  ;;  %3753 = vmatmul.msk.f32.gmra.mxu3 %vm1190_vm3, %v5519_v37 }
 0x241   :  { %1395 = vmatpush.msra.mxu0 %v5501_v27  ;;  %1415 = vmatpush.msra.mxu1 %v5469_v17 }
 0x242   :  { %3747 = vmatmul.msk.f32.vlgmr.msrb.gmra.mxu2 %vm1190_vm3, %v1188_v18  ;;  %1531 = vmatpush.msra.mxu3 %v3818_v39  ;;  %v3770_v18 = vld [vmem:[%s7388_s5 + $0x290] sm:$0xff]  ;;  %v3765_v39 = vld [vmem:[%s7388_s5 + $0x268] sm:$0xff] }
 0x243   :  { %1416 = vmatpush.msra.mxu1 %v5488_v26  ;;  %1506 = vmatpush.msra.mxu2 %v3790_v42  ;;  %v1336_v42 = vld [vmem:[%s7388_s5 + $0x1e0] sm:$0xff] }
 0x244   :  { %1532 = vmatpush.msra.mxu3 %v3816_v31  ;;  %1564 = vmatpush.msrb.mxu0 %v3830_v16  ;;  %v1302_v31 = vld [vmem:[%s7388_s5 + $0xd0] sm:$0xff]  ;;  %v1300_v16 = vld [vmem:[%s7388_s5 + $0xc0] sm:$0xff] }
 0x245   :  { %1417 = vmatpush.msra.mxu1 %v5498_v29  ;;  %1507 = vmatpush.msra.mxu2 %v3788_v46  ;;  %v1332_v46 = vld [vmem:[%s7388_s5 + $0x1c0] sm:$0xff] }
 0x246   :  { %3745 = vmatmul.msk.f32.gmra.mxu1 %vm1190_vm3, %v1189_v36  ;;  %1533 = vmatpush.msra.mxu3 %v3814_v41  ;;  %v3761_v41 = vld [vmem:[%s7388_s5 + $0x248] sm:$0xff] }
 0x247   :  { %1418 = vmatpush.msra.mxu1 %v5508_v28  ;;  %1508 = vmatpush.msra.mxu2 %v3786_v56  ;;  %v1326_v56 = vld [vmem:[%s7388_s5 + $0x190] sm:$0xff] }
 0x248   :  { %3755 = vmatmul.msk.f32.vlgmr.msra.gmra.mxu0 %vm1190_vm3, %v5480_v19  ;;  %1534 = vmatpush.msra.mxu3 %v3812_v43  ;;  %v1334_v43 = vld [vmem:[%s7388_s5 + $0x1d0] sm:$0xff] }
 0x249   :  { %1575 = vmatpush.msrb.mxu1 %v3791_v32  ;;  %1509 = vmatpush.msra.mxu2 %v3784_v0  ;;  %v3763_v32 = vld [vmem:[%s7388_s5 + $0x258] sm:$0xff]  ;;  %v1320_v0 = vld [vmem:[%s7388_s5 + $0x160] sm:$0xff] }
 0x24a   :  { %3748 = vmatmul.msk.f32.gmra.mxu2 %vm1190_vm3, %v1189_v36  ;;  %1535 = vmatpush.msra.mxu3 %v3810_v52  ;;  %v3768_v36 = vld [vmem:[%s7388_s5 + $0x280] sm:$0xff] }
 0x24b   :  { %1576 = vmatpush.msrb.mxu1 %v3789_v34  ;;  %1510 = vmatpush.msra.mxu2 %v3782_v30  ;;  %v1338_v34 = vld [vmem:[%s7388_s5 + $0x1f0] sm:$0xff]  ;;  %v1328_v52 = vld [vmem:[%s7388_s5 + $0x1a0] sm:$0xff] }
 0x24c   :  { %1536 = vmatpush.msra.mxu3 %v3808_v11  ;;  %1565 = vmatpush.msrb.mxu0 %v3828_v33  ;;  %v1322_v11 = vld [vmem:[%s7388_s5 + $0x170] sm:$0xff] }
 0x24d   :  { %1577 = vmatpush.msrb.mxu1 %v3787_v50  ;;  %1511 = vmatpush.msra.mxu2 %v3780_v55  ;;  %v1330_v50 = vld [vmem:[%s7388_s5 + $0x1b0] sm:$0xff]  ;;  %v3764_v55 = vld [vmem:[%s7388_s5 + $0x260] sm:$0xff] }
 0x24e   :  { %3758 = vmatmul.msk.f32.vlgmr.msra.gmra.mxu1 %vm1190_vm3, %v5480_v19  ;;  %1537 = vmatpush.msra.mxu3 %v3806_v9  ;;  %v3769_v19 = vld [vmem:[%s7388_s5 + $0x288] sm:$0xff]  ;;  %v1316_v9 = vld [vmem:[%s7388_s5 + $0x140] sm:$0xff]  ;;  %v3766_v30 = vld [vmem:[%s7388_s5 + $0x270] sm:$0xff] }
 0x24f   :  { %1578 = vmatpush.msrb.mxu1 %v3785_v48  ;;  %1512 = vmatpush.msra.mxu2 %v3778_v58  ;;  %v1324_v48 = vld [vmem:[%s7388_s5 + $0x180] sm:$0xff]  ;;  %v1298_v33 = vld [vmem:[%s7388_s5 + $0xb0] sm:$0xff] }
 0x250   :  { %3756 = vmatmul.msk.f32.gmra.mxu0 %vm1190_vm3, %v5519_v37  ;;  %1538 = vmatpush.msra.mxu3 %v3804_v49  ;;  %v1314_v49 = vld [vmem:[%s7388_s5 + $0x130] sm:$0xff] }
 0x251   :  { %1579 = vmatpush.msrb.mxu1 %v3783_v4  ;;  %1566 = vmatpush.msrb.mxu0 %v3826_v45  ;;  %v1318_v4 = vld [vmem:[%s7388_s5 + $0x150] sm:$0xff]  ;;  %v1296_v45 = vld [vmem:[%s7388_s5 + $0xa0] sm:$0xff] }
 0x252   :  { %1539 = vmatpush.msra.mxu3 %v3802_v57  ;;  %1513 = vmatpush.msra.mxu2 %v3776_v12  ;;  %v1312_v57 = vld [vmem:[%s7388_s5 + $0x120] sm:$0xff]  ;;  %v3762_v58 = vld [vmem:[%s7388_s5 + $0x250] sm:$0xff] }
 0x253   :  { %1580 = vmatpush.msrb.mxu1 %v3781_v44  ;;  %1567 = vmatpush.msrb.mxu0 %v3824_v3  ;;  %v3815_v44 = vld [vmem:[%s7388_s5 + $0x3f8] sm:$0xff]  ;;  %v3760_v12 = vld [vmem:[%s7388_s5 + $0x240] sm:$0xff]  ;;  %v1294_v3 = vld [vmem:[%s7388_s5 + $0x90] sm:$0xff] }
 0x254   :  { %1540 = vmatpush.msra.mxu3 %v3800_v10  ;;  %1514 = vmatpush.msra.mxu2 %v3774_v1  ;;  %v1310_v10 = vld [vmem:[%s7388_s5 + $0x110] sm:$0xff]  ;;  %v3807_v1 = vld [vmem:[%s7388_s5 + $0x3b8] sm:$0xff] }
 0x255   :  { %1581 = vmatpush.msrb.mxu1 %v3779_v47  ;;  %1598 = vmatpush.msra.mxu0 %v3823_v5  ;;  %v3813_v47 = vld [vmem:[%s7388_s5 + $0x3e8] sm:$0xff] }
 0x256   :  { %3759 = vmatmul.msk.f32.gmra.mxu1 %vm1190_vm3, %v5519_v37  ;;  %1541 = vmatpush.msra.mxu3 %v3798_v51  ;;  %v1304_v37 = vld [vmem:[%s7388_s5 + $0xe0] sm:$0xff]  ;;  %v3805_v5 = vld [vmem:[%s7388_s5 + $0x3a8] sm:$0xff] }
 0x257   :  { %1582 = vmatpush.msrb.mxu1 %v3777_v59  ;;  %1515 = vmatpush.msra.mxu2 %v3772_v7  ;;  %v3811_v59 = vld [vmem:[%s7388_s5 + $0x3d8] sm:$0xff]  ;;  %v1308_v51 = vld [vmem:[%s7388_s5 + $0x100] sm:$0xff]  ;;  %v3829_v7 = vld [vmem:[%s7388_s5 + $0x468] sm:$0xff] }
 0x258   :  { %1542 = vmatpush.msra.mxu3 %v3796_v2  ;;  %1599 = vmatpush.msra.mxu0 %v3821_v15  ;;  %v1292_v2 = vld [vmem:[%s7388_s5 + $0x80] sm:$0xff]  ;;  %v3827_v15 = vld [vmem:[%s7388_s5 + $0x458] sm:$0xff] }
 0x259   :  { %1583 = vmatpush.msrb.mxu1 %v3775_v62  ;;  %1516 = vmatpush.msra.mxu2 %v3770_v18  ;;  %v3809_v62 = vld [vmem:[%s7388_s5 + $0x3c8] sm:$0xff]  ;;  %v1288_v18 = vld [vmem:[%s7388_s5 + $0x60] sm:$0xff] }
 0x25a   :  { %1543 = vmatpush.msra.mxu3 %v3794_v63  ;;  %1600 = vmatpush.msra.mxu0 %v3819_v24  ;;  %v3803_v63 = vld [vmem:[%s7388_s5 + $0x398] sm:$0xff] }
 0x25b   :  { %1584 = vmatpush.msrb.mxu1 %v3773_v20  ;;  %1517 = vmatpush.msra.mxu2 %v3768_v36  ;;  %v3831_v20 = vld [vmem:[%s7388_s5 + $0x478] sm:$0xff]  ;;  %v3797_v36 = vld [vmem:[%s7388_s5 + $0x368] sm:$0xff] }
 0x25c   :  { %1544 = vmatpush.msra.mxu3 %v3792_v21  ;;  %1601 = vmatpush.msra.mxu0 %v3817_v38  ;;  %v3825_v21 = vld [vmem:[%s7388_s5 + $0x448] sm:$0xff]  ;;  %v3799_v24 = vld [vmem:[%s7388_s5 + $0x378] sm:$0xff] }
 0x25d   :  { %1585 = vmatpush.msrb.mxu1 %v3771_v8  ;;  %1518 = vmatpush.msra.mxu2 %v3766_v30  ;;  %v1290_v8 = vld [vmem:[%s7388_s5 + $0x70] sm:$0xff]  ;;  %v3795_v38 = vld [vmem:[%s7388_s5 + $0x358] sm:$0xff]  ;;  %v1345_v30 = vld [vmem:[%s7388_s5 + $0x228] sm:$0xff] }
 0x25e   :  { %1650 = vmatpush.msrb.mxu3 %v1306_v22  ;;  %1602 = vmatpush.msra.mxu0 %v3815_v44  ;;  %v1286_v22 = vld [vmem:[%s7388_s5 + $0x50] sm:$0xff]  ;;  %v1343_v44 = vld [vmem:[%s7388_s5 + $0x218] sm:$0xff] }
 0x25f   :  { %1586 = vmatpush.msrb.mxu1 %v3769_v19  ;;  %1519 = vmatpush.msra.mxu2 %v3764_v55  ;;  %v3801_v19 = vld [vmem:[%s7388_s5 + $0x388] sm:$0xff]  ;;  %v1339_v55 = vld [vmem:[%s7388_s5 + $0x1f8] sm:$0xff] }
 0x260   :  { %1651 = vmatpush.msrb.mxu3 %v1304_v37  ;;  %1603 = vmatpush.msra.mxu0 %v3813_v47  ;;  %v1282_v37 = vld [vmem:[%s7388_s5 + $0x30] sm:$0xff]  ;;  %v1305_v47 = vld [vmem:[%s7388_s5 + $0xe8] sm:$0xff] }
 0x261   :  { %1587 = vmatpush.msrb.mxu1 %v3767_v35  ;;  %1520 = vmatpush.msra.mxu2 %v3762_v58  ;;  %v1284_v35 = vld [vmem:[%s7388_s5 + $0x40] sm:$0xff]  ;;  %v1337_v58 = vld [vmem:[%s7388_s5 + $0x1e8] sm:$0xff] }
 0x262   :  { %1652 = vmatpush.msrb.mxu3 %v1302_v31  ;;  %1604 = vmatpush.msra.mxu0 %v3811_v59  ;;  %v3793_v31 = vld [vmem:[%s7388_s5 + $0x348] sm:$0xff]  ;;  %v1303_v59 = vld [vmem:[%s7388_s5 + $0xd8] sm:$0xff] }
 0x263   :  { %1588 = vmatpush.msrb.mxu1 %v3765_v39  ;;  %1521 = vmatpush.msra.mxu2 %v3760_v12  ;;  %v1280_v39 = vld [vmem:[%s7388_s5 + $0x20] sm:$0xff]  ;;  %v1333_v12 = vld [vmem:[%s7388_s5 + $0x1c8] sm:$0xff] }
 0x264   :  { %1653 = vmatpush.msrb.mxu3 %v1300_v16  ;;  %1605 = vmatpush.msra.mxu0 %v3809_v62 }
 0x265   :  { %1589 = vmatpush.msrb.mxu1 %v3763_v32  ;;  %1633 = vmatpush.msrb.mxu2 %v3831_v20  ;;  %v1278_v32 = vld [vmem:[%s7388_s5 + $0x10] sm:$0xff]  ;;  %v1329_v20 = vld [vmem:[%s7388_s5 + $0x1a8] sm:$0xff] }
 0x266   :  { %1654 = vmatpush.msrb.mxu3 %v1298_v33  ;;  %1606 = vmatpush.msra.mxu0 %v3807_v1  ;;  %v1297_v1 = vld [vmem:[%s7388_s5 + $0xa8] sm:$0xff] }
 0x267   :  { %1590 = vmatpush.msrb.mxu1 %v3761_v41  ;;  %1634 = vmatpush.msrb.mxu2 %v3829_v7  ;;  %v1276_v41 = vld [vmem:[%s7388_s5] sm:$0xff]  ;;  %v1293_v7 = vld [vmem:[%s7388_s5 + $0x88] sm:$0xff] }
 0x268   :  { %1655 = vmatpush.msrb.mxu3 %v1296_v45  ;;  %1607 = vmatpush.msra.mxu0 %v3805_v5  ;;  %v1301_v45 = vld [vmem:[%s7388_s5 + $0xc8] sm:$0xff]  ;;  %v1327_v5 = vld [vmem:[%s7388_s5 + $0x198] sm:$0xff] }
 0x269   :  { %1673 = vmatpush.msra.mxu1 %v1338_v34  ;;  %1635 = vmatpush.msrb.mxu2 %v3827_v15  ;;  %v1291_v15 = vld [vmem:[%s7388_s5 + $0x78] sm:$0xff] }
 0x26a   :  { %1656 = vmatpush.msrb.mxu3 %v1294_v3  ;;  %1608 = vmatpush.msra.mxu0 %v3803_v63  ;;  %v1331_v3 = vld [vmem:[%s7388_s5 + $0x1b8] sm:$0xff] }
 0x26b   :  { %1674 = vmatpush.msra.mxu1 %v1336_v42  ;;  %1636 = vmatpush.msrb.mxu2 %v3825_v21  ;;  %v1346_v42 = vld [vmem:[%s7388_s5 + $0x230] sm:$0xff]  ;;  %v1289_v21 = vld [vmem:[%s7388_s5 + $0x68] sm:$0xff] }
 0x26c   :  { %1657 = vmatpush.msrb.mxu3 %v1292_v2  ;;  %1609 = vmatpush.msra.mxu0 %v3801_v19  ;;  %v1295_v2 = vld [vmem:[%s7388_s5 + $0x98] sm:$0xff]  ;;  %v5962_v19 = vld [vmem:[%s7387_s4 + $0x20] sm:$0xff] }
 0x26d   :  { %1675 = vmatpush.msra.mxu1 %v1334_v43 }
 0x26e   :  { %1658 = vmatpush.msrb.mxu3 %v1290_v8  ;;  %1610 = vmatpush.msra.mxu0 %v3799_v24  ;;  %v1325_v8 = vld [vmem:[%s7388_s5 + $0x188] sm:$0xff]  ;;  %v1287_v24 = vld [vmem:[%s7388_s5 + $0x58] sm:$0xff] }
 0x26f   :  { %1676 = vmatpush.msra.mxu1 %v1332_v46 }
 0x270   :  { %1659 = vmatpush.msrb.mxu3 %v1288_v18  ;;  %1611 = vmatpush.msra.mxu0 %v3797_v36  ;;  %v1323_v18 = vld [vmem:[%s7388_s5 + $0x178] sm:$0xff]  ;;  %v1285_v36 = vld [vmem:[%s7388_s5 + $0x48] sm:$0xff] }
 0x271   :  { %1677 = vmatpush.msra.mxu1 %v1330_v50  ;;  %v1344_v50 = vld [vmem:[%s7388_s5 + $0x220] sm:$0xff] }
 0x272   :  { %1660 = vmatpush.msrb.mxu3 %v1286_v22  ;;  %1612 = vmatpush.msra.mxu0 %v3795_v38  ;;  %v1321_v22 = vld [vmem:[%s7388_s5 + $0x168] sm:$0xff] }
 0x273   :  { %1678 = vmatpush.msra.mxu1 %v1328_v52 }
 0x274   :  { %1661 = vmatpush.msrb.mxu3 %v1284_v35  ;;  %1613 = vmatpush.msra.mxu0 %v3793_v31  ;;  %v1319_v35 = vld [vmem:[%s7388_s5 + $0x158] sm:$0xff] }
 0x275   :  { %1679 = vmatpush.msra.mxu1 %v1326_v56  ;;  %v1342_v56 = vld [vmem:[%s7388_s5 + $0x210] sm:$0xff]  ;;  %v1315_v31 = vld [vmem:[%s7388_s5 + $0x138] sm:$0xff] }
 0x276   :  { %1662 = vmatpush.msrb.mxu3 %v1282_v37  ;;  %v1317_v37 = vld [vmem:[%s7388_s5 + $0x148] sm:$0xff] }
 0x277   :  { %1680 = vmatpush.msra.mxu1 %v1324_v48  ;;  %v1340_v48 = vld [vmem:[%s7388_s5 + $0x200] sm:$0xff] }
 0x278   :  { %1663 = vmatpush.msrb.mxu3 %v1280_v39  ;;  %v1283_v39 = vld [vmem:[%s7388_s5 + $0x38] sm:$0xff] }
 0x279   :  { %1681 = vmatpush.msra.mxu1 %v1322_v11 }
 0x27a   :  { %1664 = vmatpush.msrb.mxu3 %v1278_v32  ;;  %v5998_v32 = vld [vmem:[%s7387_s4 + $0x28] sm:$0x3f] }
 0x27b   :  { %1682 = vmatpush.msra.mxu1 %v1320_v0 }
 0x27c   :  { %1665 = vmatpush.msrb.mxu3 %v1276_v41  ;;  %v1281_v41 = vld [vmem:[%s7388_s5 + $0x28] sm:$0xff] }
 0x27d   :  { %1683 = vmatpush.msra.mxu1 %v1318_v4  ;;  %v1347_v4 = vld [vmem:[%s7388_s5 + $0x238] sm:$0xff] }
 0x27f   :  { %1684 = vmatpush.msra.mxu1 %v1316_v9 }
 0x281   :  { %1685 = vmatpush.msra.mxu1 %v1314_v49  ;;  %v1307_v49 = vld [vmem:[%s7388_s5 + $0xf8] sm:$0xff] }
 0x283   :  { %1686 = vmatpush.msra.mxu1 %v1312_v57  ;;  %v1341_v57 = vld [vmem:[%s7388_s5 + $0x208] sm:$0xff] }
 0x285   :  { %1687 = vmatpush.msra.mxu1 %v1310_v10  ;;  %v1335_v10 = vld [vmem:[%s7388_s5 + $0x1d8] sm:$0xff] }
 0x287   :  { %1688 = vmatpush.msra.mxu1 %v1308_v51  ;;  %v1299_v51 = vld [vmem:[%s7388_s5 + $0xb8] sm:$0xff] }
 0x2b5   :  { %v5854_v34 = vpop.f32.mrf.mxu0 }
 0x2bb   :  { %v5859_v43 = vpop.f32.mrf.mxu1  ;;  %v1374_v46 = vpop.f32.mrf.mxu3 }
 0x2bc   :  { %1522 = vmatmul.f32.vlgmr.msra.gmra.mxu2 %v1374_v46  ;;  %1591 = vmatmul.f32.vlgmr.msrb.gmra.mxu1 %v1374_v46  ;;  %v1279_v46 = vld [vmem:[%s7388_s5 + $0x18] sm:$0xff] }
 0x2bd   :  { %3842 = vmatpush.msk.msrb.mxu1 %vm1197_vm2, %v5430_v40  ;;  %v5866_v52 = vpop.f32.mrf.mxu0  ;;  %1708 = vmatpush.msra.mxu2 %v1346_v42  ;;  %v1313_v42 = vld [vmem:[%s7388_s5 + $0x128] sm:$0xff] }
 0x2bf   :  { %1809 = vmatpush.msrb.mxu1 %v5436_v61  ;;  %1709 = vmatpush.msra.mxu2 %v1344_v50  ;;  %v1311_v50 = vld [vmem:[%s7388_s5 + $0x118] sm:$0xff] }
 0x2c1   :  { %1810 = vmatpush.msrb.mxu1 %v5443_v53  ;;  %1710 = vmatpush.msra.mxu2 %v1342_v56  ;;  %v1277_v56 = vld [vmem:[%s7388_s5 + $0x8] sm:$0xff] }
 0x2c3   :  { %1811 = vmatpush.msrb.mxu1 %v5451_v13  ;;  %v5877_v11 = vpop.f32.mrf.mxu1  ;;  %v1377_v0 = vpop.f32.mrf.mxu3  ;;  %1711 = vmatpush.msra.mxu2 %v1340_v48  ;;  %v1309_v48 = vld [vmem:[%s7388_s5 + $0x108] sm:$0xff] }
 0x2c4   :  { %1525 = vmatmul.f32.gmra.mxu2 %v1377_v0  ;;  %1594 = vmatmul.f32.gmra.mxu1 %v1377_v0  ;;  %v3913_v0 = vld [vmem:[%s7388_s5 + $0x670] sm:$0xff] }
 0x2c5   :  { %1812 = vmatpush.msrb.mxu1 %v5461_v6  ;;  %v1397_v9 = vpop.f32.mrf.mxu0  ;;  %v1270_v63 = vpop.f32.mrf.mxu2 }
 0x2c6   :  { %1545 = vmatmul.f32.vlgmr.msra.gmra.mxu3 %v1397_v9 }
 0x2c7   :  { %1777 = vmatpush.msra.mxu3 %v1347_v4  ;;  %v3911_v4 = vld [vmem:[%s7388_s5 + $0x660] sm:$0xff] }
 0x2c9   :  { %1778 = vmatpush.msra.mxu3 %v1345_v30  ;;  %v3907_v30 = vld [vmem:[%s7388_s5 + $0x640] sm:$0xff] }
 0x2cb   :  { %v1420_v16 = vpop.f32.mrf.mxu1  ;;  %1779 = vmatpush.msra.mxu3 %v1343_v44  ;;  %v3903_v44 = vld [vmem:[%s7388_s5 + $0x620] sm:$0xff] }
 0x2cc   :  { %3832 = vmatmul.msk.f32.vlgmr.msrb.gmra.mxu0 %vm1499_vm4, %v1420_v16  ;;  %3834 = vmatmul.msk.f32.vlgmr.msrb.gmra.mxu2 %vm1499_vm4, %v1420_v16  ;;  %v3901_v16 = vld [vmem:[%s7388_s5 + $0x610] sm:$0xff] }
 0x2cd   :  { %1689 = vmatmul.f32.vlgmr.msra.gmra.mxu1 %v5859_v43  ;;  %1719 = vmatpush.msrb.mxu0 %v1307_v49  ;;  %v5904_v33 = vpop.f32.mrf.mxu0  ;;  %v1273_v38 = vpop.f32.mrf.mxu2  ;;  %v3880_v49 = vld [vmem:[%s7388_s5 + $0x568] sm:$0xff] }
 0x2ce   :  { %1742 = vmatpush.msrb.mxu2 %v1339_v55  ;;  %1548 = vmatmul.f32.gmra.mxu3 %v5904_v33  ;;  %v3878_v55 = vld [vmem:[%s7388_s5 + $0x558] sm:$0xff] }
 0x2cf   :  { %1720 = vmatpush.msrb.mxu0 %v1305_v47  ;;  %1780 = vmatpush.msra.mxu3 %v1341_v57  ;;  %v3897_v47 = vld [vmem:[%s7388_s5 + $0x5f0] sm:$0xff]  ;;  %v3874_v57 = vld [vmem:[%s7388_s5 + $0x538] sm:$0xff] }
 0x2d0   :  { %1743 = vmatpush.msrb.mxu2 %v1337_v58  ;;  %v3872_v58 = vld [vmem:[%s7388_s5 + $0x528] sm:$0xff] }
 0x2d1   :  { %1721 = vmatpush.msrb.mxu0 %v1303_v59  ;;  %v3881_v59 = vld [vmem:[%s7388_s5 + $0x570] sm:$0xff] }
 0x2d2   :  { %1744 = vmatpush.msrb.mxu2 %v1335_v10  ;;  %v3893_v10 = vld [vmem:[%s7388_s5 + $0x5d0] sm:$0xff]  ;;  %1945 = vmatpush.msra.mxu1 %v3881_v59 }
 0x2d3   :  { %1722 = vmatpush.msrb.mxu0 %v1301_v45  ;;  %v1423_v62 = vpop.f32.mrf.mxu1  ;;  %v3879_v45 = vld [vmem:[%s7388_s5 + $0x560] sm:$0xff] }
 0x2d4   :  { %1745 = vmatpush.msrb.mxu2 %v1333_v12  ;;  %3833 = vmatmul.msk.f32.gmra.mxu0 %vm1499_vm4, %v1423_v62  ;;  %v3870_v12 = vld [vmem:[%s7388_s5 + $0x518] sm:$0xff] }
 0x2d5   :  { %3835 = vmatmul.msk.f32.gmra.mxu2 %vm1499_vm4, %v1423_v62  ;;  %1692 = vmatmul.f32.gmra.mxu1 %v5877_v11  ;;  %v3891_v62 = vld [vmem:[%s7388_s5 + $0x5c0] sm:$0xff] }
 0x2d6   :  { %1723 = vmatpush.msrb.mxu0 %v1299_v51  ;;  %1746 = vmatpush.msrb.mxu2 %v1331_v3  ;;  %v3877_v51 = vld [vmem:[%s7388_s5 + $0x550] sm:$0xff]  ;;  %v3868_v3 = vld [vmem:[%s7388_s5 + $0x508] sm:$0xff] }
 0x2d7   :  { %1666 = vmatmul.f32.vlgmr.msrb.gmra.mxu3 %v5854_v34  ;;  %1946 = vmatpush.msra.mxu1 %v3879_v45 }
 0x2d8   :  { %1724 = vmatpush.msrb.mxu0 %v1297_v1  ;;  %1747 = vmatpush.msrb.mxu2 %v1329_v20  ;;  %v3889_v1 = vld [vmem:[%s7388_s5 + $0x5b0] sm:$0xff]  ;;  %v3866_v20 = vld [vmem:[%s7388_s5 + $0x4f8] sm:$0xff] }
 0x2d9   :  { %3845 = vmatpush.msk.msrb.mxu3 %vm1197_vm2, %v5454_v54  ;;  %1947 = vmatpush.msra.mxu1 %v3877_v51  ;;  %v3900_v51 = vld [vmem:[%s7388_s5 + $0x608] sm:$0xff] }
 0x2da   :  { %1725 = vmatpush.msrb.mxu0 %v1295_v2  ;;  %1748 = vmatpush.msrb.mxu2 %v1327_v5  ;;  %v3887_v2 = vld [vmem:[%s7388_s5 + $0x5a0] sm:$0xff]  ;;  %v3864_v5 = vld [vmem:[%s7388_s5 + $0x4e8] sm:$0xff] }
 0x2db   :  { %1832 = vmatpush.msrb.mxu3 %v5464_v14 }
 0x2dc   :  { %1726 = vmatpush.msrb.mxu0 %v1293_v7  ;;  %1749 = vmatpush.msrb.mxu2 %v1325_v8  ;;  %v3885_v7 = vld [vmem:[%s7388_s5 + $0x590] sm:$0xff]  ;;  %v3862_v8 = vld [vmem:[%s7388_s5 + $0x4d8] sm:$0xff] }
 0x2dd   :  { %1833 = vmatpush.msrb.mxu3 %v5484_v23  ;;  %1614 = vmatmul.f32.vlgmr.msra.gmra.mxu0 %v1397_v9  ;;  %v3909_v9 = vld [vmem:[%s7388_s5 + $0x650] sm:$0xff] }
 0x2de   :  { %3836 = vmatmul.msk.f32.vlgmr.msra.gmra.mxu2 %vm1499_vm4, %v1270_v63  ;;  %1727 = vmatpush.msrb.mxu0 %v1291_v15  ;;  %v3860_v15 = vld [vmem:[%s7388_s5 + $0x4c8] sm:$0xff] }
 0x2df   :  { %1750 = vmatpush.msrb.mxu2 %v1323_v18  ;;  %3843 = vmatmul.msk.f32.vlgmr.msrb.gmra.mxu1 %vm1190_vm3, %v5962_v19  ;;  %v3858_v18 = vld [vmem:[%s7388_s5 + $0x4b8] sm:$0xff] }
 0x2e0   :  { %1834 = vmatpush.msrb.mxu3 %v5493_v25  ;;  %1728 = vmatpush.msrb.mxu0 %v1289_v21  ;;  %v3854_v21 = vld [vmem:[%s7388_s5 + $0x498] sm:$0xff] }
 0x2e1   :  { %1669 = vmatmul.f32.gmra.mxu3 %v5866_v52  ;;  %1751 = vmatpush.msrb.mxu2 %v1321_v22  ;;  %v3852_v22 = vld [vmem:[%s7388_s5 + $0x488] sm:$0xff] }
 0x2e2   :  { %1835 = vmatpush.msrb.mxu3 %v5501_v27  ;;  %1729 = vmatpush.msrb.mxu0 %v1287_v24  ;;  %v3875_v24 = vld [vmem:[%s7388_s5 + $0x540] sm:$0xff] }
 0x2e3   :  { %1752 = vmatpush.msrb.mxu2 %v1319_v35  ;;  %v3873_v35 = vld [vmem:[%s7388_s5 + $0x530] sm:$0xff]  ;;  %1948 = vmatpush.msra.mxu1 %v3875_v24 }
 0x2e4   :  { %1730 = vmatpush.msrb.mxu0 %v1285_v36  ;;  %v3871_v36 = vld [vmem:[%s7388_s5 + $0x520] sm:$0xff] }
 0x2e5   :  { %1753 = vmatpush.msrb.mxu2 %v1317_v37  ;;  %1617 = vmatmul.f32.gmra.mxu0 %v5904_v33  ;;  %v3895_v33 = vld [vmem:[%s7388_s5 + $0x5e0] sm:$0xff]  ;;  %v3869_v37 = vld [vmem:[%s7388_s5 + $0x510] sm:$0xff] }
 0x2e6   :  { %3837 = vmatmul.msk.f32.gmra.mxu2 %vm1499_vm4, %v1273_v38  ;;  %1731 = vmatpush.msrb.mxu0 %v1283_v39  ;;  %v3865_v39 = vld [vmem:[%s7388_s5 + $0x4f0] sm:$0xff] }
 0x2e7   :  { %1754 = vmatpush.msrb.mxu2 %v1315_v31  ;;  %3844 = vmatmul.msk.f32.gmra.mxu1 %vm1190_vm3, %v5998_v32  ;;  %v3863_v31 = vld [vmem:[%s7388_s5 + $0x4e0] sm:$0xff] }
 0x2e8   :  { %1732 = vmatpush.msrb.mxu0 %v1281_v41  ;;  %1949 = vmatpush.msra.mxu1 %v3873_v35  ;;  %v3859_v41 = vld [vmem:[%s7388_s5 + $0x4c0] sm:$0xff] }
 0x2e9   :  { %1755 = vmatpush.msrb.mxu2 %v1313_v42  ;;  %3838 = vmatmul.msk.f32.vlgmr.msra.gmra.mxu3 %vm1499_vm4, %v1270_v63  ;;  %v3883_v63 = vld [vmem:[%s7388_s5 + $0x580] sm:$0xff]  ;;  %v3857_v42 = vld [vmem:[%s7388_s5 + $0x4b0] sm:$0xff] }
 0x2ea   :  { %1733 = vmatpush.msrb.mxu0 %v1279_v46  ;;  %1950 = vmatpush.msra.mxu1 %v3871_v36  ;;  %v3855_v46 = vld [vmem:[%s7388_s5 + $0x4a0] sm:$0xff] }
 0x2eb   :  { %1756 = vmatpush.msrb.mxu2 %v1311_v50  ;;  %v3853_v50 = vld [vmem:[%s7388_s5 + $0x490] sm:$0xff] }
 0x2ec   :  { %1734 = vmatpush.msrb.mxu0 %v1277_v56  ;;  %1951 = vmatpush.msra.mxu1 %v3869_v37  ;;  %v3851_v56 = vld [vmem:[%s7388_s5 + $0x480] sm:$0xff] }
 0x2ed   :  { %1757 = vmatpush.msrb.mxu2 %v1309_v48  ;;  %1735 = vmatmul.f32.vlgmr.msrb.gmra.mxu0 %v5854_v34  ;;  %v3905_v34 = vld [vmem:[%s7388_s5 + $0x630] sm:$0xff]  ;;  %v3922_v48 = vld [vmem:[%s7388_s5 + $0x6b8] sm:$0xff] }
 0x2ee   :  { %3848 = vmatpush.msk.msra.mxu0 %vm1197_vm2, %v5459_v60  ;;  %1758 = vmatmul.f32.vlgmr.msrb.gmra.mxu2 %v5859_v43  ;;  %v3882_v43 = vld [vmem:[%s7388_s5 + $0x578] sm:$0xff] }
 0x2ef   :  { %1968 = vmatpush.msra.mxu2 %v3913_v0  ;;  %v3921_v0 = vld [vmem:[%s7388_s5 + $0x6b0] sm:$0xff] }
 0x2f0   :  { %1855 = vmatpush.msra.mxu0 %v5469_v17  ;;  %2003 = vmatpush.msra.mxu3 %v3921_v0 }
 0x2f1   :  { %1969 = vmatpush.msra.mxu2 %v3911_v4  ;;  %3839 = vmatmul.msk.f32.gmra.mxu3 %vm1499_vm4, %v1273_v38  ;;  %v3867_v38 = vld [vmem:[%s7388_s5 + $0x500] sm:$0xff]  ;;  %v3920_v4 = vld [vmem:[%s7388_s5 + $0x6a8] sm:$0xff] }
 0x2f2   :  { %1856 = vmatpush.msra.mxu0 %v5488_v26  ;;  %1952 = vmatpush.msra.mxu1 %v3867_v38  ;;  %v3886_v38 = vld [vmem:[%s7388_s5 + $0x598] sm:$0xff] }
 0x2f3   :  { %1970 = vmatpush.msra.mxu2 %v3909_v9  ;;  %v3919_v9 = vld [vmem:[%s7388_s5 + $0x6a0] sm:$0xff] }
 0x2f4   :  { %1857 = vmatpush.msra.mxu0 %v5498_v29  ;;  %1953 = vmatpush.msra.mxu1 %v3865_v39 }
 0x2f5   :  { %1971 = vmatpush.msra.mxu2 %v3907_v30  ;;  %1738 = vmatmul.f32.gmra.mxu0 %v5866_v52  ;;  %v3899_v52 = vld [vmem:[%s7388_s5 + $0x600] sm:$0xff]  ;;  %v3918_v30 = vld [vmem:[%s7388_s5 + $0x698] sm:$0xff] }
 0x2f6   :  { %1858 = vmatpush.msra.mxu0 %v5508_v28  ;;  %1761 = vmatmul.f32.gmra.mxu2 %v5877_v11  ;;  %v3876_v11 = vld [vmem:[%s7388_s5 + $0x548] sm:$0xff] }
 0x2f7   :  { %1972 = vmatpush.msra.mxu2 %v3905_v34  ;;  %1954 = vmatpush.msra.mxu1 %v3863_v31  ;;  %v3917_v34 = vld [vmem:[%s7388_s5 + $0x690] sm:$0xff] }
 0x2f8   :  { %2014 = vmatpush.msrb.mxu0 %v3882_v43  ;;  %2004 = vmatpush.msra.mxu3 %v3919_v9 }
 0x2f9   :  { %1973 = vmatpush.msra.mxu2 %v3903_v44  ;;  %3846 = vmatmul.msk.f32.vlgmr.msrb.gmra.mxu3 %vm1190_vm3, %v5962_v19  ;;  %v3916_v44 = vld [vmem:[%s7388_s5 + $0x688] sm:$0xff] }
 0x2fa   :  { %2015 = vmatpush.msrb.mxu0 %v3880_v49  ;;  %2005 = vmatpush.msra.mxu3 %v3917_v34  ;;  %v3915_v49 = vld [vmem:[%s7388_s5 + $0x680] sm:$0xff] }
 0x2fb   :  { %1974 = vmatpush.msra.mxu2 %v3901_v16  ;;  %v3914_v16 = vld [vmem:[%s7388_s5 + $0x678] sm:$0xff] }
 0x2fc   :  { %2016 = vmatpush.msrb.mxu0 %v3878_v55  ;;  %2006 = vmatpush.msra.mxu3 %v3915_v49 }
 0x2fd   :  { %1975 = vmatpush.msra.mxu2 %v3899_v52  ;;  %3849 = vmatmul.msk.f32.vlgmr.msra.gmra.mxu0 %vm1190_vm3, %v5962_v19  ;;  %v3856_v19 = vld [vmem:[%s7388_s5 + $0x4a8] sm:$0xff] }
 0x2fe   :  { %2017 = vmatpush.msrb.mxu0 %v3876_v11  ;;  %2037 = vmatpush.msrb.mxu3 %v3914_v16  ;;  %v3912_v52 = vld [vmem:[%s7388_s5 + $0x668] sm:$0xff] }
 0x2ff   :  { %1976 = vmatpush.msra.mxu2 %v3897_v47  ;;  %v3910_v47 = vld [vmem:[%s7388_s5 + $0x658] sm:$0xff] }
 0x300   :  { %2018 = vmatpush.msrb.mxu0 %v3874_v57  ;;  %2038 = vmatpush.msrb.mxu3 %v3912_v52  ;;  %v3908_v57 = vld [vmem:[%s7388_s5 + $0x648] sm:$0xff] }
 0x301   :  { %1977 = vmatpush.msra.mxu2 %v3895_v33  ;;  %3847 = vmatmul.msk.f32.gmra.mxu3 %vm1190_vm3, %v5998_v32  ;;  %v3906_v33 = vld [vmem:[%s7388_s5 + $0x638] sm:$0xff] }
 0x302   :  { %2019 = vmatpush.msrb.mxu0 %v3872_v58  ;;  %2039 = vmatpush.msrb.mxu3 %v3910_v47  ;;  %v3904_v58 = vld [vmem:[%s7388_s5 + $0x628] sm:$0xff] }
 0x303   :  { %1978 = vmatpush.msra.mxu2 %v3893_v10 }
 0x304   :  { %2020 = vmatpush.msrb.mxu0 %v3870_v12  ;;  %2040 = vmatpush.msrb.mxu3 %v3908_v57 }
 0x305   :  { %1979 = vmatpush.msra.mxu2 %v3891_v62  ;;  %3850 = vmatmul.msk.f32.gmra.mxu0 %vm1190_vm3, %v5998_v32  ;;  %v3861_v32 = vld [vmem:[%s7388_s5 + $0x4d0] sm:$0xff]  ;;  %v3902_v62 = vld [vmem:[%s7388_s5 + $0x618] sm:$0xff] }
 0x306   :  { %2021 = vmatpush.msrb.mxu0 %v3868_v3  ;;  %1955 = vmatpush.msra.mxu1 %v3861_v32  ;;  %v3898_v3 = vld [vmem:[%s7388_s5 + $0x5f8] sm:$0xff] }
 0x307   :  { %1980 = vmatpush.msra.mxu2 %v3889_v1  ;;  %2041 = vmatpush.msrb.mxu3 %v3906_v33  ;;  %v3896_v1 = vld [vmem:[%s7388_s5 + $0x5e8] sm:$0xff] }
 0x308   :  { %2022 = vmatpush.msrb.mxu0 %v3866_v20  ;;  %1956 = vmatpush.msra.mxu1 %v3859_v41  ;;  %v3884_v41 = vld [vmem:[%s7388_s5 + $0x588] sm:$0xff] }
 0x309   :  { %1981 = vmatpush.msra.mxu2 %v3887_v2  ;;  %2042 = vmatpush.msrb.mxu3 %v3904_v58 }
 0x30a   :  { %2023 = vmatpush.msrb.mxu0 %v3864_v5  ;;  %1957 = vmatpush.msra.mxu1 %v3857_v42 }
 0x30b   :  { %1982 = vmatpush.msra.mxu2 %v3885_v7  ;;  %2043 = vmatpush.msrb.mxu3 %v3902_v62  ;;  %v4000_v62 = vld [vmem:[%s7388_s5 + $0x8b0] sm:$0xff] }
 0x30c   :  { %2024 = vmatpush.msrb.mxu0 %v3862_v8  ;;  %1958 = vmatpush.msra.mxu1 %v3855_v46 }
 0x30d   :  { %1983 = vmatpush.msra.mxu2 %v3883_v63  ;;  %2044 = vmatpush.msrb.mxu3 %v3900_v51  ;;  %v3894_v63 = vld [vmem:[%s7388_s5 + $0x5d8] sm:$0xff] }
 0x30e   :  { %2025 = vmatpush.msrb.mxu0 %v3860_v15  ;;  %1959 = vmatpush.msra.mxu1 %v3853_v50 }
 0x30f   :  { %3929 = vmatpush.msk.msrb.mxu2 %vm1197_vm2, %v5430_v40  ;;  %2045 = vmatpush.msrb.mxu3 %v3898_v3 }
 0x310   :  { %2026 = vmatpush.msrb.mxu0 %v3858_v18  ;;  %1960 = vmatpush.msra.mxu1 %v3851_v56  ;;  %v3892_v18 = vld [vmem:[%s7388_s5 + $0x5c8] sm:$0xff] }
 0x311   :  { %2108 = vmatpush.msrb.mxu2 %v5436_v61  ;;  %2046 = vmatpush.msrb.mxu3 %v3896_v1  ;;  %v3969_v1 = vld [vmem:[%s7388_s5 + $0x7b8] sm:$0xff] }
 0x312   :  { %2027 = vmatpush.msrb.mxu0 %v3856_v19  ;;  %2072 = vmatpush.msrb.mxu1 %v3922_v48 }
 0x313   :  { %2109 = vmatpush.msrb.mxu2 %v5443_v53  ;;  %2047 = vmatpush.msrb.mxu3 %v3894_v63  ;;  %v3965_v63 = vld [vmem:[%s7388_s5 + $0x798] sm:$0xff] }
 0x314   :  { %2028 = vmatpush.msrb.mxu0 %v3854_v21  ;;  %2073 = vmatpush.msrb.mxu1 %v3920_v4  ;;  %v3890_v21 = vld [vmem:[%s7388_s5 + $0x5b8] sm:$0xff] }
 0x315   :  { %2110 = vmatpush.msrb.mxu2 %v5451_v13  ;;  %2048 = vmatpush.msrb.mxu3 %v3892_v18  ;;  %v3963_v18 = vld [vmem:[%s7388_s5 + $0x788] sm:$0xff] }
 0x316   :  { %2029 = vmatpush.msrb.mxu0 %v3852_v22  ;;  %2074 = vmatpush.msrb.mxu1 %v3918_v30  ;;  %v3888_v22 = vld [vmem:[%s7388_s5 + $0x5a8] sm:$0xff] }
 0x317   :  { %2111 = vmatpush.msrb.mxu2 %v5461_v6  ;;  %2049 = vmatpush.msrb.mxu3 %v3890_v21 }
 0x318   :  { %3932 = vmatpush.msk.msra.mxu0 %vm1197_vm2, %v5454_v54  ;;  %2075 = vmatpush.msrb.mxu1 %v3916_v44 }
 0x319   :  { %2050 = vmatpush.msrb.mxu3 %v3888_v22  ;;  %v3961_v22 = vld [vmem:[%s7388_s5 + $0x778] sm:$0xff] }
 0x31a   :  { %2131 = vmatpush.msra.mxu0 %v5464_v14 }
 0x31b   :  { %2051 = vmatpush.msrb.mxu3 %v3886_v38  ;;  %v3966_v38 = vld [vmem:[%s7388_s5 + $0x7a0] sm:$0xff] }
 0x31c   :  { %2132 = vmatpush.msra.mxu0 %v5484_v23 }
 0x31d   :  { %2052 = vmatpush.msrb.mxu3 %v3884_v41  ;;  %v3986_v41 = vld [vmem:[%s7388_s5 + $0x840] sm:$0xff] }
 0x31e   :  { %2133 = vmatpush.msra.mxu0 %v5493_v25 }
 0x320   :  { %2134 = vmatpush.msra.mxu0 %v5501_v27 }
 0x339   :  { %v1592_v43 = vpop.f32.mrf.mxu1 }
 0x33f   :  { %v1523_v55 = vpop.f32.mrf.mxu2 }
 0x341   :  { %v1595_v11 = vpop.f32.mrf.mxu1 }
 0x347   :  { %v1526_v59 = vpop.f32.mrf.mxu2 }
 0x349   :  { %v1546_v10 = vpop.f32.mrf.mxu3  ;;  %v1569_v45 = vpop.f32.mrf.mxu0 }
 0x34a   :  { %v1690_v12 = vpop.f32.mrf.mxu1  ;;  %v1547_v19 = vadd.f32 %v1546_v10, %v1523_v55 }
 0x34c   :  { %v1570_v35 = vadd.f32 %v1569_v45, %v1547_v19  ;;  %v6292_v45 = vld [vmem:[%s7387_s4 + $0x38] sm:$0x3f]  ;;  %v3992_v19 = vld [vmem:[%s7388_s5 + $0x870] sm:$0xff] }
 0x34f   :  { %v1638_v20 = vpop.f32.mrf.mxu2 }
 0x351   :  { %v1549_v2 = vpop.f32.mrf.mxu3  ;;  %v1572_v5 = vpop.f32.mrf.mxu0 }
 0x352   :  { %v1550_v7 = vadd.f32 %v1549_v2, %v1526_v59  ;;  %v1693_v8 = vpop.f32.mrf.mxu1  ;;  %v3998_v2 = vld [vmem:[%s7388_s5 + $0x8a0] sm:$0xff] }
 0x354   :  { %v1573_v15 = vadd.f32 %v1572_v5, %v1550_v7  ;;  %v3967_v7 = vld [vmem:[%s7388_s5 + $0x7a8] sm:$0xff] }
 0x358   :  { %v1641_v24 = vpop.f32.mrf.mxu2 }
 0x35a   :  { %v1615_v36 = vpop.f32.mrf.mxu0  ;;  %v1667_v37 = vpop.f32.mrf.mxu3 }
 0x35b   :  { %v1616_v39 = vadd.f32 %v1615_v36, %v1592_v43  ;;  %v1668_v31 = vadd.f32 %v1667_v37, %v1570_v35  ;;  %v3990_v35 = vld [vmem:[%s7388_s5 + $0x860] sm:$0xff]  ;;  %v3959_v36 = vld [vmem:[%s7388_s5 + $0x768] sm:$0xff]  ;;  %v3968_v37 = vld [vmem:[%s7388_s5 + $0x7b0] sm:$0xff] }
 0x35c   :  { %v1814_v32 = vpop.f32.mrf.mxu1 }
 0x35d   :  { %1961 = vmatmul.f32.vlgmr.msra.gmra.mxu1 %v1814_v32  ;;  %v1691_v42 = vadd.f32 %v1690_v12, %v1668_v31  ;;  %v1639_v46 = vadd.f32 %v1638_v20, %v1616_v39  ;;  %2030 = vmatmul.f32.vlgmr.msrb.gmra.mxu0 %v1814_v32  ;;  %v3988_v39 = vld [vmem:[%s7388_s5 + $0x850] sm:$0xff]  ;;  %v3957_v31 = vld [vmem:[%s7388_s5 + $0x758] sm:$0xff] }
 0x35e   :  { %3935 = vmatpush.msk.msra.mxu1 %vm1197_vm2, %v5459_v60  ;;  %v3964_v32 = vld [vmem:[%s7388_s5 + $0x790] sm:$0xff] }
 0x360   :  { %2154 = vmatpush.msra.mxu1 %v5469_v17 }
 0x361   :  { %v1713_v50 = vpop.f32.mrf.mxu2 }
 0x362   :  { %2155 = vmatpush.msra.mxu1 %v5488_v26  ;;  %v6274_v56 = vadd.f32 %v1713_v50, %v1691_v42  ;;  %v1618_v48 = vpop.f32.mrf.mxu0  ;;  %v3955_v42 = vld [vmem:[%s7388_s5 + $0x748] sm:$0xff]  ;;  %v3953_v50 = vld [vmem:[%s7388_s5 + $0x738] sm:$0xff] }
 0x363   :  { %v1619_v0 = vadd.f32 %v1618_v48, %v1595_v11  ;;  %v6283_v11 = vld [vmem:[%s7387_s4 + $0x30] sm:$0xff]  ;;  %v3962_v48 = vld [vmem:[%s7388_s5 + $0x780] sm:$0xff] }
 0x364   :  { %2156 = vmatpush.msra.mxu1 %v5498_v29  ;;  %v1670_v4 = vpop.f32.mrf.mxu3  ;;  %v1817_v9 = vpop.f32.mrf.mxu1 }
 0x365   :  { %v1671_v30 = vadd.f32 %v1670_v4, %v1573_v15  ;;  %v1642_v34 = vadd.f32 %v1641_v24, %v1619_v0  ;;  %1964 = vmatmul.f32.gmra.mxu1 %v1817_v9  ;;  %2033 = vmatmul.f32.gmra.mxu0 %v1817_v9  ;;  %v3994_v15 = vld [vmem:[%s7388_s5 + $0x880] sm:$0xff]  ;;  %v3951_v4 = vld [vmem:[%s7388_s5 + $0x728] sm:$0xff]  ;;  %v3980_v9 = vld [vmem:[%s7388_s5 + $0x810] sm:$0xff] }
 0x366   :  { %2157 = vmatpush.msra.mxu1 %v5508_v28  ;;  %v3982_v0 = vld [vmem:[%s7388_s5 + $0x820] sm:$0xff] }
 0x367   :  { %v1694_v43 = vadd.f32 %v1693_v8, %v1671_v30  ;;  %v3996_v8 = vld [vmem:[%s7388_s5 + $0x890] sm:$0xff]  ;;  %v3949_v30 = vld [vmem:[%s7388_s5 + $0x718] sm:$0xff] }
 0x369   :  { %v1716_v44 = vpop.f32.mrf.mxu2 }
 0x36a   :  { %v6278_v49 = vadd.f32 %v1716_v44, %v1694_v43  ;;  %v1736_v16 = vpop.f32.mrf.mxu0  ;;  %v3947_v43 = vld [vmem:[%s7388_s5 + $0x708] sm:$0xff]  ;;  %v3976_v44 = vld [vmem:[%s7388_s5 + $0x7f0] sm:$0xff] }
 0x36b   :  { %v1737_v55 = vadd.f32 %v1736_v16, %v1639_v46  ;;  %v3984_v46 = vld [vmem:[%s7388_s5 + $0x830] sm:$0xff]  ;;  %v3945_v16 = vld [vmem:[%s7388_s5 + $0x6f8] sm:$0xff] }
 0x36c   :  { %v1782_v52 = vpop.f32.mrf.mxu3 }
 0x36d   :  { %3933 = vmatmul.msk.f32.vlgmr.msra.gmra.mxu0 %vm1190_vm3, %v6283_v11 }
 0x371   :  { %v1759_v47 = vpop.f32.mrf.mxu2 }
 0x372   :  { %v1760_v57 = vadd.f32 %v1759_v47, %v1737_v55  ;;  %v1739_v33 = vpop.f32.mrf.mxu0  ;;  %v3974_v55 = vld [vmem:[%s7388_s5 + $0x7e0] sm:$0xff]  ;;  %v3941_v47 = vld [vmem:[%s7388_s5 + $0x6d8] sm:$0xff] }
 0x373   :  { %v1740_v58 = vadd.f32 %v1739_v33, %v1642_v34  ;;  %v3978_v34 = vld [vmem:[%s7388_s5 + $0x800] sm:$0xff]  ;;  %v3939_v33 = vld [vmem:[%s7388_s5 + $0x6c8] sm:$0xff] }
 0x374   :  { %v1785_v59 = vpop.f32.mrf.mxu3  ;;  %v6287_v10 = vadd.f32 %v1782_v52, %v1760_v57  ;;  %v3943_v52 = vld [vmem:[%s7388_s5 + $0x6e8] sm:$0xff]  ;;  %v3970_v57 = vld [vmem:[%s7388_s5 + $0x7c0] sm:$0xff] }
 0x375   :  { %3934 = vmatmul.msk.f32.gmra.mxu0 %vm1190_vm3, %v6292_v45 }
 0x379   :  { %v1762_v12 = vpop.f32.mrf.mxu2 }
 0x37a   :  { %v1763_v51 = vadd.f32 %v1762_v12, %v1740_v58  ;;  %v1860_v3 = vpop.f32.mrf.mxu0  ;;  %v4002_v58 = vld [vmem:[%s7388_s5 + $0x8c0] sm:$0xff]  ;;  %v3997_v12 = vld [vmem:[%s7388_s5 + $0x898] sm:$0xff] }
 0x37b   :  { %3923 = vmatmul.msk.f32.vlgmr.msra.gmra.mxu3 %vm1499_vm4, %v1860_v3  ;;  %3925 = vmatmul.msk.f32.vlgmr.msrb.gmra.mxu1 %vm1499_vm4, %v1860_v3  ;;  %v3995_v3 = vld [vmem:[%s7388_s5 + $0x888] sm:$0xff] }
 0x37c   :  { %v1837_v20 = vpop.f32.mrf.mxu3  ;;  %v6307_v5 = vadd.f32 %v1785_v59, %v1763_v51  ;;  %2267 = vmatpush.msra.mxu3 %v4000_v62  ;;  %2313 = vmatpush.msrb.mxu1 %v3969_v1  ;;  %v4001_v59 = vld [vmem:[%s7388_s5 + $0x8b8] sm:$0xff]  ;;  %v3946_v51 = vld [vmem:[%s7388_s5 + $0x700] sm:$0xff]  ;;  %v3944_v1 = vld [vmem:[%s7388_s5 + $0x6f0] sm:$0xff] }
 0x37d   :  { %1984 = vmatmul.f32.vlgmr.msra.gmra.mxu2 %v1837_v20 }
 0x37e   :  { %2268 = vmatpush.msra.mxu3 %v3998_v2  ;;  %2314 = vmatpush.msrb.mxu1 %v3967_v7  ;;  %v3993_v2 = vld [vmem:[%s7388_s5 + $0x878] sm:$0xff] }
 0x37f   :  { %2244 = vmatpush.msra.mxu2 %v3968_v37  ;;  %v3983_v37 = vld [vmem:[%s7388_s5 + $0x828] sm:$0xff] }
 0x380   :  { %2269 = vmatpush.msra.mxu3 %v3996_v8  ;;  %2315 = vmatpush.msrb.mxu1 %v3965_v63  ;;  %v3940_v8 = vld [vmem:[%s7388_s5 + $0x6d0] sm:$0xff]  ;;  %v3991_v63 = vld [vmem:[%s7388_s5 + $0x868] sm:$0xff] }
 0x381   :  { %2245 = vmatpush.msra.mxu2 %v3966_v38 }
 0x382   :  { %2270 = vmatpush.msra.mxu3 %v3994_v15  ;;  %v1863_v21 = vpop.f32.mrf.mxu0  ;;  %2316 = vmatpush.msrb.mxu1 %v3963_v18  ;;  %v3989_v15 = vld [vmem:[%s7388_s5 + $0x858] sm:$0xff] }
 0x383   :  { %3924 = vmatmul.msk.f32.gmra.mxu3 %vm1499_vm4, %v1863_v21  ;;  %3926 = vmatmul.msk.f32.gmra.mxu1 %vm1499_vm4, %v1863_v21  ;;  %v4009_v21 = vld [vmem:[%s7388_s5 + $0x8f8] sm:$0xff] }
 0x384   :  { %v1840_v24 = vpop.f32.mrf.mxu3  ;;  %2271 = vmatpush.msra.mxu3 %v3992_v19  ;;  %2317 = vmatpush.msrb.mxu1 %v3961_v22  ;;  %v3938_v19 = vld [vmem:[%s7388_s5 + $0x6c0] sm:$0xff]  ;;  %v3987_v22 = vld [vmem:[%s7388_s5 + $0x848] sm:$0xff] }
 0x385   :  { %1987 = vmatmul.f32.gmra.mxu2 %v1840_v24 }
 0x386   :  { %2272 = vmatpush.msra.mxu3 %v3990_v35  ;;  %2318 = vmatpush.msrb.mxu1 %v3959_v36  ;;  %v4005_v35 = vld [vmem:[%s7388_s5 + $0x8d8] sm:$0xff] }
 0x387   :  { %2246 = vmatpush.msra.mxu2 %v3964_v32  ;;  %v3985_v36 = vld [vmem:[%s7388_s5 + $0x838] sm:$0xff] }
 0x388   :  { %2273 = vmatpush.msra.mxu3 %v3988_v39  ;;  %2319 = vmatpush.msrb.mxu1 %v3957_v31  ;;  %v4003_v39 = vld [vmem:[%s7388_s5 + $0x8c8] sm:$0xff]  ;;  %v3981_v31 = vld [vmem:[%s7388_s5 + $0x818] sm:$0xff] }
 0x389   :  { %2247 = vmatpush.msra.mxu2 %v3962_v48 }
 0x38a   :  { %2274 = vmatpush.msra.mxu3 %v3986_v41  ;;  %2320 = vmatpush.msrb.mxu1 %v3955_v42  ;;  %v3979_v41 = vld [vmem:[%s7388_s5 + $0x808] sm:$0xff]  ;;  %v3977_v42 = vld [vmem:[%s7388_s5 + $0x7f8] sm:$0xff] }
 0x38b   :  { %2053 = vmatmul.f32.vlgmr.msrb.gmra.mxu3 %v1837_v20  ;;  %3936 = vmatmul.msk.f32.vlgmr.msra.gmra.mxu1 %vm1190_vm3, %v6283_v11  ;;  %v3942_v20 = vld [vmem:[%s7388_s5 + $0x6e0] sm:$0xff] }
 0x38c   :  { %2275 = vmatpush.msra.mxu3 %v3984_v46  ;;  %2321 = vmatpush.msrb.mxu1 %v3953_v50  ;;  %v3975_v46 = vld [vmem:[%s7388_s5 + $0x7e8] sm:$0xff]  ;;  %v3973_v50 = vld [vmem:[%s7388_s5 + $0x7d8] sm:$0xff] }
 0x38d   :  { %3930 = vmatmul.msk.f32.vlgmr.msrb.gmra.mxu2 %vm1190_vm3, %v6283_v11  ;;  %v3972_v11 = vld [vmem:[%s7388_s5 + $0x7d0] sm:$0xff] }
 0x38e   :  { %2276 = vmatpush.msra.mxu3 %v3982_v0  ;;  %2322 = vmatpush.msrb.mxu1 %v3951_v4  ;;  %v3971_v4 = vld [vmem:[%s7388_s5 + $0x7c8] sm:$0xff] }
 0x390   :  { %2277 = vmatpush.msra.mxu3 %v3980_v9  ;;  %2323 = vmatpush.msrb.mxu1 %v3949_v30 }
 0x392   :  { %2278 = vmatpush.msra.mxu3 %v3978_v34  ;;  %2324 = vmatpush.msrb.mxu1 %v3947_v43  ;;  %v4014_v43 = vld [vmem:[%s7387_s4 + $0x40] sm:$0xff] }
 0x393   :  { %2056 = vmatmul.f32.gmra.mxu3 %v1840_v24  ;;  %3937 = vmatmul.msk.f32.gmra.mxu1 %vm1190_vm3, %v6292_v45  ;;  %v4007_v24 = vld [vmem:[%s7388_s5 + $0x8e8] sm:$0xff] }
 0x394   :  { %2279 = vmatpush.msra.mxu3 %v3976_v44  ;;  %2325 = vmatpush.msrb.mxu1 %v3945_v16 }
 0x395   :  { %3931 = vmatmul.msk.f32.gmra.mxu2 %vm1190_vm3, %v6292_v45  ;;  %v3999_v45 = vld [vmem:[%s7388_s5 + $0x8a8] sm:$0xff] }
 0x396   :  { %2280 = vmatpush.msra.mxu3 %v3974_v55  ;;  %2326 = vmatpush.msrb.mxu1 %v3943_v52 }
 0x398   :  { %2281 = vmatpush.msra.mxu3 %v3972_v11  ;;  %2327 = vmatpush.msrb.mxu1 %v3941_v47 }
 0x39a   :  { %2282 = vmatpush.msra.mxu3 %v3970_v57  ;;  %2328 = vmatpush.msrb.mxu1 %v3939_v33  ;;  %v4015_v57 = vld [vmem:[%s7387_s4 + $0x48] sm:$0x3f] }
 0x39c   :  { %4016 = vmatpush.msk.msrb.mxu3 %vm1197_vm2, %v5430_v40  ;;  %4019 = vmatpush.msk.msra.mxu1 %vm1197_vm2, %v5454_v54  ;;  %v3960_v40 = vld [vmem:[%s7388_s5 + $0x770] sm:$0xff] }
 0x39d   :  { %2248 = vmatpush.msra.mxu2 %v3960_v40  ;;  %v3952_v54 = vld [vmem:[%s7388_s5 + $0x730] sm:$0xff] }
 0x39e   :  { %2407 = vmatpush.msrb.mxu3 %v5436_v61  ;;  %2430 = vmatpush.msra.mxu1 %v5464_v14  ;;  %v3958_v61 = vld [vmem:[%s7388_s5 + $0x760] sm:$0xff]  ;;  %v4008_v14 = vld [vmem:[%s7388_s5 + $0x8f0] sm:$0xff] }
 0x39f   :  { %2249 = vmatpush.msra.mxu2 %v3958_v61  ;;  %2302 = vmatpush.msrb.mxu0 %v4008_v14 }
 0x3a0   :  { %2408 = vmatpush.msrb.mxu3 %v5443_v53  ;;  %2431 = vmatpush.msra.mxu1 %v5484_v23  ;;  %v3956_v53 = vld [vmem:[%s7388_s5 + $0x750] sm:$0xff]  ;;  %v4006_v23 = vld [vmem:[%s7388_s5 + $0x8e0] sm:$0xff] }
 0x3a1   :  { %2250 = vmatpush.msra.mxu2 %v3956_v53  ;;  %2303 = vmatpush.msrb.mxu0 %v4006_v23 }
 0x3a2   :  { %2409 = vmatpush.msrb.mxu3 %v5451_v13  ;;  %2432 = vmatpush.msra.mxu1 %v5493_v25  ;;  %v3954_v13 = vld [vmem:[%s7388_s5 + $0x740] sm:$0xff]  ;;  %v3948_v25 = vld [vmem:[%s7388_s5 + $0x710] sm:$0xff] }
 0x3a3   :  { %2251 = vmatpush.msra.mxu2 %v3954_v13 }
 0x3a4   :  { %2410 = vmatpush.msrb.mxu3 %v5461_v6  ;;  %2433 = vmatpush.msra.mxu1 %v5501_v27  ;;  %v3950_v6 = vld [vmem:[%s7388_s5 + $0x720] sm:$0xff]  ;;  %v4004_v27 = vld [vmem:[%s7388_s5 + $0x8d0] sm:$0xff] }
 0x3a5   :  { %2252 = vmatpush.msra.mxu2 %v3952_v54  ;;  %2304 = vmatpush.msrb.mxu0 %v4004_v27  ;;  %v4045_v27 = vld [vmem:[%s7388_s5 + $0x9a0] sm:$0xff] }
 0x3a7   :  { %2253 = vmatpush.msra.mxu2 %v3950_v6  ;;  %2305 = vmatpush.msrb.mxu0 %v4002_v58  ;;  %v4043_v58 = vld [vmem:[%s7388_s5 + $0x990] sm:$0xff] }
 0x3a9   :  { %2254 = vmatpush.msra.mxu2 %v3948_v25  ;;  %2336 = vmatpush.msra.mxu0 %v4001_v59  ;;  %v4056_v59 = vld [vmem:[%s7388_s5 + $0x9f8] sm:$0xff] }
 0x3ab   :  { %2337 = vmatpush.msra.mxu0 %v3999_v45  ;;  %2255 = vmatpush.msra.mxu2 %v3946_v51  ;;  %v4087_v45 = vld [vmem:[%s7388_s5 + $0xaf0] sm:$0xff] }
 0x3ad   :  { %2338 = vmatpush.msra.mxu0 %v3997_v12  ;;  %2256 = vmatpush.msra.mxu2 %v3944_v1  ;;  %v4041_v12 = vld [vmem:[%s7388_s5 + $0x980] sm:$0xff]  ;;  %v4083_v1 = vld [vmem:[%s7388_s5 + $0xad0] sm:$0xff] }
 0x3af   :  { %2339 = vmatpush.msra.mxu0 %v3995_v3  ;;  %2257 = vmatpush.msra.mxu2 %v3942_v20  ;;  %v4085_v3 = vld [vmem:[%s7388_s5 + $0xae0] sm:$0xff]  ;;  %v4039_v20 = vld [vmem:[%s7388_s5 + $0x970] sm:$0xff] }
 0x3b1   :  { %2340 = vmatpush.msra.mxu0 %v3993_v2  ;;  %2258 = vmatpush.msra.mxu2 %v3940_v8  ;;  %v4052_v2 = vld [vmem:[%s7388_s5 + $0x9d8] sm:$0xff]  ;;  %v4037_v8 = vld [vmem:[%s7388_s5 + $0x960] sm:$0xff] }
 0x3b3   :  { %2341 = vmatpush.msra.mxu0 %v3991_v63  ;;  %2259 = vmatpush.msra.mxu2 %v3938_v19  ;;  %v4050_v63 = vld [vmem:[%s7388_s5 + $0x9c8] sm:$0xff]  ;;  %v4079_v19 = vld [vmem:[%s7388_s5 + $0xab0] sm:$0xff] }
 0x3b5   :  { %2342 = vmatpush.msra.mxu0 %v3989_v15  ;;  %2371 = vmatpush.msrb.mxu2 %v4009_v21  ;;  %v4035_v15 = vld [vmem:[%s7388_s5 + $0x950] sm:$0xff]  ;;  %v4033_v21 = vld [vmem:[%s7388_s5 + $0x940] sm:$0xff] }
 0x3b7   :  { %2343 = vmatpush.msra.mxu0 %v3987_v22  ;;  %2372 = vmatpush.msrb.mxu2 %v4007_v24  ;;  %v4046_v22 = vld [vmem:[%s7388_s5 + $0x9a8] sm:$0xff] }
 0x3b9   :  { %2344 = vmatpush.msra.mxu0 %v3985_v36  ;;  %2373 = vmatpush.msrb.mxu2 %v4005_v35  ;;  %v4077_v35 = vld [vmem:[%s7388_s5 + $0xaa0] sm:$0xff]  ;;  %v4095_v36 = vld [vmem:[%s7388_s5 + $0xb30] sm:$0xff] }
 0x3bb   :  { %2345 = vmatpush.msra.mxu0 %v3983_v37  ;;  %2374 = vmatpush.msrb.mxu2 %v4003_v39  ;;  %v4075_v37 = vld [vmem:[%s7388_s5 + $0xa90] sm:$0xff]  ;;  %v4073_v39 = vld [vmem:[%s7388_s5 + $0xa80] sm:$0xff] }
 0x3bd   :  { %2346 = vmatpush.msra.mxu0 %v3981_v31  ;;  %v4091_v31 = vld [vmem:[%s7388_s5 + $0xb10] sm:$0xff] }
 0x3bf   :  { %2347 = vmatpush.msra.mxu0 %v3979_v41  ;;  %v4044_v41 = vld [vmem:[%s7388_s5 + $0x998] sm:$0xff] }
 0x3c1   :  { %2348 = vmatpush.msra.mxu0 %v3977_v42  ;;  %v4029_v42 = vld [vmem:[%s7388_s5 + $0x920] sm:$0xff] }
 0x3c3   :  { %2349 = vmatpush.msra.mxu0 %v3975_v46  ;;  %v4042_v46 = vld [vmem:[%s7388_s5 + $0x988] sm:$0xff] }
 0x3c5   :  { %2350 = vmatpush.msra.mxu0 %v3973_v50  ;;  %v4027_v50 = vld [vmem:[%s7388_s5 + $0x910] sm:$0xff] }
 0x3c7   :  { %2351 = vmatpush.msra.mxu0 %v3971_v4 }
 0x3da   :  { %v6472_v62 = vpop.f32.mrf.mxu0  ;;  %v1962_v7 = vpop.f32.mrf.mxu1 }
 0x3e2   :  { %v6498_v18 = vpop.f32.mrf.mxu0  ;;  %v1965_v38 = vpop.f32.mrf.mxu1 }
 0x3ea   :  { %v2136_v32 = vpop.f32.mrf.mxu0 }
 0x3eb   :  { %2283 = vmatmul.f32.vlgmr.msra.gmra.mxu3 %v2136_v32 }
 0x3f2   :  { %v2139_v0 = vpop.f32.mrf.mxu0 }
 0x3f3   :  { %2286 = vmatmul.f32.gmra.mxu3 %v2139_v0 }
 0x3f8   :  { %v2077_v48 = vpop.f32.mrf.mxu1 }
 0x3fb   :  { %4017 = vmatmul.msk.f32.vlgmr.msrb.gmra.mxu3 %vm1190_vm3, %v4014_v43 }
 0x3fe   :  { %v2008_v9 = vpop.f32.mrf.mxu3 }
 0x400   :  { %v1985_v30 = vpop.f32.mrf.mxu2  ;;  %v2080_v16 = vpop.f32.mrf.mxu1 }
 0x401   :  { %v1986_v34 = vadd.f32 %v1985_v30, %v1962_v7  ;;  %v4081_v7 = vld [vmem:[%s7388_s5 + $0xac0] sm:$0xff]  ;;  %v4040_v30 = vld [vmem:[%s7388_s5 + $0x978] sm:$0xff] }
 0x403   :  { %v2009_v44 = vadd.f32 %v2008_v9, %v1986_v34  ;;  %4018 = vmatmul.msk.f32.gmra.mxu3 %vm1190_vm3, %v4015_v57  ;;  %v4025_v9 = vld [vmem:[%s7388_s5 + $0x900] sm:$0xff] }
 0x404   :  { %v4069_v34 = vld [vmem:[%s7388_s5 + $0xa60] sm:$0xff] }
 0x405   :  { %v6547_v55 = vadd.f32 %v2009_v44, %v6274_v56  ;;  %v4067_v44 = vld [vmem:[%s7388_s5 + $0xa50] sm:$0xff] }
 0x406   :  { %v2011_v52 = vpop.f32.mrf.mxu3 }
 0x408   :  { %v1988_v11 = vpop.f32.mrf.mxu2  ;;  %v2159_v40 = vpop.f32.mrf.mxu1 }
 0x409   :  { %v1989_v47 = vadd.f32 %v1988_v11, %v1965_v38  ;;  %4010 = vmatmul.msk.f32.vlgmr.msrb.gmra.mxu0 %vm1499_vm4, %v2159_v40  ;;  %v4093_v38 = vld [vmem:[%s7388_s5 + $0xb20] sm:$0xff] }
 0x40a   :  { %2566 = vmatpush.msrb.mxu0 %v4087_v45  ;;  %v4065_v11 = vld [vmem:[%s7388_s5 + $0xa40] sm:$0xff]  ;;  %v4094_v45 = vld [vmem:[%s7388_s5 + $0xb28] sm:$0xff] }
 0x40b   :  { %v2012_v33 = vadd.f32 %v2011_v52, %v1989_v47  ;;  %v4038_v52 = vld [vmem:[%s7388_s5 + $0x968] sm:$0xff]  ;;  %v4084_v47 = vld [vmem:[%s7388_s5 + $0xad8] sm:$0xff] }
 0x40c   :  { %2567 = vmatpush.msrb.mxu0 %v4085_v3  ;;  %v4072_v3 = vld [vmem:[%s7388_s5 + $0xa78] sm:$0xff] }
 0x40d   :  { %v6554_v61 = vadd.f32 %v2012_v33, %v6278_v49  ;;  %v4036_v33 = vld [vmem:[%s7388_s5 + $0x958] sm:$0xff] }
 0x40e   :  { %v2054_v53 = vpop.f32.mrf.mxu3  ;;  %2568 = vmatpush.msrb.mxu0 %v4083_v1 }
 0x40f   :  { %v2055_v56 = vadd.f32 %v2054_v53, %v6472_v62  ;;  %v4054_v62 = vld [vmem:[%s7388_s5 + $0x9e8] sm:$0xff]  ;;  %v4063_v53 = vld [vmem:[%s7388_s5 + $0xa30] sm:$0xff] }
 0x410   :  { %v2113_v13 = vpop.f32.mrf.mxu2  ;;  %v2162_v6 = vpop.f32.mrf.mxu1  ;;  %2569 = vmatpush.msrb.mxu0 %v4081_v7  ;;  %v4070_v7 = vld [vmem:[%s7388_s5 + $0xa68] sm:$0xff] }
 0x411   :  { %2260 = vmatmul.f32.vlgmr.msra.gmra.mxu2 %v2113_v13  ;;  %2329 = vmatmul.f32.vlgmr.msrb.gmra.mxu1 %v2113_v13  ;;  %v2078_v54 = vadd.f32 %v2077_v48, %v2055_v56  ;;  %v4071_v48 = vld [vmem:[%s7388_s5 + $0xa70] sm:$0xff]  ;;  %v4082_v56 = vld [vmem:[%s7388_s5 + $0xac8] sm:$0xff] }
 0x412   :  { %4022 = vmatpush.msk.msra.mxu2 %vm1197_vm2, %v5459_v60  ;;  %4011 = vmatmul.msk.f32.gmra.mxu0 %vm1499_vm4, %v2162_v6  ;;  %v4055_v60 = vld [vmem:[%s7388_s5 + $0x9f0] sm:$0xff] }
 0x413   :  { %v6562_v14 = vadd.f32 %v2078_v54, %v6287_v10  ;;  %2543 = vmatpush.msra.mxu3 %v4055_v60  ;;  %2570 = vmatpush.msrb.mxu0 %v4079_v19  ;;  %v4032_v54 = vld [vmem:[%s7388_s5 + $0x938] sm:$0xff] }
 0x414   :  { %2453 = vmatpush.msra.mxu2 %v5469_v17  ;;  %2601 = vmatpush.msrb.mxu1 %v4095_v36 }
 0x415   :  { %2571 = vmatpush.msrb.mxu0 %v4077_v35 }
 0x416   :  { %2454 = vmatpush.msra.mxu2 %v5488_v26  ;;  %v2057_v49 = vpop.f32.mrf.mxu3  ;;  %v4053_v26 = vld [vmem:[%s7388_s5 + $0x9e0] sm:$0xff]  ;;  %2602 = vmatpush.msrb.mxu1 %v4093_v38 }
 0x417   :  { %v2058_v23 = vadd.f32 %v2057_v49, %v6498_v18  ;;  %2544 = vmatpush.msra.mxu3 %v4053_v26  ;;  %v4048_v18 = vld [vmem:[%s7388_s5 + $0x9b8] sm:$0xff]  ;;  %2572 = vmatpush.msrb.mxu0 %v4075_v37  ;;  %v4057_v26 = vld [vmem:[%s7388_s5 + $0xa00] sm:$0xff] }
 0x418   :  { %2455 = vmatpush.msra.mxu2 %v5498_v29  ;;  %v2116_v25 = vpop.f32.mrf.mxu2  ;;  %v4051_v29 = vld [vmem:[%s7388_s5 + $0x9d0] sm:$0xff]  ;;  %2603 = vmatpush.msrb.mxu1 %v4091_v31  ;;  %v4080_v49 = vld [vmem:[%s7388_s5 + $0xab8] sm:$0xff] }
 0x419   :  { %2263 = vmatmul.f32.gmra.mxu2 %v2116_v25  ;;  %2332 = vmatmul.f32.gmra.mxu1 %v2116_v25  ;;  %v2081_v17 = vadd.f32 %v2080_v16, %v2058_v23  ;;  %v4086_v16 = vld [vmem:[%s7388_s5 + $0xae8] sm:$0xff]  ;;  %v4059_v23 = vld [vmem:[%s7388_s5 + $0xa10] sm:$0xff]  ;;  %v4060_v37 = vld [vmem:[%s7388_s5 + $0xa18] sm:$0xff] }
 0x41a   :  { %2456 = vmatpush.msra.mxu2 %v5508_v28  ;;  %2352 = vmatmul.f32.vlgmr.msra.gmra.mxu0 %v2136_v32  ;;  %v4049_v28 = vld [vmem:[%s7388_s5 + $0x9c0] sm:$0xff]  ;;  %v4031_v32 = vld [vmem:[%s7388_s5 + $0x930] sm:$0xff]  ;;  %v4078_v25 = vld [vmem:[%s7388_s5 + $0xaa8] sm:$0xff] }
 0x41b   :  { %v6573_v10 = vadd.f32 %v2081_v17, %v6307_v5  ;;  %2545 = vmatpush.msra.mxu3 %v4051_v29  ;;  %v4047_v5 = vld [vmem:[%s7388_s5 + $0x9b0] sm:$0xff]  ;;  %2573 = vmatpush.msrb.mxu0 %v4073_v39  ;;  %v4030_v17 = vld [vmem:[%s7388_s5 + $0x928] sm:$0xff]  ;;  %v4076_v29 = vld [vmem:[%s7388_s5 + $0xa98] sm:$0xff] }
 0x41c   :  { %v4058_v39 = vld [vmem:[%s7388_s5 + $0xa08] sm:$0xff] }
 0x41d   :  { %2546 = vmatpush.msra.mxu3 %v4049_v28  ;;  %2574 = vmatpush.msrb.mxu0 %v4071_v48  ;;  %v4096_v28 = vld [vmem:[%s7388_s5 + $0xb38] sm:$0xff] }
 0x41f   :  { %2547 = vmatpush.msra.mxu3 %v4047_v5  ;;  %2575 = vmatpush.msrb.mxu0 %v4069_v34  ;;  %v4028_v5 = vld [vmem:[%s7388_s5 + $0x918] sm:$0xff]  ;;  %v4122_v34 = vld [vmem:[%s7391_s8 + $0x140] sm:$0xff] }
 0x421   :  { %4012 = vmatmul.msk.f32.vlgmr.msrb.gmra.mxu2 %vm1499_vm4, %v2159_v40  ;;  %4020 = vmatmul.msk.f32.vlgmr.msra.gmra.mxu1 %vm1190_vm3, %v4014_v43  ;;  %v4034_v40 = vld [vmem:[%s7388_s5 + $0x948] sm:$0xff] }
 0x422   :  { %2355 = vmatmul.f32.gmra.mxu0 %v2139_v0  ;;  %2548 = vmatpush.msra.mxu3 %v4045_v27  ;;  %v4089_v0 = vld [vmem:[%s7388_s5 + $0xb00] sm:$0xff] }
 0x423   :  { %2612 = vmatpush.msrb.mxu2 %v4056_v59  ;;  %2604 = vmatpush.msrb.mxu1 %v4089_v0  ;;  %v4074_v59 = vld [vmem:[%s7388_s5 + $0xa88] sm:$0xff] }
 0x424   :  { %2549 = vmatpush.msra.mxu3 %v4043_v58  ;;  %2576 = vmatpush.msrb.mxu0 %v4067_v44  ;;  %v4120_v44 = vld [vmem:[%s7391_s8 + $0x130] sm:$0xff] }
 0x425   :  { %2613 = vmatpush.msrb.mxu2 %v4054_v62 }
 0x426   :  { %2550 = vmatpush.msra.mxu3 %v4041_v12  ;;  %2577 = vmatpush.msrb.mxu0 %v4065_v11  ;;  %v4026_v12 = vld [vmem:[%s7388_s5 + $0x908] sm:$0xff]  ;;  %v4117_v11 = vld [vmem:[%s7391_s8 + $0x118] sm:$0xff] }
 0x427   :  { %2614 = vmatpush.msrb.mxu2 %v4052_v2 }
 0x428   :  { %2551 = vmatpush.msra.mxu3 %v4039_v20  ;;  %2578 = vmatpush.msrb.mxu0 %v4063_v53  ;;  %v4092_v20 = vld [vmem:[%s7388_s5 + $0xb18] sm:$0xff]  ;;  %v4114_v53 = vld [vmem:[%s7391_s8 + $0x100] sm:$0xff] }
 0x429   :  { %4013 = vmatmul.msk.f32.gmra.mxu2 %vm1499_vm4, %v2162_v6  ;;  %4021 = vmatmul.msk.f32.gmra.mxu1 %vm1190_vm3, %v4015_v57  ;;  %v4061_v6 = vld [vmem:[%s7388_s5 + $0xa20] sm:$0xff] }
 0x42a   :  { %2552 = vmatpush.msra.mxu3 %v4037_v8  ;;  %2615 = vmatpush.msrb.mxu2 %v4050_v63  ;;  %v4068_v8 = vld [vmem:[%s7388_s5 + $0xa58] sm:$0xff] }
 0x42b   :  { %2579 = vmatpush.msrb.mxu0 %v4061_v6 }
 0x42c   :  { %2553 = vmatpush.msra.mxu3 %v4035_v15  ;;  %2616 = vmatpush.msrb.mxu2 %v4048_v18  ;;  %v4066_v18 = vld [vmem:[%s7388_s5 + $0xa48] sm:$0xff] }
 0x42d   :  { %2580 = vmatpush.msrb.mxu0 %v4059_v23  ;;  %v4110_v23 = vld [vmem:[%s7391_s8 + $0xe0] sm:$0xff] }
 0x42e   :  { %2554 = vmatpush.msra.mxu3 %v4033_v21  ;;  %2617 = vmatpush.msrb.mxu2 %v4046_v22  ;;  %v4064_v21 = vld [vmem:[%s7388_s5 + $0xa38] sm:$0xff] }
 0x42f   :  { %2581 = vmatpush.msrb.mxu0 %v4057_v26 }
 0x430   :  { %2555 = vmatpush.msra.mxu3 %v4031_v32  ;;  %2618 = vmatpush.msrb.mxu2 %v4044_v41 }
 0x431   :  { %4023 = vmatmul.msk.f32.vlgmr.msra.gmra.mxu2 %vm1190_vm3, %v4014_v43  ;;  %v4088_v43 = vld [vmem:[%s7388_s5 + $0xaf8] sm:$0xff] }
 0x432   :  { %2556 = vmatpush.msra.mxu3 %v4029_v42  ;;  %2619 = vmatpush.msrb.mxu2 %v4042_v46 }
 0x433   :  { %2635 = vmatpush.msra.mxu1 %v4088_v43  ;;  %v4121_v43 = vld [vmem:[%s7391_s8 + $0x138] sm:$0xff] }
 0x434   :  { %2557 = vmatpush.msra.mxu3 %v4027_v50  ;;  %2620 = vmatpush.msrb.mxu2 %v4040_v30  ;;  %v4123_v30 = vld [vmem:[%s7391_s8 + $0x148] sm:$0xff] }
 0x435   :  { %2636 = vmatpush.msra.mxu1 %v4086_v16  ;;  %v4119_v16 = vld [vmem:[%s7391_s8 + $0x128] sm:$0xff] }
 0x436   :  { %2558 = vmatpush.msra.mxu3 %v4025_v9  ;;  %2621 = vmatpush.msrb.mxu2 %v4038_v52  ;;  %v4118_v52 = vld [vmem:[%s7391_s8 + $0x120] sm:$0xff] }
 0x437   :  { %2637 = vmatpush.msra.mxu1 %v4084_v47  ;;  %v4116_v47 = vld [vmem:[%s7391_s8 + $0x110] sm:$0xff] }
 0x438   :  { %2622 = vmatpush.msrb.mxu2 %v4036_v33  ;;  %2670 = vmatpush.msrb.mxu3 %v4096_v28  ;;  %v4115_v33 = vld [vmem:[%s7391_s8 + $0x108] sm:$0xff] }
 0x439   :  { %4024 = vmatmul.msk.f32.gmra.mxu2 %vm1190_vm3, %v4015_v57  ;;  %2638 = vmatpush.msra.mxu1 %v4082_v56  ;;  %v4113_v56 = vld [vmem:[%s7391_s8 + $0xf8] sm:$0xff] }
 0x43a   :  { %2623 = vmatpush.msrb.mxu2 %v4034_v40  ;;  %2671 = vmatpush.msrb.mxu3 %v4094_v45 }
 0x43b   :  { %2639 = vmatpush.msra.mxu1 %v4080_v49  ;;  %v4111_v49 = vld [vmem:[%s7391_s8 + $0xe8] sm:$0xff] }
 0x43c   :  { %2624 = vmatpush.msrb.mxu2 %v4032_v54  ;;  %2672 = vmatpush.msrb.mxu3 %v4092_v20 }
 0x43d   :  { %2640 = vmatpush.msra.mxu1 %v4078_v25 }
 0x43e   :  { %2625 = vmatpush.msrb.mxu2 %v4030_v17 }
 0x43f   :  { %2641 = vmatpush.msra.mxu1 %v4076_v29  ;;  %v2685_v29 = vld [vmem:[%s7389_s6] sm:$0x3] }
 0x440   :  { %2626 = vmatpush.msrb.mxu2 %v4028_v5 }
 0x441   :  { %2642 = vmatpush.msra.mxu1 %v4074_v59 }
 0x442   :  { %2627 = vmatpush.msrb.mxu2 %v4026_v12 }
 0x443   :  { %2643 = vmatpush.msra.mxu1 %v4072_v3 }
 0x445   :  { %2644 = vmatpush.msra.mxu1 %v4070_v7  ;;  %v4105_v7 = vld [vmem:[%s7390_s7 + $0x4] sm:$0xf] }
 0x447   :  { %2645 = vmatpush.msra.mxu1 %v4068_v8  ;;  %v2766_v8 = vld [vmem:[%s7391_s8 + $0x78] sm:$0xff] }
 0x449   :  { %2646 = vmatpush.msra.mxu1 %v4066_v18  ;;  %v2764_v18 = vld [vmem:[%s7391_s8 + $0x68] sm:$0xff] }
 0x44b   :  { %2647 = vmatpush.msra.mxu1 %v4064_v21 }
 0x46e   :  { %v6611_v51 = vpop.f32.mrf.mxu3 }
 0x476   :  { %v6649_v24 = vpop.f32.mrf.mxu3 }
 0x47e   :  { %v6690_v4 = vpop.f32.mrf.mxu3 }
 0x47f   :  { %2559 = vmatmul.f32.vlgmr.msra.gmra.mxu3 %v6690_v4  ;;  %2628 = vmatmul.f32.vlgmr.msrb.gmra.mxu2 %v6690_v4 }
 0x486   :  { %v2307_v57 = vpop.f32.mrf.mxu0  ;;  %v2415_v60 = vpop.f32.mrf.mxu3 }
 0x487   :  { %2562 = vmatmul.f32.gmra.mxu3 %v2415_v60  ;;  %2631 = vmatmul.f32.gmra.mxu2 %v2415_v60 }
 0x48e   :  { %v6732_v13 = vpop.f32.mrf.mxu1 }
 0x48f   :  { %v2310_v58 = vpop.f32.mrf.mxu0 }
 0x494   :  { %v2261_v27 = vpop.f32.mrf.mxu2 }
 0x495   :  { %v2285_v62 = vadd.f32 %v6611_v51, %v2261_v27  ;;  %v4090_v51 = vld [vmem:[%s7388_s5 + $0xb08] sm:$0xff]  ;;  %v2687_v27 = vperm.slane %v2685_v29, 0 }
 0x496   :  { %v2333_v1 = vpop.f32.mrf.mxu1  ;;  %2673 = vmatpush.msrb.mxu3 %v4090_v51  ;;  %v2699_v51 = vld [vmem:[%s7390_s7] sm:$0xf] }
 0x497   :  { %v2308_v2 = vadd.f32 %v2307_v57, %v2285_v62  ;;  %v2353_v22 = vpop.f32.mrf.mxu0 }
 0x498   :  { %v2354_v38 = vadd.f32 %v2353_v22, %v6732_v13  ;;  %v4112_v13 = vld [vmem:[%s7391_s8 + $0xf0] sm:$0xff] }
 0x499   :  { %v6791_v63 = vadd.f32 %v2308_v2, %v6547_v55  ;;  %v4062_v55 = vld [vmem:[%s7388_s5 + $0xa28] sm:$0xff] }
 0x49a   :  { %2648 = vmatpush.msra.mxu1 %v4062_v55 }
 0x49c   :  { %v2264_v15 = vpop.f32.mrf.mxu2  ;;  %2649 = vmatpush.msra.mxu1 %v4060_v37  ;;  %v2762_v37 = vld [vmem:[%s7391_s8 + $0x58] sm:$0xff] }
 0x49d   :  { %v2288_v19 = vadd.f32 %v6649_v24, %v2264_v15  ;;  %v2765_v15 = vld [vmem:[%s7391_s8 + $0x70] sm:$0xff] }
 0x49e   :  { %v2435_v35 = vpop.f32.mrf.mxu1  ;;  %2650 = vmatpush.msra.mxu1 %v4058_v39 }
 0x49f   :  { %v2311_v36 = vadd.f32 %v2310_v58, %v2288_v19  ;;  %2582 = vmatmul.f32.vlgmr.msrb.gmra.mxu0 %v2435_v35  ;;  %v2356_v46 = vpop.f32.mrf.mxu0 }
 0x4a0   :  { %v2357_v50 = vadd.f32 %v2356_v46, %v2333_v1 }
 0x4a1   :  { %v6807_v24 = vadd.f32 %v2311_v36, %v6554_v61 }
 0x4a4   :  { %v2376_v31 = vpop.f32.mrf.mxu2 }
 0x4a5   :  { %v2377_v32 = vadd.f32 %v2376_v31, %v2354_v38  ;;  %v2688_v38 = vperm.slane %v2685_v29, 1  ;;  %v2761_v31 = vld [vmem:[%s7391_s8 + $0x50] sm:$0xff] }
 0x4a6   :  { %v2438_v41 = vpop.f32.mrf.mxu1  ;;  %v2769_v29 = vld [vmem:[%s7391_s8 + $0x90] sm:$0xff] }
 0x4a7   :  { %v6814_v42 = vadd.f32 %v2377_v32, %v6562_v14  ;;  %2585 = vmatmul.f32.gmra.mxu0 %v2438_v41  ;;  %v4125_v14 = vld [vmem:[%s7391_s8 + $0x158] sm:$0xff] }
 0x4ac   :  { %v2379_v61 = vpop.f32.mrf.mxu2 }
 0x4ad   :  { %v2380_v48 = vadd.f32 %v2379_v61, %v2357_v50 }
 0x4af   :  { %v6817_v0 = vadd.f32 %v2380_v48, %v6573_v10  ;;  %v4124_v10 = vld [vmem:[%s7391_s8 + $0x150] sm:$0xff]  ;;  %v2758_v48 = vld [vmem:[%s7391_s8 + $0x38] sm:$0xff] }
 0x4b4   :  { %v2458_v4 = vpop.f32.mrf.mxu2 }
 0x4b5   :  { %4097 = vmatmul.msk.f32.vlgmr.msrb.gmra.mxu1 %vm1499_vm4, %v2458_v4  ;;  %4099 = vmatmul.msk.f32.vlgmr.msrb.gmra.mxu3 %vm1499_vm4, %v2458_v4  ;;  %v4137_v4 = vld [vmem:[%s7391_s8 + $0x1b8] sm:$0xff] }
 0x4b6   :  { %2857 = vmatpush.msrb.mxu1 %v4125_v14  ;;  %v2778_v14 = vld [vmem:[%s7391_s8 + $0xd8] sm:$0xff] }
 0x4b8   :  { %2858 = vmatpush.msrb.mxu1 %v4124_v10  ;;  %v4136_v10 = vld [vmem:[%s7391_s8 + $0x1b0] sm:$0xff] }
 0x4ba   :  { %2859 = vmatpush.msrb.mxu1 %v4123_v30  ;;  %v2756_v30 = vld [vmem:[%s7391_s8 + $0x28] sm:$0xff] }
 0x4bc   :  { %v2461_v9 = vpop.f32.mrf.mxu2  ;;  %2860 = vmatpush.msrb.mxu1 %v4122_v34  ;;  %v2777_v34 = vld [vmem:[%s7391_s8 + $0xd0] sm:$0xff] }
 0x4bd   :  { %4098 = vmatmul.msk.f32.gmra.mxu1 %vm1499_vm4, %v2461_v9  ;;  %4100 = vmatmul.msk.f32.gmra.mxu3 %vm1499_vm4, %v2461_v9  ;;  %v2757_v9 = vld [vmem:[%s7391_s8 + $0x30] sm:$0xff] }
 0x4be   :  { %2861 = vmatpush.msrb.mxu1 %v4121_v43  ;;  %v4135_v43 = vld [vmem:[%s7391_s8 + $0x1a8] sm:$0xff] }
 0x4c0   :  { %2862 = vmatpush.msrb.mxu1 %v4120_v44  ;;  %v2755_v44 = vld [vmem:[%s7391_s8 + $0x20] sm:$0xff] }
 0x4c2   :  { %2863 = vmatpush.msrb.mxu1 %v4119_v16  ;;  %v2776_v16 = vld [vmem:[%s7391_s8 + $0xc8] sm:$0xff] }
 0x4c4   :  { %2864 = vmatpush.msrb.mxu1 %v4118_v52  ;;  %v4134_v52 = vld [vmem:[%s7391_s8 + $0x1a0] sm:$0xff] }
 0x4c5   :  { %2651 = vmatmul.f32.vlgmr.msra.gmra.mxu1 %v2435_v35  ;;  %v2763_v35 = vld [vmem:[%s7391_s8 + $0x60] sm:$0xff] }
 0x4c6   :  { %2865 = vmatpush.msrb.mxu1 %v4117_v11  ;;  %v2754_v11 = vld [vmem:[%s7391_s8 + $0x18] sm:$0xff] }
 0x4c8   :  { %2866 = vmatpush.msrb.mxu1 %v4116_v47  ;;  %v2775_v47 = vld [vmem:[%s7391_s8 + $0xc0] sm:$0xff] }
 0x4ca   :  { %2867 = vmatpush.msrb.mxu1 %v4115_v33  ;;  %v2753_v33 = vld [vmem:[%s7391_s8 + $0x10] sm:$0xff] }
 0x4cc   :  { %2868 = vmatpush.msrb.mxu1 %v4114_v53  ;;  %v4132_v53 = vld [vmem:[%s7391_s8 + $0x190] sm:$0xff] }
 0x4cd   :  { %2654 = vmatmul.f32.gmra.mxu1 %v2438_v41  ;;  %v2760_v41 = vld [vmem:[%s7391_s8 + $0x48] sm:$0xff] }
 0x4ce   :  { %2869 = vmatpush.msrb.mxu1 %v4113_v56  ;;  %v2752_v56 = vld [vmem:[%s7391_s8 + $0x8] sm:$0xff] }
 0x4d0   :  { %2870 = vmatpush.msrb.mxu1 %v4112_v13  ;;  %v2773_v13 = vld [vmem:[%s7391_s8 + $0xb0] sm:$0xff] }
 0x4d2   :  { %2871 = vmatpush.msrb.mxu1 %v4111_v49  ;;  %v2772_v49 = vld [vmem:[%s7391_s8 + $0xa8] sm:$0xff] }
 0x4d4   :  { %2872 = vmatpush.msrb.mxu1 %v4110_v23  ;;  %v4130_v23 = vld [vmem:[%s7391_s8 + $0x180] sm:$0xff] }
 0x502   :  { %v2560_v40 = vpop.f32.mrf.mxu3  ;;  %v2629_v62 = vpop.f32.mrf.mxu2 }
 0x50a   :  { %v2563_v60 = vpop.f32.mrf.mxu3  ;;  %v2632_v21 = vpop.f32.mrf.mxu2 }
 0x51c   :  { %v2583_v57 = vpop.f32.mrf.mxu0 }
 0x51d   :  { %v2584_v6 = vadd.f32 %v2583_v57, %v2560_v40  ;;  %v4133_v57 = vld [vmem:[%s7391_s8 + $0x198] sm:$0xff] }
 0x51e   :  { %v2774_v40 = vld [vmem:[%s7391_s8 + $0xb8] sm:$0xff] }
 0x524   :  { %v2586_v25 = vpop.f32.mrf.mxu0 }
 0x525   :  { %v2587_v26 = vadd.f32 %v2586_v25, %v2563_v60  ;;  %v2771_v25 = vld [vmem:[%s7391_s8 + $0xa0] sm:$0xff]  ;;  %v4129_v60 = vld [vmem:[%s7391_s8 + $0x178] sm:$0xff] }
 0x532   :  { %v2606_v54 = vpop.f32.mrf.mxu1 }
 0x533   :  { %v2607_v17 = vadd.f32 %v2606_v54, %v2584_v6  ;;  %v4131_v54 = vld [vmem:[%s7391_s8 + $0x188] sm:$0xff]  ;;  %v2751_v6 = vld [vmem:[%s7391_s8] sm:$0xff] }
 0x535   :  { %v2681_v5 = vadd.f32 %v2607_v17, %v6791_v63  ;;  %v2770_v17 = vld [vmem:[%s7391_s8 + $0x98] sm:$0xff] }
 0x537   :  { %v2691_v45 = vadd.f32 %v2687_v27, %v2681_v5  ;;  %v2768_v5 = vld [vmem:[%s7391_s8 + $0x88] sm:$0xff] }
 0x538   :  { %v2675_v20 = vpop.f32.mrf.mxu3 }
 0x539   :  { %v6878_v2 = vmax.f32 %v2691_v45, 0.0  ;;  %v4159_v45 = vld [vmem:[%s7391_s8 + $0x230] sm:$0xff] }
 0x53a   :  { %v2609_v28 = vpop.f32.mrf.mxu1 }
 0x53b   :  { %v2610_v58 = vadd.f32 %v2609_v28, %v2587_v26  ;;  %v4128_v26 = vld [vmem:[%s7391_s8 + $0x170] sm:$0xff]  ;;  %v4127_v28 = vld [vmem:[%s7391_s8 + $0x168] sm:$0xff] }
 0x53d   :  { %v2683_v59 = vadd.f32 %v2610_v58, %v6807_v24  ;;  %v2767_v58 = vld [vmem:[%s7391_s8 + $0x80] sm:$0xff] }
 0x53f   :  { %v2693_v12 = vadd.f32 %v2687_v27, %v2683_v59  ;;  %v4126_v27 = vld [vmem:[%s7391_s8 + $0x160] sm:$0xff]  ;;  %v4160_v59 = vld [vmem:[%s7391_s8 + $0x238] sm:$0xff] }
 0x540   :  { %v2678_v55 = vpop.f32.mrf.mxu3 }
 0x541   :  { %v6876_v3 = vmax.f32 %v2693_v12, 0.0  ;;  %v4158_v12 = vld [vmem:[%s7391_s8 + $0x228] sm:$0xff] }
 0x542   :  { %v2652_v1 = vpop.f32.mrf.mxu1 }
 0x543   :  { %4101 = vmatpush.msk.msra.mxu0 %vm2704_vm5, %v6876_v3  ;;  %4106 = vmatpush.msk.msra.mxu2 %vm2704_vm5, %v6876_v3  ;;  %v2653_v63 = vadd.f32 %v2652_v1, %v2629_v62  ;;  %v4157_v62 = vld [vmem:[%s7391_s8 + $0x220] sm:$0xff]  ;;  %v4156_v1 = vld [vmem:[%s7391_s8 + $0x218] sm:$0xff] }
 0x545   :  { %2726 = vmatpush.msra.mxu0 %v6878_v2  ;;  %2799 = vmatpush.msra.mxu2 %v6878_v2  ;;  %v2676_v19 = vadd.f32 %v2675_v20, %v2653_v63  ;;  %v4155_v20 = vld [vmem:[%s7391_s8 + $0x210] sm:$0xff] }
 0x546   :  { %4107 = vmatmul.msk.f32.vlgmr.msra.gmra.mxu2 %vm2700_vm6, %v4105_v7  ;;  %4102 = vmatmul.msk.f32.vlgmr.msra.gmra.mxu0 %vm2700_vm6, %v2699_v51  ;;  %v4151_v63 = vld [vmem:[%s7391_s8 + $0x1f0] sm:$0xff] }
 0x547   :  { %2900 = vmatpush.msrb.mxu2 %v2766_v8  ;;  %v2682_v24 = vadd.f32 %v2676_v19, %v6814_v42  ;;  %v2759_v42 = vld [vmem:[%s7391_s8 + $0x40] sm:$0xff]  ;;  %v4152_v8 = vld [vmem:[%s7391_s8 + $0x1f8] sm:$0xff] }
 0x548   :  { %v4148_v19 = vld [vmem:[%s7391_s8 + $0x1d8] sm:$0xff] }
 0x549   :  { %2901 = vmatpush.msrb.mxu2 %v2765_v15  ;;  %v2692_v46 = vadd.f32 %v2688_v38, %v2682_v24  ;;  %v4150_v15 = vld [vmem:[%s7391_s8 + $0x1e8] sm:$0xff] }
 0x54a   :  { %v2655_v22 = vpop.f32.mrf.mxu1  ;;  %v4140_v24 = vld [vmem:[%s7390_s7 + $0x8] sm:$0xf] }
 0x54b   :  { %v2656_v36 = vadd.f32 %v2655_v22, %v2632_v21  ;;  %2902 = vmatpush.msrb.mxu2 %v2764_v18  ;;  %v4149_v18 = vld [vmem:[%s7391_s8 + $0x1e0] sm:$0xff]  ;;  %v4147_v21 = vld [vmem:[%s7391_s8 + $0x1d0] sm:$0xff]  ;;  %v4146_v22 = vld [vmem:[%s7391_s8 + $0x1c8] sm:$0xff] }
 0x54d   :  { %v2679_v39 = vadd.f32 %v2678_v55, %v2656_v36  ;;  %2903 = vmatpush.msrb.mxu2 %v2763_v35  ;;  %v4145_v35 = vld [vmem:[%s7391_s8 + $0x1c0] sm:$0xff] }
 0x54f   :  { %v2684_v32 = vadd.f32 %v2679_v39, %v6817_v0  ;;  %2904 = vmatpush.msrb.mxu2 %v2762_v37  ;;  %v6925_v0 = vmax.f32 %v2692_v46, 0.0  ;;  %v4174_v37 = vld [vmem:[%s7390_s7 + $0xc] sm:$0xf]  ;;  %v4194_v39 = vld [vmem:[%s7391_s8 + $0x318] sm:$0xff] }
 0x550   :  { %v4192_v46 = vld [vmem:[%s7391_s8 + $0x308] sm:$0xff] }
 0x551   :  { %v2694_v50 = vadd.f32 %v2688_v38, %v2684_v32  ;;  %2905 = vmatpush.msrb.mxu2 %v2761_v31  ;;  %v4206_v31 = vld [vmem:[%s7391_s8 + $0x378] sm:$0xff]  ;;  %v4193_v32 = vld [vmem:[%s7391_s8 + $0x310] sm:$0xff] }
 0x553   :  { %v6920_v61 = vmax.f32 %v2694_v50, 0.0  ;;  %2906 = vmatpush.msrb.mxu2 %v2760_v41  ;;  %v4205_v41 = vld [vmem:[%s7391_s8 + $0x370] sm:$0xff]  ;;  %v4172_v50 = vld [vmem:[%s7391_s8 + $0x298] sm:$0xff] }
 0x555   :  { %2907 = vmatpush.msrb.mxu2 %v2759_v42  ;;  %4103 = vmatpush.msk.msrb.mxu0 %vm2704_vm5, %v6920_v61  ;;  %v4204_v42 = vld [vmem:[%s7391_s8 + $0x368] sm:$0xff] }
 0x556   :  { %4108 = vmatpush.msk.msra.mxu3 %vm2704_vm5, %v6920_v61  ;;  %4143 = vmatpush.msk.msra.mxu1 %vm2704_vm5, %v6920_v61 }
 0x557   :  { %2908 = vmatpush.msrb.mxu2 %v2758_v48  ;;  %2746 = vmatpush.msrb.mxu0 %v6925_v0  ;;  %v4191_v48 = vld [vmem:[%s7391_s8 + $0x300] sm:$0xff] }
 0x558   :  { %2819 = vmatpush.msra.mxu3 %v6925_v0  ;;  %2980 = vmatpush.msra.mxu1 %v6925_v0 }
 0x559   :  { %4104 = vmatmul.msk.f32.vlgmr.msrb.gmra.mxu0 %vm2700_vm6, %v2699_v51  ;;  %4109 = vmatmul.msk.f32.vlgmr.msra.gmra.mxu3 %vm2700_vm6, %v4105_v7  ;;  %v4154_v7 = vld [vmem:[%s7391_s8 + $0x208] sm:$0xff]  ;;  %v4153_v51 = vld [vmem:[%s7391_s8 + $0x200] sm:$0xff] }
 0x55a   :  { %2881 = vmatpush.msra.mxu0 %v4137_v4  ;;  %2909 = vmatpush.msrb.mxu2 %v2757_v9  ;;  %v4203_v4 = vld [vmem:[%s7391_s8 + $0x360] sm:$0xff]  ;;  %v4190_v9 = vld [vmem:[%s7391_s8 + $0x2f8] sm:$0xff] }
 0x55b   :  { %2924 = vmatpush.msrb.mxu3 %v2778_v14  ;;  %v4170_v14 = vld [vmem:[%s7391_s8 + $0x288] sm:$0xff] }
 0x55c   :  { %2882 = vmatpush.msra.mxu0 %v4136_v10  ;;  %2910 = vmatpush.msrb.mxu2 %v2756_v30  ;;  %v4202_v10 = vld [vmem:[%s7391_s8 + $0x358] sm:$0xff]  ;;  %v4189_v30 = vld [vmem:[%s7391_s8 + $0x2f0] sm:$0xff] }
 0x55d   :  { %2925 = vmatpush.msrb.mxu3 %v2777_v34  ;;  %v4169_v34 = vld [vmem:[%s7391_s8 + $0x280] sm:$0xff] }
 0x55e   :  { %2883 = vmatpush.msra.mxu0 %v4135_v43  ;;  %2911 = vmatpush.msrb.mxu2 %v2755_v44  ;;  %v4201_v43 = vld [vmem:[%s7391_s8 + $0x350] sm:$0xff]  ;;  %v4188_v44 = vld [vmem:[%s7391_s8 + $0x2e8] sm:$0xff] }
 0x55f   :  { %2926 = vmatpush.msrb.mxu3 %v2776_v16  ;;  %v4168_v16 = vld [vmem:[%s7391_s8 + $0x278] sm:$0xff] }
 0x560   :  { %2884 = vmatpush.msra.mxu0 %v4134_v52  ;;  %2912 = vmatpush.msrb.mxu2 %v2754_v11  ;;  %v4167_v52 = vld [vmem:[%s7391_s8 + $0x270] sm:$0xff]  ;;  %v4166_v11 = vld [vmem:[%s7391_s8 + $0x268] sm:$0xff] }
 0x561   :  { %2927 = vmatpush.msrb.mxu3 %v2775_v47  ;;  %v4165_v47 = vld [vmem:[%s7391_s8 + $0x260] sm:$0xff] }
 0x562   :  { %2885 = vmatpush.msra.mxu0 %v4133_v57  ;;  %2913 = vmatpush.msrb.mxu2 %v2753_v33  ;;  %v4164_v57 = vld [vmem:[%s7391_s8 + $0x258] sm:$0xff]  ;;  %v4163_v33 = vld [vmem:[%s7391_s8 + $0x250] sm:$0xff] }
 0x563   :  { %2928 = vmatpush.msrb.mxu3 %v2774_v40  ;;  %v4162_v40 = vld [vmem:[%s7391_s8 + $0x248] sm:$0xff] }
 0x564   :  { %2886 = vmatpush.msra.mxu0 %v4132_v53  ;;  %2914 = vmatpush.msrb.mxu2 %v2752_v56  ;;  %v4161_v53 = vld [vmem:[%s7391_s8 + $0x240] sm:$0xff] }
 0x565   :  { %2929 = vmatpush.msrb.mxu3 %v2773_v13  ;;  %v4187_v56 = vld [vmem:[%s7391_s8 + $0x2e0] sm:$0xff]  ;;  %v4200_v13 = vld [vmem:[%s7391_s8 + $0x348] sm:$0xff] }
 0x566   :  { %2887 = vmatpush.msra.mxu0 %v4131_v54  ;;  %2915 = vmatpush.msrb.mxu2 %v2751_v6  ;;  %v4186_v54 = vld [vmem:[%s7391_s8 + $0x2d8] sm:$0xff] }
 0x567   :  { %2930 = vmatpush.msrb.mxu3 %v2772_v49  ;;  %v4198_v6 = vld [vmem:[%s7391_s8 + $0x338] sm:$0xff]  ;;  %v4184_v49 = vld [vmem:[%s7391_s8 + $0x2c8] sm:$0xff] }
 0x568   :  { %4177 = vmatpush.msk.msra.mxu2 %vm2704_vm5, %v6920_v61  ;;  %2888 = vmatpush.msra.mxu0 %v4130_v23  ;;  %v4197_v23 = vld [vmem:[%s7391_s8 + $0x330] sm:$0xff] }
 0x569   :  { %2931 = vmatpush.msrb.mxu3 %v2771_v25  ;;  %v4183_v25 = vld [vmem:[%s7391_s8 + $0x2c0] sm:$0xff] }
 0x56a   :  { %3098 = vmatpush.msra.mxu2 %v6925_v0  ;;  %2889 = vmatpush.msra.mxu0 %v4129_v60  ;;  %v4196_v60 = vld [vmem:[%s7391_s8 + $0x328] sm:$0xff] }
 0x56b   :  { %2932 = vmatpush.msrb.mxu3 %v2770_v17  ;;  %v4182_v17 = vld [vmem:[%s7391_s8 + $0x2b8] sm:$0xff] }
 0x56c   :  { %2890 = vmatpush.msra.mxu0 %v4128_v26  ;;  %v4195_v26 = vld [vmem:[%s7391_s8 + $0x320] sm:$0xff] }
 0x56d   :  { %2933 = vmatpush.msrb.mxu3 %v2769_v29  ;;  %v4181_v29 = vld [vmem:[%s7391_s8 + $0x2b0] sm:$0xff] }
 0x56e   :  { %2891 = vmatpush.msra.mxu0 %v4127_v28  ;;  %v4180_v28 = vld [vmem:[%s7391_s8 + $0x2a8] sm:$0xff] }
 0x56f   :  { %2934 = vmatpush.msrb.mxu3 %v2768_v5 }
 0x570   :  { %2892 = vmatpush.msra.mxu0 %v4126_v27 }
 0x571   :  { %2935 = vmatpush.msrb.mxu3 %v2767_v58  ;;  %v4179_v58 = vld [vmem:[%s7391_s8 + $0x2a0] sm:$0xff] }
 0x572   :  { %4141 = vmatpush.msk.msrb.mxu0 %vm2704_vm5, %v6876_v3 }
 0x573   :  { %3017 = vmatpush.msra.mxu3 %v4160_v59  ;;  %v4240_v59 = vld [vmem:[%s7391_s8 + $0x458] sm:$0xff] }
 0x574   :  { %2960 = vmatpush.msrb.mxu0 %v6878_v2 }
 0x575   :  { %3018 = vmatpush.msra.mxu3 %v4159_v45  ;;  %v4239_v45 = vld [vmem:[%s7391_s8 + $0x450] sm:$0xff] }
 0x577   :  { %3019 = vmatpush.msra.mxu3 %v4158_v12  ;;  %v4228_v12 = vld [vmem:[%s7391_s8 + $0x3f8] sm:$0xff] }
 0x579   :  { %3020 = vmatpush.msra.mxu3 %v4157_v62  ;;  %v4238_v62 = vld [vmem:[%s7391_s8 + $0x448] sm:$0xff] }
 0x57b   :  { %3021 = vmatpush.msra.mxu3 %v4156_v1 }
 0x57d   :  { %3022 = vmatpush.msra.mxu3 %v4155_v20 }
 0x57f   :  { %3023 = vmatpush.msra.mxu3 %v4154_v7  ;;  %v4227_v7 = vld [vmem:[%s7391_s8 + $0x3f0] sm:$0xff] }
 0x581   :  { %3024 = vmatpush.msra.mxu3 %v4153_v51  ;;  %v4237_v51 = vld [vmem:[%s7391_s8 + $0x440] sm:$0xff] }
 0x583   :  { %3025 = vmatpush.msra.mxu3 %v4152_v8  ;;  %v4226_v8 = vld [vmem:[%s7391_s8 + $0x3e8] sm:$0xff] }
 0x585   :  { %3026 = vmatpush.msra.mxu3 %v4151_v63  ;;  %v4236_v63 = vld [vmem:[%s7391_s8 + $0x438] sm:$0xff] }
 0x587   :  { %3027 = vmatpush.msra.mxu3 %v4150_v15  ;;  %v4225_v15 = vld [vmem:[%s7391_s8 + $0x3e0] sm:$0xff] }
 0x589   :  { %3028 = vmatpush.msra.mxu3 %v4149_v18  ;;  %v4235_v18 = vld [vmem:[%s7391_s8 + $0x430] sm:$0xff] }
 0x58b   :  { %3029 = vmatpush.msra.mxu3 %v4148_v19  ;;  %v4224_v19 = vld [vmem:[%s7391_s8 + $0x3d8] sm:$0xff] }
 0x58d   :  { %3030 = vmatpush.msra.mxu3 %v4147_v21  ;;  %v4234_v21 = vld [vmem:[%s7391_s8 + $0x428] sm:$0xff] }
 0x58f   :  { %3031 = vmatpush.msra.mxu3 %v4146_v22 }
 0x591   :  { %3032 = vmatpush.msra.mxu3 %v4145_v35  ;;  %v4208_v35 = vld [vmem:[%s7390_s7 + $0x10] sm:$0xf] }
 0x5c3   :  { %v2728_v36 = vpop.f32.mrf.mxu0 }
 0x5c4   :  { %2916 = vmatmul.f32.vlgmr.msrb.gmra.mxu2 %v2728_v36  ;;  %v4223_v36 = vld [vmem:[%s7391_s8 + $0x3d0] sm:$0xff] }
 0x5c5   :  { %3159 = vmatpush.msrb.mxu2 %v4206_v31 }
 0x5c7   :  { %3160 = vmatpush.msrb.mxu2 %v4205_v41  ;;  %v4233_v41 = vld [vmem:[%s7391_s8 + $0x420] sm:$0xff] }
 0x5c9   :  { %v2801_v55 = vpop.f32.mrf.mxu2  ;;  %3161 = vmatpush.msrb.mxu2 %v4204_v42  ;;  %v4218_v42 = vld [vmem:[%s7391_s8 + $0x3a8] sm:$0xff] }
 0x5ca   :  { %2873 = vmatmul.f32.vlgmr.msrb.gmra.mxu1 %v2801_v55 }
 0x5cb   :  { %4175 = vmatpush.msk.msrb.mxu1 %vm2704_vm5, %v6876_v3  ;;  %3162 = vmatpush.msrb.mxu2 %v4203_v4 }
 0x5cc   :  { %4178 = vmatmul.msk.f32.vlgmr.msra.gmra.mxu2 %vm2700_vm6, %v4174_v37 }
 0x5cd   :  { %3078 = vmatpush.msrb.mxu1 %v6878_v2  ;;  %3163 = vmatpush.msrb.mxu2 %v4202_v10  ;;  %v4215_v10 = vld [vmem:[%s7391_s8 + $0x390] sm:$0xff] }
 0x5cf   :  { %3164 = vmatpush.msrb.mxu2 %v4201_v43 }
 0x5d1   :  { %3165 = vmatpush.msrb.mxu2 %v4200_v13 }
 0x5d2   :  { %4144 = vmatmul.msk.f32.vlgmr.msra.gmra.mxu1 %vm2700_vm6, %v4140_v24 }
 0x5d3   :  { %3135 = vmatpush.msra.mxu1 %v4194_v39 }
 0x5d5   :  { %3136 = vmatpush.msra.mxu1 %v4193_v32  ;;  %v4220_v32 = vld [vmem:[%s7391_s8 + $0x3b8] sm:$0xff] }
 0x5d6   :  { %v2748_v38 = vpop.f32.mrf.mxu0 }
 0x5d7   :  { %4139 = vmatmul.msk.f32.vlgmr.msrb.gmra.mxu3 %vm2853_vm7, %v2748_v38  ;;  %3137 = vmatpush.msra.mxu1 %v4192_v46  ;;  %v4221_v38 = vld [vmem:[%s7391_s8 + $0x3c0] sm:$0xff]  ;;  %v4219_v46 = vld [vmem:[%s7391_s8 + $0x3b0] sm:$0xff] }
 0x5d8   :  { %4211 = vmatpush.msk.msrb.mxu3 %vm2704_vm5, %v6920_v61 }
 0x5d9   :  { %3138 = vmatpush.msra.mxu1 %v4191_v48  ;;  %v4217_v48 = vld [vmem:[%s7391_s8 + $0x3a0] sm:$0xff] }
 0x5da   :  { %3216 = vmatpush.msrb.mxu3 %v6925_v0  ;;  %4176 = vmatmul.msk.f32.vlgmr.msrb.gmra.mxu1 %vm2700_vm6, %v4174_v37  ;;  %v4171_v0 = vld [vmem:[%s7391_s8 + $0x290] sm:$0xff]  ;;  %v4222_v37 = vld [vmem:[%s7391_s8 + $0x3c8] sm:$0xff] }
 0x5db   :  { %3139 = vmatpush.msra.mxu1 %v4190_v9  ;;  %v4216_v9 = vld [vmem:[%s7391_s8 + $0x398] sm:$0xff] }
 0x5dc   :  { %v2821_v61 = vpop.f32.mrf.mxu3 }
 0x5dd   :  { %4138 = vmatmul.msk.f32.vlgmr.msra.gmra.mxu0 %vm2853_vm7, %v2821_v61  ;;  %3140 = vmatpush.msra.mxu1 %v4189_v30  ;;  %v4231_v61 = vld [vmem:[%s7391_s8 + $0x410] sm:$0xff]  ;;  %v4214_v30 = vld [vmem:[%s7391_s8 + $0x388] sm:$0xff] }
 0x5de   :  { %3041 = vmatpush.msra.mxu0 %v4172_v50  ;;  %v4232_v50 = vld [vmem:[%s7391_s8 + $0x418] sm:$0xff] }
 0x5df   :  { %3141 = vmatpush.msra.mxu1 %v4188_v44 }
 0x5e0   :  { %3042 = vmatpush.msra.mxu0 %v4171_v0  ;;  %v4230_v0 = vld [vmem:[%s7391_s8 + $0x408] sm:$0xff] }
 0x5e1   :  { %3142 = vmatpush.msra.mxu1 %v4187_v56 }
 0x5e2   :  { %3043 = vmatpush.msra.mxu0 %v4170_v14  ;;  %v4229_v14 = vld [vmem:[%s7391_s8 + $0x400] sm:$0xff] }
 0x5e3   :  { %3143 = vmatpush.msra.mxu1 %v4186_v54 }
 0x5e4   :  { %3044 = vmatpush.msra.mxu0 %v4169_v34  ;;  %v4213_v34 = vld [vmem:[%s7391_s8 + $0x380] sm:$0xff] }
 0x5e5   :  { %4142 = vmatmul.msk.f32.vlgmr.msrb.gmra.mxu0 %vm2700_vm6, %v4140_v24 }
 0x5e6   :  { %3045 = vmatpush.msra.mxu0 %v4168_v16 }
 0x5e8   :  { %3046 = vmatpush.msra.mxu0 %v4167_v52 }
 0x5ea   :  { %3047 = vmatpush.msra.mxu0 %v4166_v11 }
 0x5ec   :  { %3048 = vmatpush.msra.mxu0 %v4165_v47 }
 0x5ee   :  { %3049 = vmatpush.msra.mxu0 %v4164_v57 }
 0x5f0   :  { %3050 = vmatpush.msra.mxu0 %v4163_v33 }
 0x5f2   :  { %3051 = vmatpush.msra.mxu0 %v4162_v40 }
 0x5f4   :  { %3052 = vmatpush.msra.mxu0 %v4161_v53 }
 0x5f6   :  { %4209 = vmatpush.msk.msrb.mxu0 %vm2704_vm5, %v6876_v3  ;;  %v4199_v3 = vld [vmem:[%s7391_s8 + $0x340] sm:$0xff] }
 0x5f7   :  { %3166 = vmatpush.msrb.mxu2 %v4199_v3 }
 0x5f8   :  { %3196 = vmatpush.msrb.mxu0 %v6878_v2  ;;  %v4185_v2 = vld [vmem:[%s7391_s8 + $0x2d0] sm:$0xff] }
 0x5f9   :  { %3144 = vmatpush.msra.mxu1 %v4185_v2  ;;  %3167 = vmatpush.msrb.mxu2 %v4198_v6  ;;  %v4258_v2 = vld [vmem:[%s7392_s9] ss:$0 sm:$0xff] }
 0x5fb   :  { %3145 = vmatpush.msra.mxu1 %v4184_v49  ;;  %3168 = vmatpush.msrb.mxu2 %v4197_v23 }
 0x5fd   :  { %3146 = vmatpush.msra.mxu1 %v4183_v25  ;;  %3169 = vmatpush.msrb.mxu2 %v4196_v60  ;;  %v3300_v25 = vld [vmem:[%s7393_s10] sm:$0x3]  ;;  %v4244_v60 = vld [vmem:[%s7393_s10 + $0x2] sm:$0x3]  ;;  %s3429_s10 = sshll.u32 %s4286_s23, 4  ;;  %s3430_s10 = int_to_ptr.vmem [resolvable:$true] %s3429_s10 }
 0x5ff   :  { %3147 = vmatpush.msra.mxu1 %v4182_v17  ;;  %3170 = vmatpush.msrb.mxu2 %v4195_v26  ;;  %v4254_v17 = vld [vmem:[%s7394_s11 + $0x78] sm:$0xff] }
 0x600   :  { %v3335_v26 = vld [vmem:[%s7394_s11 + $0x38] sm:$0xff] }
 0x601   :  { %3148 = vmatpush.msra.mxu1 %v4181_v29  ;;  %3277 = vmatpush.msra.mxu2 %v4240_v59  ;;  %v4253_v29 = vld [vmem:[%s7394_s11 + $0x70] sm:$0xff]  ;;  %v3332_v59 = vld [vmem:[%s7394_s11 + $0x20] sm:$0xff] }
 0x603   :  { %3149 = vmatpush.msra.mxu1 %v4180_v28  ;;  %3278 = vmatpush.msra.mxu2 %v4239_v45  ;;  %v3334_v28 = vld [vmem:[%s7394_s11 + $0x30] sm:$0xff]  ;;  %v4250_v45 = vld [vmem:[%s7394_s11 + $0x58] sm:$0xff] }
 0x605   :  { %3150 = vmatpush.msra.mxu1 %v4179_v58  ;;  %3279 = vmatpush.msra.mxu2 %v4238_v62  ;;  %v4251_v58 = vld [vmem:[%s7394_s11 + $0x60] sm:$0xff]  ;;  %v4248_v62 = vld [vmem:[%s7394_s11 + $0x48] sm:$0xff] }
 0x607   :  { %3280 = vmatpush.msra.mxu2 %v4237_v51  ;;  %v3329_v51 = vld [vmem:[%s7394_s11 + $0x8] sm:$0xff] }
 0x609   :  { %3281 = vmatpush.msra.mxu2 %v4236_v63 }
 0x60b   :  { %3282 = vmatpush.msra.mxu2 %v4235_v18  ;;  %v4259_v18 = vld [vmem:[%s7395_s12] ss:$0 sm:$0xff] }
 0x60d   :  { %3283 = vmatpush.msra.mxu2 %v4234_v21 }
 0x60f   :  { %3284 = vmatpush.msra.mxu2 %v4233_v41 }
 0x611   :  { %3285 = vmatpush.msra.mxu2 %v4232_v50 }
 0x613   :  { %3286 = vmatpush.msra.mxu2 %v4231_v61 }
 0x615   :  { %3287 = vmatpush.msra.mxu2 %v4230_v0 }
 0x617   :  { %3288 = vmatpush.msra.mxu2 %v4229_v14 }
 0x647   :  { %v2874_v5 = vpop.f32.mrf.mxu1  ;;  %v2917_v27 = vpop.f32.mrf.mxu2 }
 0x64f   :  { %v2982_v1 = vpop.f32.mrf.mxu1  ;;  %v3100_v20 = vpop.f32.mrf.mxu2 }
 0x650   :  { %4207 = vmatmul.msk.f32.vlgmr.msrb.gmra.mxu2 %vm2853_vm7, %v3100_v20  ;;  %4173 = vmatmul.msk.f32.vlgmr.msra.gmra.mxu0 %vm2853_vm7, %v2982_v1  ;;  %v4247_v1 = vld [vmem:[%s7394_s11 + $0x40] sm:$0xff]  ;;  %v3331_v20 = vld [vmem:[%s7394_s11 + $0x18] sm:$0xff] }
 0x651   :  { %3253 = vmatpush.msra.mxu0 %v4228_v12  ;;  %v4249_v12 = vld [vmem:[%s7394_s11 + $0x50] sm:$0xff] }
 0x653   :  { %3254 = vmatpush.msra.mxu0 %v4227_v7  ;;  %v3330_v7 = vld [vmem:[%s7394_s11 + $0x10] sm:$0xff] }
 0x655   :  { %3255 = vmatpush.msra.mxu0 %v4226_v8  ;;  %v3328_v8 = vld [vmem:[%s7394_s11] sm:$0xff] }
 0x657   :  { %v3080_v22 = vpop.f32.mrf.mxu1  ;;  %3256 = vmatpush.msra.mxu0 %v4225_v15 }
 0x658   :  { %3151 = vmatmul.f32.vlgmr.msra.gmra.mxu1 %v3080_v22  ;;  %4210 = vmatmul.msk.f32.vlgmr.msrb.gmra.mxu0 %vm2700_vm6, %v4208_v35 }
 0x659   :  { %3257 = vmatpush.msra.mxu0 %v4224_v19 }
 0x65a   :  { %v2894_v55 = vpop.f32.mrf.mxu0  ;;  %v2937_v44 = vpop.f32.mrf.mxu3 }
 0x65b   :  { %v2895_v24 = vadd.f32 %v2894_v55, %v2874_v5  ;;  %3258 = vmatpush.msra.mxu0 %v4223_v36  ;;  %v4252_v5 = vld [vmem:[%s7394_s11 + $0x68] sm:$0xff] }
 0x65d   :  { %v2918_v39 = vadd.f32 %v2917_v27, %v2895_v24  ;;  %3259 = vmatpush.msra.mxu0 %v4222_v37  ;;  %v3333_v27 = vld [vmem:[%s7394_s11 + $0x28] sm:$0xff] }
 0x65f   :  { %3260 = vmatpush.msra.mxu0 %v4221_v38  ;;  %v2938_v52 = vadd.f32 %v2937_v44, %v2918_v39 }
 0x661   :  { %3261 = vmatpush.msra.mxu0 %v4220_v32 }
 0x662   :  { %v2962_v31 = vpop.f32.mrf.mxu0 }
 0x663   :  { %3033 = vmatmul.f32.vlgmr.msra.gmra.mxu3 %v2962_v31  ;;  %3262 = vmatpush.msra.mxu0 %v4219_v46 }
 0x665   :  { %3263 = vmatpush.msra.mxu0 %v4218_v42 }
 0x667   :  { %3264 = vmatpush.msra.mxu0 %v4217_v48 }
 0x669   :  { %3265 = vmatpush.msra.mxu0 %v4216_v9 }
 0x66b   :  { %4212 = vmatmul.msk.f32.vlgmr.msrb.gmra.mxu3 %vm2700_vm6, %v4208_v35  ;;  %3266 = vmatpush.msra.mxu0 %v4215_v10 }
 0x66d   :  { %3267 = vmatpush.msra.mxu0 %v4214_v30 }
 0x66f   :  { %3268 = vmatpush.msra.mxu0 %v4213_v34 }
 0x6cd   :  { %v3054_v4 = vpop.f32.mrf.mxu0 }
 0x6d3   :  { %v3172_v33 = vpop.f32.mrf.mxu2 }
 0x6d5   :  { %v3198_v43 = vpop.f32.mrf.mxu0  ;;  %v3152_v40 = vpop.f32.mrf.mxu1 }
 0x6d6   :  { %3269 = vmatmul.f32.vlgmr.msra.gmra.mxu0 %v3198_v43  ;;  %v3173_v53 = vadd.f32 %v3172_v33, %v3152_v40 }
 0x6e6   :  { %v3034_v16 = vpop.f32.mrf.mxu3 }
 0x6e7   :  { %v3055_v11 = vadd.f32 %v3054_v4, %v3034_v16 }
 0x6e9   :  { %v3057_v47 = vadd.f32 %v3055_v11, %v2938_v52 }
 0x6eb   :  { %v3175_v54 = vadd.f32 %v3173_v53, %v3057_v47 }
 0x6ee   :  { %v3218_v57 = vpop.f32.mrf.mxu3 }
 0x6ef   :  { %4241 = vmatmul.msk.f32.vlgmr.msra.gmra.mxu2 %vm2853_vm7, %v3218_v57 }
 0x753   :  { %v3270_v56 = vpop.f32.mrf.mxu0 }
 0x772   :  { %v3290_v13 = vpop.f32.mrf.mxu2 }
 0x773   :  { %v3291_v3 = vadd.f32 %v3290_v13, %v3270_v56 }
 0x775   :  { %v3293_v6 = vadd.f32 %v3291_v3, %v3175_v54 }
 0x777   :  { %v3298_v49 = vadd.f32 %v4258_v2, %v3293_v6 }
 0x779   :  { %v3299_v23 = vmax.f32 %v3298_v49, 0.0 }
 0x77b   :  { %4242 = vmatpush.msk.msra.mxu3 %vm1197_vm2, %v3299_v23  ;;  %4245 = vmatpush.msk.msrb.mxu1 %vm1197_vm2, %v3299_v23 }
 0x77c   :  { %4243 = vmatmul.msk.f32.vlgmr.msra.gmra.mxu3 %vm3301_vm8, %v3300_v25  ;;  %4246 = vmatmul.msk.f32.vlgmr.msrb.gmra.mxu1 %vm3301_vm8, %v4244_v60 }
 0x77d   :  { %3382 = vmatpush.msrb.mxu3 %v4254_v17  ;;  %3405 = vmatpush.msra.mxu1 %v3335_v26 }
 0x77f   :  { %3383 = vmatpush.msrb.mxu3 %v4253_v29  ;;  %3406 = vmatpush.msra.mxu1 %v3334_v28 }
 0x781   :  { %3384 = vmatpush.msrb.mxu3 %v4252_v5  ;;  %3407 = vmatpush.msra.mxu1 %v3333_v27 }
 0x783   :  { %3385 = vmatpush.msrb.mxu3 %v4251_v58  ;;  %3408 = vmatpush.msra.mxu1 %v3332_v59 }
 0x785   :  { %3386 = vmatpush.msrb.mxu3 %v4250_v45  ;;  %3409 = vmatpush.msra.mxu1 %v3331_v20 }
 0x787   :  { %3387 = vmatpush.msrb.mxu3 %v4249_v12  ;;  %3410 = vmatpush.msra.mxu1 %v3330_v7 }
 0x789   :  { %3388 = vmatpush.msrb.mxu3 %v4248_v62  ;;  %3411 = vmatpush.msra.mxu1 %v3329_v51 }
 0x78b   :  { %3389 = vmatpush.msrb.mxu3 %v4247_v1  ;;  %3412 = vmatpush.msra.mxu1 %v3328_v8 }
 0x7f9   :  { %v3358_v63 = vpop.f32.mrf.mxu1 }
 0x7fa   :  { %4255 = vmatmul.msk.f32.vlgmr.msrb.gmra.mxu3 %vm3370_vm9, %v3358_v63 }
 0x7ff   :  { %v3325_v15 = vpop.f32.mrf.mxu3 }
 0x800   :  { %4256 = vmatmul.msk.f32.vlgmr.msra.gmra.mxu1 %vm3370_vm9, %v3325_v15 }
 0x87d   :  { %v3391_v19 = vpop.f32.mrf.mxu3  ;;  %v3414_v21 = vpop.f32.mrf.mxu1 }
 0x87e   :  { %v3415_v22 = vadd.f32 %v3414_v21, %v3391_v19 }
 0x880   :  { %v3421_v35 = vadd.f32 %v4259_v18, %v3415_v22 }
 0x882   :  { %3423 = vst.msk [vmem:[#allocation2] sm:$0x3] %vm3422_vm10, %v3421_v35 }
 0x883   :  { %3434 = dma.vmem_to_hbm [thread:$0]  %s3430_s10, 32, %s3432_s25, [#allocation3]  }
 0x884   :  { %4284 = dma.done.wait [#allocation3], 32  }
 0x885   :  { %4285 = vsyncadd [#allocation3], 4294967264 }
 0x886   :  { %3439 = vsyncpa [#allocation3], 1 }

</bundles_post_ra>
